<compile_context>
chip_gen: v7x
topology: tpu7x:2x2x1
jax: 0.10.0
libtpu: 0.0.40
codegen_flags: <defaults>
</compile_context>

<pallas_src>
import functools

import jax
import jax.numpy as jnp
from jax import lax
from jax.experimental import pallas as pl
from jax.experimental.pallas import tpu as pltpu

# size_selection('dino_ss') -> [384, 64, 32]
L0, L1, L2, NCLS = 384, 64, 32, 2
NEG_INF = -1e30
DEFAULT_TILE_N = 4096          # bf16 h: 2 x 4096 x 384 x 2B = 6 MiB double-buffered


def _clam_sb_kernel(n_total, nb, need_mask,
                    h_ref, wfc_ref, bfc_ref, wab_ref, bab_ref, wc_ref, bc_ref,
                    a_ref, m_ref, l_ref, acc_ref):
    c = pl.program_id(0)          # core split of the bag ("parallel")
    k = pl.program_id(1)          # tile within this core's range ("arbitrary")
    tile_n = h_ref.shape[0]
    g = c * nb + k                # global (un-clamped) tile index

    @pl.when(k == 0)
    def _init():                  # per-core online-softmax state lives in the
        m_ref[0] = jnp.full((1, 1), NEG_INF, jnp.float32)      # resident output
        l_ref[0] = jnp.zeros((1, 1), jnp.float32)              # blocks (index
        acc_ref[0] = jnp.zeros((1, L1), jnp.float32)           # map const in k)

    # fc: Linear(L0, L1) + ReLU.  bf16 operands, f32 MXU accumulation.
    h1 = jnp.dot(h_ref[...], wfc_ref[...], preferred_element_type=jnp.float32)
    h1 = jnp.maximum(h1 + bfc_ref[...], 0.0)                   # [T, L1] f32

    if need_mask:
        # Last real tile may be partial, and phantom steps (odd tile count on
        # the 2-core split) re-read it: zero rows past N so 0 * NaN garbage
        # can never leak into the p @ h1 accumulation below.
        row_ids = g * tile_n + lax.broadcasted_iota(jnp.int32, (tile_n, 1), 0)
        h1 = jnp.where(row_ids < n_total, h1, 0.0)

    # Attn_Net_Gated: attention_a|attention_b fused into one [L1, 2*L2] matmul.
    ab = jnp.dot(h1.astype(jnp.bfloat16), wab_ref[...],
                 preferred_element_type=jnp.float32) + bab_ref[...]
    ag = jnp.tanh(ab[:, :L2]) * jax.nn.sigmoid(ab[:, L2:])     # [T, L2] f32

    # attention_c: Linear(L2, 1), computed as wc[1,L2] . ag^T so the raw scores
    # come out lane-dense as a [1, T] row (unmasked full-width stores).
    scores = lax.dot_general(wc_ref[...], ag, (((1,), (1,)), ((), ())),
                             preferred_element_type=jnp.float32) + bc_ref[...]
    if need_mask:
        col_ids = g * tile_n + lax.broadcasted_iota(jnp.int32, (1, tile_n), 1)
        scores = jnp.where(col_ids < n_total, scores, NEG_INF)
    a_ref[...] = scores           # raw (pre-softmax) attention logits per tile

    # Per-core online-softmax partials of M = softmax(A) @ h1 (exact merge in
    # the wrapper -- no approximate reciprocal anywhere).
    m_old = m_ref[0]                                            # [1, 1]
    m_new = jnp.maximum(m_old, jnp.max(scores, axis=-1, keepdims=True))
    alpha = jnp.exp(m_old - m_new)
    p = jnp.exp(scores - m_new)                                 # [1, T] f32
    l_ref[0] = alpha * l_ref[0] + jnp.sum(p, axis=-1, keepdims=True)
    acc_ref[0] = alpha * acc_ref[0] + jnp.dot(p, h1,
                                              preferred_element_type=jnp.float32)
    m_ref[0] = m_new


def _pick_tile(n, requested=DEFAULT_TILE_N):
    if n <= requested:
        return n                       # single full-extent block (always legal)
    # Multiple blocks: h's sublane dim and A's lane dim must be (8,128)-aligned.
    return max(128, (requested // 128) * 128)


def _const_spec(shape):
    return pl.BlockSpec(shape, lambda *_: (0,) * len(shape))


def clam_sb_forward(h, params, *, tile_n=DEFAULT_TILE_N, n_cores=2,
                    return_features=False):
    h = jnp.asarray(h, jnp.float32)
    N = h.shape[0]
    tile = _pick_tile(N, tile_n)
    nblocks = pl.cdiv(N, tile)
    ncores = n_cores if nblocks >= 2 else 1      # v7x: 2 TCs; no-op on v5e/v6e
    nb = pl.cdiv(nblocks, ncores)                # tiles per core (rectangular grid)
    # Every core must see at least one real tile before any phantom step
    # (otherwise the NEG_INF running max would make exp(0)=1 for masked cols).
    assert ncores == 1 or nb <= nblocks - 1
    phantom = (ncores * nb != nblocks)
    need_mask = (N % tile != 0) or phantom
    npad = ncores * nb * tile                    # lane-padded raw-score width
    last_block = nblocks - 1

    # bf16 streaming of h and the two big matmul weights (f32 accumulation).
    h_bf = h.astype(jnp.bfloat16)
    wfc = params['wfc'].astype(jnp.bfloat16)
    wab = jnp.concatenate([params['wa'], params['wb']], axis=1).astype(jnp.bfloat16)
    bab = jnp.concatenate([params['ba'], params['bb']], axis=1)   # f32 [1, 2*L2]

    weights = (wfc, params['bfc'], wab, bab, params['wc'], params['bc'])
    kernel = functools.partial(_clam_sb_kernel, N, nb, need_mask)

    cost = pl.CostEstimate(
        flops=int(2 * N * (L0 * L1 + L1 * 2 * L2 + L2 + L1)),
        transcendentals=int(N * (2 * L2 + 1)),
        bytes_accessed=int(2 * N * L0 + 4 * npad
                           + sum(int(w.size) * w.dtype.itemsize for w in weights)
                           + 4 * ncores * (2 + L1)),
    )

    # Phantom steps (only when ncores*nb > nblocks) re-read the last real tile;
    # their rows/cols are fully masked in-kernel so they contribute nothing.
    if phantom:
        h_index = lambda c, k: (jnp.minimum(c * nb + k, last_block), 0)
    else:
        h_index = lambda c, k: (c * nb + k, 0)

    out_shapes = (
        jax.ShapeDtypeStruct((1, npad), jnp.float32),        # raw attn logits (padded)
        jax.ShapeDtypeStruct((ncores, 1, 1), jnp.float32),   # per-core running max m
        jax.ShapeDtypeStruct((ncores, 1, 1), jnp.float32),   # per-core denom l
        jax.ShapeDtypeStruct((ncores, 1, L1), jnp.float32),  # per-core acc = sum(p*h1)
    )

    scores_pad, m_p, l_p, acc_p = pl.pallas_call(
        kernel,
        out_shape=out_shapes,
        grid_spec=pltpu.PrefetchScalarGridSpec(
            num_scalar_prefetch=0,
            grid=(ncores, nb),
            in_specs=[
                pl.BlockSpec((tile, L0), h_index),       # h: streamed (bf16)
                _const_spec((L0, L1)),                   # wfc (bf16)
                _const_spec((1, L1)),                    # bfc
                _const_spec((L1, 2 * L2)),               # wab (bf16, fused a|b)
                _const_spec((1, 2 * L2)),                # bab
                _const_spec((1, L2)),                    # wc
                _const_spec((1, 1)),                     # bc
            ],
            out_specs=(
                pl.BlockSpec((1, tile), lambda c, k: (0, c * nb + k)),
                pl.BlockSpec((1, 1, 1), lambda c, k: (c, 0, 0)),
                pl.BlockSpec((1, 1, 1), lambda c, k: (c, 0, 0)),
                pl.BlockSpec((1, 1, L1), lambda c, k: (c, 0, 0)),
            ),
        ),
        compiler_params=pltpu.CompilerParams(
            dimension_semantics=("parallel", "arbitrary"),
            # actual footprint ~6-10 MiB at tile 4096 bf16; explicit limit keeps
            # us safely inside v7x's 32 MiB scoped / 64 MiB physical VMEM.
            vmem_limit_bytes=32 * 1024 * 1024,
        ),
        cost_estimate=cost,
    )(h_bf, *weights)

    # --- exact merge of the per-core online-softmax partials (tiny, in f32) ---
    scores = scores_pad[:, :N]                       # [1, N] raw attention logits
    m = jnp.max(m_p, axis=0)                         # (1, 1)
    w = jnp.exp(m_p - m)                             # (ncores, 1, 1)
    l = jnp.sum(w * l_p, axis=0)                     # (1, 1)
    acc = jnp.sum(w * acc_p, axis=0)                 # (1, L1)
    M = acc / l                                      # == softmax(A) @ h1  (exact div)

    # torch: A = softmax(A.T, dim=1); A_raw = A
    A_raw = jax.nn.softmax(scores, axis=1)
    logits = M @ params['wcls'] + params['bcls']     # classifiers: Linear(L1, NCLS)
    Y_prob = jax.nn.softmax(logits, axis=1)
    Y_hat = jnp.argmax(logits, axis=1, keepdims=True)   # torch.topk(logits, 1)[1]

    results = {'features': M} if return_features else {}
    return logits, Y_prob, Y_hat, A_raw, results


def init_params(key):
    """Deterministic Xavier-ish init (matches parameter shapes of CLAM_SB)."""
    ks = jax.random.split(key, 6)

    def xavier(k, fan_in, fan_out):
        scale = jnp.sqrt(2.0 / (fan_in + fan_out))
        return scale * jax.random.normal(k, (fan_in, fan_out), dtype=jnp.float32)

    return {
        # fc: Linear(L0, L1)
        'wfc': xavier(ks[0], L0, L1), 'bfc': jnp.zeros((1, L1), jnp.float32),
        # attention_a: Linear(L1, L2)
        'wa': xavier(ks[1], L1, L2), 'ba': jnp.zeros((1, L2), jnp.float32),
        # attention_b: Linear(L1, L2)
        'wb': xavier(ks[2], L1, L2), 'bb': jnp.zeros((1, L2), jnp.float32),
        # attention_c: Linear(L2, 1)  -- stored as [1, L2] (lane-major)
        'wc': xavier(ks[3], L2, 1).T, 'bc': jnp.zeros((1, 1), jnp.float32),
        # classifiers: Linear(L1, NCLS)
        'wcls': xavier(ks[4], L1, NCLS), 'bcls': jnp.zeros((1, NCLS), jnp.float32),
    }


def _reference_forward(h, p):
    """Pure-JAX reference mirroring the kernel's bf16-operand / f32-accum path."""
    hb = h.astype(jnp.bfloat16)
    h1 = jnp.dot(hb, p['wfc'].astype(jnp.bfloat16),
                 preferred_element_type=jnp.float32) + p['bfc']
    h1 = jnp.maximum(h1, 0.0)
    h1b = h1.astype(jnp.bfloat16)
    a = jnp.tanh(jnp.dot(h1b, p['wa'].astype(jnp.bfloat16),
                         preferred_element_type=jnp.float32) + p['ba'])
    g = jax.nn.sigmoid(jnp.dot(h1b, p['wb'].astype(jnp.bfloat16),
                               preferred_element_type=jnp.float32) + p['bb'])
    A = (a * g) @ p['wc'].T + p['bc']            # [N, 1]
    A = jax.nn.softmax(A.T, axis=1)              # [1, N]
    M = A @ h1                                   # [1, L1]
    logits = M @ p['wcls'] + p['bcls']           # [1, NCLS]
    return logits, jax.nn.softmax(logits, axis=1), A, M


if __name__ == "__main__":
    key = jax.random.PRNGKey(0)
    kh, kp = jax.random.split(key)
    params = init_params(kp)

    # (N, tile override):
    #   (640, None) : single full-extent block (N <= default tile)
    #   (640, 256)  : 3 tiles -> 2-core split with one phantom step + partial tail
    #   (1024, 256) : 4 tiles -> 2-core split, fully aligned (no masking at all)
    #   (96, None)  : tiny single block
    cases = [(640, None), (640, 256), (1024, 256), (96, None)]
    for N, tile in cases:
        h = jax.random.normal(jax.random.fold_in(kh, N), (N, L0), dtype=jnp.float32)
        kwargs = {} if tile is None else {'tile_n': tile}

        logits, yprob, yhat, a_raw, res = clam_sb_forward(h, params,
                                                          return_features=True,
                                                          **kwargs)
        jax.block_until_ready((logits, yprob, yhat, a_raw, res['features']))

        ref_logits, ref_yprob, ref_A, ref_M = _reference_forward(h, params)

        assert logits.shape == (1, NCLS) and yprob.shape == (1, NCLS)
        assert yhat.shape == (1, 1) and a_raw.shape == (1, N)
        assert jnp.all(jnp.isfinite(a_raw)) and jnp.all(jnp.isfinite(logits))
        assert jnp.allclose(a_raw, ref_A, rtol=2e-3, atol=1e-6), f"A N={N} tile={tile}"
        assert jnp.allclose(res['features'], ref_M, rtol=2e-3, atol=1e-4), f"M N={N} tile={tile}"
        assert jnp.allclose(logits, ref_logits, rtol=2e-3, atol=1e-4), f"logits N={N} tile={tile}"
        assert jnp.allclose(yprob, ref_yprob, rtol=2e-3, atol=1e-4), f"Y_prob N={N} tile={tile}"

    print("KERNEL_OK")
</pallas_src>

<mosaic_0001>
module attributes {stable_mosaic.version = 11 : i64} {
  func.func @_clam_sb_kernel(%arg0: i32, %arg1: i32, %arg2: memref<640x384xbf16, #tpu.memory_space<vmem>>, %arg3: memref<384x64xbf16, #tpu.memory_space<vmem>>, %arg4: memref<1x64xf32, #tpu.memory_space<vmem>>, %arg5: memref<64x64xbf16, #tpu.memory_space<vmem>>, %arg6: memref<1x64xf32, #tpu.memory_space<vmem>>, %arg7: memref<1x32xf32, #tpu.memory_space<vmem>>, %arg8: memref<1x1xf32, #tpu.memory_space<vmem>>, %arg9: memref<1x640xf32, #tpu.memory_space<vmem>>, %arg10: memref<1x1x1xf32, #tpu.memory_space<vmem>>, %arg11: memref<1x1x1xf32, #tpu.memory_space<vmem>>, %arg12: memref<1x1x64xf32, #tpu.memory_space<vmem>>) attributes {dimension_semantics = [#tpu.dimension_semantics<parallel>, #tpu.dimension_semantics<arbitrary>], iteration_bounds = array<i64: 1, 1>, scalar_prefetch = 0 : i64, scratch_operands = 0 : i64, tpu.core_type = #tpu.core_type<tc>, window_params = [{transform_indices = @transform_0, window_bounds = array<i64: 640, 384>}, {pipeline_mode = #tpu.pipeline_mode<synchronous>, transform_indices = @transform_1, window_bounds = array<i64: 384, 64>}, {pipeline_mode = #tpu.pipeline_mode<synchronous>, transform_indices = @transform_2, window_bounds = array<i64: 1, 64>}, {pipeline_mode = #tpu.pipeline_mode<synchronous>, transform_indices = @transform_3, window_bounds = array<i64: 64, 64>}, {pipeline_mode = #tpu.pipeline_mode<synchronous>, transform_indices = @transform_4, window_bounds = array<i64: 1, 64>}, {pipeline_mode = #tpu.pipeline_mode<synchronous>, transform_indices = @transform_5, window_bounds = array<i64: 1, 32>}, {pipeline_mode = #tpu.pipeline_mode<synchronous>, transform_indices = @transform_6, window_bounds = array<i64: 1, 1>}, {transform_indices = @transform_7, window_bounds = array<i64: 1, 640>}, {transform_indices = @transform_8, window_bounds = array<i64: 1, 1, 1>}, {transform_indices = @transform_9, window_bounds = array<i64: 1, 1, 1>}, {transform_indices = @transform_10, window_bounds = array<i64: 1, 1, 64>}]} {
    %c0_i32 = arith.constant 0 : i32
    %0 = arith.cmpi eq, %arg1, %c0_i32 : i32
    %1 = arith.extui %0 : i1 to i32
    %c0_i32_0 = arith.constant 0 : i32
    %2 = arith.cmpi ne, %1, %c0_i32_0 : i32
    scf.if %2 {
      %cst_41 = arith.constant -1.000000e+30 : f32
      %63 = vector.broadcast %cst_41 : f32 to vector<1x1xf32>
      %c0_42 = arith.constant 0 : index
      %c0_43 = arith.constant 0 : index
      %c0_44 = arith.constant 0 : index
      %64 = vector.load %arg10[%c0_42, %c0_43, %c0_44] : memref<1x1x1xf32, #tpu.memory_space<vmem>>, vector<1x1x1xf32>
      %65 = vector.shape_cast %64 : vector<1x1x1xf32> to vector<1x1xf32>
      %66 = vector.shape_cast %63 : vector<1x1xf32> to vector<1x1x1xf32>
      tpu.vector_store %arg10[%c0_42, %c0_43, %c0_44], %66 {strides = array<i32>} : memref<1x1x1xf32, #tpu.memory_space<vmem>>, vector<1x1x1xf32>,
      %cst_45 = arith.constant 0.000000e+00 : f32
      %67 = vector.broadcast %cst_45 : f32 to vector<1x1xf32>
      %c0_46 = arith.constant 0 : index
      %c0_47 = arith.constant 0 : index
      %c0_48 = arith.constant 0 : index
      %68 = vector.load %arg11[%c0_46, %c0_47, %c0_48] : memref<1x1x1xf32, #tpu.memory_space<vmem>>, vector<1x1x1xf32>
      %69 = vector.shape_cast %68 : vector<1x1x1xf32> to vector<1x1xf32>
      %70 = vector.shape_cast %67 : vector<1x1xf32> to vector<1x1x1xf32>
      tpu.vector_store %arg11[%c0_46, %c0_47, %c0_48], %70 {strides = array<i32>} : memref<1x1x1xf32, #tpu.memory_space<vmem>>, vector<1x1x1xf32>,
      %cst_49 = arith.constant 0.000000e+00 : f32
      %71 = vector.broadcast %cst_49 : f32 to vector<1x64xf32>
      %c0_50 = arith.constant 0 : index
      %c0_51 = arith.constant 0 : index
      %c0_52 = arith.constant 0 : index
      %72 = vector.load %arg12[%c0_50, %c0_51, %c0_52] : memref<1x1x64xf32, #tpu.memory_space<vmem>>, vector<1x1x64xf32>
      %73 = vector.shape_cast %72 : vector<1x1x64xf32> to vector<1x64xf32>
      %74 = vector.shape_cast %71 : vector<1x64xf32> to vector<1x1x64xf32>
      tpu.vector_store %arg12[%c0_50, %c0_51, %c0_52], %74 {strides = array<i32>} : memref<1x1x64xf32, #tpu.memory_space<vmem>>, vector<1x1x64xf32>,
    } else {
    }
    %c0 = arith.constant 0 : index
    %c0_1 = arith.constant 0 : index
    %3 = vector.load %arg2[%c0, %c0_1] : memref<640x384xbf16, #tpu.memory_space<vmem>>, vector<640x384xbf16>
    %c0_2 = arith.constant 0 : index
    %c0_3 = arith.constant 0 : index
    %4 = vector.load %arg3[%c0_2, %c0_3] : memref<384x64xbf16, #tpu.memory_space<vmem>>, vector<384x64xbf16>
    %cst = arith.constant dense<0.000000e+00> : vector<640x64xf32>
    %5 = tpu.matmul %3, %4, %cst {dimension_numbers = #tpu.dot_dimension_numbers<[1], [0], [0], [1], [0, 0, 1, 1], [], []>} : vector<640x384xbf16>, vector<384x64xbf16>, vector<640x64xf32> -> vector<640x64xf32>
    %c0_4 = arith.constant 0 : index
    %c0_5 = arith.constant 0 : index
    %6 = vector.load %arg4[%c0_4, %c0_5] : memref<1x64xf32, #tpu.memory_space<vmem>>, vector<1x64xf32>
    %7 = vector.broadcast %6 : vector<1x64xf32> to vector<640x64xf32>
    %8 = arith.addf %5, %7 : vector<640x64xf32>
    %cst_6 = arith.constant 0.000000e+00 : f32
    %9 = vector.broadcast %cst_6 : f32 to vector<640x64xf32>
    %10 = arith.maximumf %8, %9 : vector<640x64xf32>
    %11 = arith.truncf %10 : vector<640x64xf32> to vector<640x64xbf16>
    %c0_7 = arith.constant 0 : index
    %c0_8 = arith.constant 0 : index
    %12 = vector.load %arg5[%c0_7, %c0_8] : memref<64x64xbf16, #tpu.memory_space<vmem>>, vector<64x64xbf16>
    %cst_9 = arith.constant dense<0.000000e+00> : vector<640x64xf32>
    %13 = tpu.matmul %11, %12, %cst_9 {dimension_numbers = #tpu.dot_dimension_numbers<[1], [0], [0], [1], [0, 0, 1, 1], [], []>} : vector<640x64xbf16>, vector<64x64xbf16>, vector<640x64xf32> -> vector<640x64xf32>
    %c0_10 = arith.constant 0 : index
    %c0_11 = arith.constant 0 : index
    %14 = vector.load %arg6[%c0_10, %c0_11] : memref<1x64xf32, #tpu.memory_space<vmem>>, vector<1x64xf32>
    %15 = vector.broadcast %14 : vector<1x64xf32> to vector<640x64xf32>
    %16 = arith.addf %13, %15 : vector<640x64xf32>
    %17 = vector.extract_strided_slice %16 {offsets = [0, 0], sizes = [640, 32], strides = [1, 1]} : vector<640x64xf32> to vector<640x32xf32>
    %18 = math.tanh %17 : vector<640x32xf32>
    %19 = vector.extract_strided_slice %16 {offsets = [0, 32], sizes = [640, 32], strides = [1, 1]} : vector<640x64xf32> to vector<640x32xf32>
    %20 = arith.negf %19 : vector<640x32xf32>
    %21 = math.exp %20 : vector<640x32xf32>
    %cst_12 = arith.constant 1.000000e+00 : f32
    %22 = vector.broadcast %cst_12 : f32 to vector<640x32xf32>
    %23 = arith.addf %22, %21 : vector<640x32xf32>
    %24 = arith.divf %22, %23 : vector<640x32xf32>
    %25 = arith.mulf %18, %24 : vector<640x32xf32>
    %c0_13 = arith.constant 0 : index
    %c0_14 = arith.constant 0 : index
    %26 = vector.load %arg7[%c0_13, %c0_14] : memref<1x32xf32, #tpu.memory_space<vmem>>, vector<1x32xf32>
    %cst_15 = arith.constant dense<0.000000e+00> : vector<1x640xf32>
    %27 = tpu.matmul %26, %25, %cst_15 {dimension_numbers = #tpu.dot_dimension_numbers<[1], [1], [0], [0], [0, 0, 1, 0], [], []>} : vector<1x32xf32>, vector<640x32xf32>, vector<1x640xf32> -> vector<1x640xf32>
    %c0_16 = arith.constant 0 : index
    %c0_17 = arith.constant 0 : index
    %28 = vector.load %arg8[%c0_16, %c0_17] : memref<1x1xf32, #tpu.memory_space<vmem>>, vector<1x1xf32>
    %29 = vector.broadcast %28 : vector<1x1xf32> to vector<1x640xf32>
    %30 = arith.addf %27, %29 : vector<1x640xf32>
    %c0_18 = arith.constant 0 : index
    %c0_19 = arith.constant 0 : index
    %31 = vector.load %arg9[%c0_18, %c0_19] : memref<1x640xf32, #tpu.memory_space<vmem>>, vector<1x640xf32>
    tpu.vector_store %arg9[%c0_18, %c0_19], %30 {strides = array<i32>} : memref<1x640xf32, #tpu.memory_space<vmem>>, vector<1x640xf32>,
    %c0_20 = arith.constant 0 : index
    %c0_21 = arith.constant 0 : index
    %c0_22 = arith.constant 0 : index
    %32 = vector.load %arg10[%c0_20, %c0_21, %c0_22] : memref<1x1x1xf32, #tpu.memory_space<vmem>>, vector<1x1x1xf32>
    %33 = vector.shape_cast %32 : vector<1x1x1xf32> to vector<1x1xf32>
    %cst_23 = arith.constant dense<0xFF800000> : vector<1xf32>
    %34 = vector.multi_reduction <maximumf>, %30, %cst_23 [1] : vector<1x640xf32> to vector<1xf32>
    %35 = vector.shape_cast %34 : vector<1xf32> to vector<1x1xf32>
    %36 = arith.maximumf %33, %35 : vector<1x1xf32>
    %37 = arith.subf %33, %36 : vector<1x1xf32>
    %38 = math.exp %37 : vector<1x1xf32>
    %39 = vector.broadcast %36 : vector<1x1xf32> to vector<1x640xf32>
    %40 = arith.subf %30, %39 : vector<1x640xf32>
    %41 = math.exp %40 : vector<1x640xf32>
    %c0_24 = arith.constant 0 : index
    %c0_25 = arith.constant 0 : index
    %c0_26 = arith.constant 0 : index
    %42 = vector.load %arg11[%c0_24, %c0_25, %c0_26] : memref<1x1x1xf32, #tpu.memory_space<vmem>>, vector<1x1x1xf32>
    %43 = vector.shape_cast %42 : vector<1x1x1xf32> to vector<1x1xf32>
    %44 = arith.mulf %38, %43 : vector<1x1xf32>
    %cst_27 = arith.constant dense<0.000000e+00> : vector<1xf32>
    %45 = vector.multi_reduction <add>, %41, %cst_27 [1] : vector<1x640xf32> to vector<1xf32>
    %46 = vector.shape_cast %45 : vector<1xf32> to vector<1x1xf32>
    %47 = arith.addf %44, %46 : vector<1x1xf32>
    %c0_28 = arith.constant 0 : index
    %c0_29 = arith.constant 0 : index
    %c0_30 = arith.constant 0 : index
    %48 = vector.load %arg11[%c0_28, %c0_29, %c0_30] : memref<1x1x1xf32, #tpu.memory_space<vmem>>, vector<1x1x1xf32>
    %49 = vector.shape_cast %48 : vector<1x1x1xf32> to vector<1x1xf32>
    %50 = vector.shape_cast %47 : vector<1x1xf32> to vector<1x1x1xf32>
    tpu.vector_store %arg11[%c0_28, %c0_29, %c0_30], %50 {strides = array<i32>} : memref<1x1x1xf32, #tpu.memory_space<vmem>>, vector<1x1x1xf32>,
    %c0_31 = arith.constant 0 : index
    %c0_32 = arith.constant 0 : index
    %c0_33 = arith.constant 0 : index
    %51 = vector.load %arg12[%c0_31, %c0_32, %c0_33] : memref<1x1x64xf32, #tpu.memory_space<vmem>>, vector<1x1x64xf32>
    %52 = vector.shape_cast %51 : vector<1x1x64xf32> to vector<1x64xf32>
    %53 = vector.broadcast %38 : vector<1x1xf32> to vector<1x64xf32>
    %54 = arith.mulf %53, %52 : vector<1x64xf32>
    %cst_34 = arith.constant dense<0.000000e+00> : vector<1x64xf32>
    %55 = tpu.matmul %41, %10, %cst_34 {dimension_numbers = #tpu.dot_dimension_numbers<[1], [0], [0], [1], [0, 0, 1, 1], [], []>} : vector<1x640xf32>, vector<640x64xf32>, vector<1x64xf32> -> vector<1x64xf32>
    %56 = arith.addf %54, %55 : vector<1x64xf32>
    %c0_35 = arith.constant 0 : index
    %c0_36 = arith.constant 0 : index
    %c0_37 = arith.constant 0 : index
    %57 = vector.load %arg12[%c0_35, %c0_36, %c0_37] : memref<1x1x64xf32, #tpu.memory_space<vmem>>, vector<1x1x64xf32>
    %58 = vector.shape_cast %57 : vector<1x1x64xf32> to vector<1x64xf32>
    %59 = vector.shape_cast %56 : vector<1x64xf32> to vector<1x1x64xf32>
    tpu.vector_store %arg12[%c0_35, %c0_36, %c0_37], %59 {strides = array<i32>} : memref<1x1x64xf32, #tpu.memory_space<vmem>>, vector<1x1x64xf32>,
    %c0_38 = arith.constant 0 : index
    %c0_39 = arith.constant 0 : index
    %c0_40 = arith.constant 0 : index
    %60 = vector.load %arg10[%c0_38, %c0_39, %c0_40] : memref<1x1x1xf32, #tpu.memory_space<vmem>>, vector<1x1x1xf32>
    %61 = vector.shape_cast %60 : vector<1x1x1xf32> to vector<1x1xf32>
    %62 = vector.shape_cast %36 : vector<1x1xf32> to vector<1x1x1xf32>
    tpu.vector_store %arg10[%c0_38, %c0_39, %c0_40], %62 {strides = array<i32>} : memref<1x1x1xf32, #tpu.memory_space<vmem>>, vector<1x1x1xf32>,
    return
  }
  func.func @transform_0(%arg0: i32, %arg1: i32) -> (i32, i32) {
    %c1_i32 = arith.constant 1 : i32
    %0 = arith.muli %arg0, %c1_i32 : i32
    %1 = arith.addi %0, %arg1 : i32
    %c0_i32 = arith.constant 0 : i32
    %c0_i32_0 = arith.constant 0 : i32
    return %1, %c0_i32 : i32, i32
  }
  func.func @transform_1(%arg0: i32, %arg1: i32) -> (i32, i32) {
    %c0_i32 = arith.constant 0 : i32
    %c0_i32_0 = arith.constant 0 : i32
    %c0_i32_1 = arith.constant 0 : i32
    return %c0_i32, %c0_i32_0 : i32, i32
  }
  func.func @transform_2(%arg0: i32, %arg1: i32) -> (i32, i32) {
    %c0_i32 = arith.constant 0 : i32
    %c0_i32_0 = arith.constant 0 : i32
    %c0_i32_1 = arith.constant 0 : i32
    return %c0_i32, %c0_i32_0 : i32, i32
  }
  func.func @transform_3(%arg0: i32, %arg1: i32) -> (i32, i32) {
    %c0_i32 = arith.constant 0 : i32
    %c0_i32_0 = arith.constant 0 : i32
    %c0_i32_1 = arith.constant 0 : i32
    return %c0_i32, %c0_i32_0 : i32, i32
  }
  func.func @transform_4(%arg0: i32, %arg1: i32) -> (i32, i32) {
    %c0_i32 = arith.constant 0 : i32
    %c0_i32_0 = arith.constant 0 : i32
    %c0_i32_1 = arith.constant 0 : i32
    return %c0_i32, %c0_i32_0 : i32, i32
  }
  func.func @transform_5(%arg0: i32, %arg1: i32) -> (i32, i32) {
    %c0_i32 = arith.constant 0 : i32
    %c0_i32_0 = arith.constant 0 : i32
    %c0_i32_1 = arith.constant 0 : i32
    return %c0_i32, %c0_i32_0 : i32, i32
  }
  func.func @transform_6(%arg0: i32, %arg1: i32) -> (i32, i32) {
    %c0_i32 = arith.constant 0 : i32
    %c0_i32_0 = arith.constant 0 : i32
    %c0_i32_1 = arith.constant 0 : i32
    return %c0_i32, %c0_i32_0 : i32, i32
  }
  func.func @transform_7(%arg0: i32, %arg1: i32) -> (i32, i32) {
    %c1_i32 = arith.constant 1 : i32
    %0 = arith.muli %arg0, %c1_i32 : i32
    %1 = arith.addi %0, %arg1 : i32
    %c0_i32 = arith.constant 0 : i32
    %c0_i32_0 = arith.constant 0 : i32
    return %c0_i32, %1 : i32, i32
  }
  func.func @transform_8(%arg0: i32, %arg1: i32) -> (i32, i32, i32) {
    %c0_i32 = arith.constant 0 : i32
    %c0_i32_0 = arith.constant 0 : i32
    %c0_i32_1 = arith.constant 0 : i32
    return %arg0, %c0_i32, %c0_i32_0 : i32, i32, i32
  }
  func.func @transform_9(%arg0: i32, %arg1: i32) -> (i32, i32, i32) {
    %c0_i32 = arith.constant 0 : i32
    %c0_i32_0 = arith.constant 0 : i32
    %c0_i32_1 = arith.constant 0 : i32
    return %arg0, %c0_i32, %c0_i32_0 : i32, i32, i32
  }
  func.func @transform_10(%arg0: i32, %arg1: i32) -> (i32, i32, i32) {
    %c0_i32 = arith.constant 0 : i32
    %c0_i32_0 = arith.constant 0 : i32
    %c0_i32_1 = arith.constant 0 : i32
    return %arg0, %c0_i32, %c0_i32_0 : i32, i32, i32
  }
}

</mosaic_0001>

<bundles_post_ra>
// kernel: tpu_custom_call.1
= control target key start
LH: loop header
LB: loop body
LE: loop exit
PB: predicated region body
PF: predicated region fallthrough
CT: control target
= control target key end

     0   :  { %s7677_s0 = inlined_call_operand.hbm [shape: bf16[640,384], index: 0, kind: input, shape index: {}]   ;;  %s7678_s1 = inlined_call_operand.vmem [shape: bf16[384,64], index: 1, kind: input, shape index: {}]   ;;  %s7679_s2 = inlined_call_operand.vmem [shape: f32[1,64], index: 2, kind: input, shape index: {}]   ;;  %s7680_s3 = inlined_call_operand.vmem [shape: bf16[64,64], index: 3, kind: input, shape index: {}]   ;;  %s7681_s4 = inlined_call_operand.vmem [shape: f32[1,64], index: 4, kind: input, shape index: {}]   ;;  %s7682_s5 = inlined_call_operand.vmem [shape: f32[1,32], index: 5, kind: input, shape index: {}]   ;;  %s7683_s6 = inlined_call_operand.<no memory space> [shape: f32[1,1], index: 6, kind: input, shape index: {}]   ;;  %s7684_s7 = inlined_call_operand.hbm [shape: f32[1,640], index: 7, kind: output, shape index: {0}]   ;;  %s7685_s8 = inlined_call_operand.hbm [shape: f32[1,1,1], index: 8, kind: output, shape index: {1}]   ;;  %s7686_s9 = inlined_call_operand.hbm [shape: f32[1,1,1], index: 9, kind: output, shape index: {2}]   ;;  %s7687_s10 = inlined_call_operand.hbm [shape: f32[1,1,64], index: 10, kind: output, shape index: {3}]  }
   0x1   :  { %v16_v0 = vstv %s7683_s6 }
   0x2   :  { %17 = vst [vmem:[#allocation2] sm:$0x1] %v16_v0 }
   0x3   :  { %18 = vsyncpa [#allocation4], 0 }
   0x4   :  { %19 = vsyncpa [#allocation5], 0 }
   0x5   :  { %20 = vsyncpa [#allocation8], 0 }
   0x6   :  { %21 = vsyncpa [#allocation11], 0  ;;  %s6128_s15 = smov [#allocation3]   ;;  %s6010_s19 = scalar_lea.hbm %s7677_s0, 15360 }
   0x7   :  { %s32_s16 = sshll.u32 %s6128_s15, 4  ;;  %p6011_p0 = scmp.ne.s32.totalorder %s7677_s0, %s6010_s19  ;;  %s33_s16 = int_to_ptr.vmem [resolvable:$true] %s32_s16 }
   0x8   :  { %p6014_p1 = scmp.lt.u32.totalorder %s6010_s19, %s7677_s0 }
   0xa   :  { %p6016_p2 = pnand %p6014_p1, %p6011_p0 }
   0xc   :  { %6019 = shalt.err (!%p6016_p2)
}
   0xd   :  { %s6020_s6 = scalar_lea.vmem %s33_s16, 15360  ;;  %p6025_p4 = scmp.lt.s32.totalorder %s33_s16, %s33_s16 }
   0xe   :  { %p6021_p3 = scmp.ne.s32.totalorder %s33_s16, %s6020_s6  ;;  %p6026_p5 = scmp.lt.s32.totalorder %s6020_s6, %s6020_s6 }
  0x10   :  { %p6027_p6 = por %p6026_p5, %p6025_p4 }
  0x12   :  { %p6028_p7 = pnand %p6027_p6, %p6021_p3 }
  0x14   :  { %6031 = shalt.err (!%p6028_p7)
}
  0x15   :  { %s6129_s24 = smov 192   ;;  %s6130_s25 = smov 12  }
  0x16   :  { %38 = dma.hbm_to_vmem [thread:$0]  %s7677_s0, 15360, %s33_s16, [#allocation4], %s6129_s24, %s6129_s24, %s6130_s25  }
  0x17   :  { %6120 = dma.done.wait [#allocation4], 15360  }
  0x18   :  { %6121 = vsyncadd [#allocation4], 4294951936  ;;  %v6131_v1 = vmov 0   ;;  %v5328_v2 = vld [vmem:[%s7678_s1] sm:$0xff]   ;;  %v5329_v3 = vld [vmem:[%s7678_s1 + $0x8] sm:$0xff]   ;;  %vm1932_vm0 = vcmask 523264  }
  0x19   :  { %1067 = vmatprep.subr.bf16.mxu0 %v6131_v1  ;;  %5326 = vset.pattern.permute.xlu0 %v6131_v1  ;;  %v5330_v4 = vld [vmem:[%s7678_s1 + $0x10] sm:$0xff]   ;;  %v5337_v5 = vld [vmem:[%s7678_s1 + $0x80] sm:$0xff]   ;;  %v5331_v6 = vld [vmem:[%s7678_s1 + $0x18] sm:$0xff]   ;;  %vm3377_vm1 = vcmask 261120   ;;  %vm63_vm3 = vcmask 0   ;;  %vm66_vm4 = vcmask 516096  }
  0x1a   :  { %5327 = vset.pattern.permute.xlu1 %v6131_v1  ;;  %1068 = vmatpush1.bf16.msra.mxu0 %v5328_v2  ;;  %v5339_v7 = vld [vmem:[%s7678_s1 + $0x88] sm:$0xff]   ;;  %v5341_v8 = vld [vmem:[%s7678_s1 + $0x90] sm:$0xff]   ;;  %v5332_v9 = vld [vmem:[%s7678_s1 + $0x20] sm:$0xff]   ;;  %vm6136_vm5 = vmmov 0   ;;  %vm3884_vm6 = vcmask 1040384   ;;  %s6139_s26 = smov [#allocation6]  }
  0x1b   :  { %1069 = vmatprep.subr.bf16.mxu0 %v6131_v1  ;;  %4842 = vmatprep.subr.bf16.mxu1 %v5337_v5  ;;  %v5343_v10 = vld [vmem:[%s7678_s1 + $0x98] sm:$0xff]   ;;  %v5333_v11 = vld [vmem:[%s7678_s1 + $0x28] sm:$0xff]   ;;  %v5345_v12 = vld [vmem:[%s7678_s1 + $0xa0] sm:$0xff]   ;;  %s4175_s27 = sshll.u32 %s6139_s26, 4  ;;  %s4176_s27 = int_to_ptr.vmem [resolvable:$true] %s4175_s27 }
  0x1c   :  { %4843 = vmatpush3.bf16.msra.mxu1 %v5337_v5  ;;  %v5334_v13 = vld [vmem:[%s7678_s1 + $0x30] sm:$0xff]   ;;  %v5335_v14 = vld [vmem:[%s7678_s1 + $0x38] sm:$0xff]   ;;  %v5347_v15 = vld [vmem:[%s7678_s1 + $0xa8] sm:$0xff]  }
  0x1d   :  { %4844 = vmatprep.subr.bf16.mxu1 %v5339_v7  ;;  %v5354_v16 = vld [vmem:[#allocation3 + $0x4] ss:$12 sps:$4 sm:$0xff]   ;;  %v5355_v17 = vld [vmem:[#allocation3 + $0x8] ss:$12 sps:$4 sm:$0xff]   ;;  %v5356_v23 = vld [vmem:[#allocation3 + $0x20] ss:$12 sps:$4 sm:$0xff]  }
  0x1e   :  { %1070 = vmatpush1.bf16.msra.mxu0 %v5329_v3  ;;  %1099 = vmatprep.mubr.bf16.mxu0 %v5354_v16  ;;  %v5349_v18 = vld [vmem:[%s7678_s1 + $0xb0] sm:$0xff]   ;;  %v5336_v19 = vld [vmem:[%s7678_s1 + $0x40] sm:$0xff]   ;;  %v5351_v20 = vld [vmem:[%s7678_s1 + $0xb8] sm:$0xff]  }
  0x1f   :  { %1071 = vmatprep.subr.bf16.mxu0 %v6131_v1  ;;  %4858 = vmatprep.mubr.bf16.mxu1 %v5355_v17  ;;  %v5338_v21 = vld [vmem:[%s7678_s1 + $0x48] sm:$0xff]   ;;  %v5340_v22 = vld [vmem:[%s7678_s1 + $0x50] sm:$0xff]   ;;  %v5342_v25 = vld [vmem:[%s7678_s1 + $0x58] sm:$0xff]  }
  0x20   :  { %4845 = vmatpush3.bf16.msra.mxu1 %v5339_v7  ;;  %v5363_v24 = vld [vmem:[#allocation3 + $0x38] ss:$12 sps:$4 sm:$0xff]   ;;  %v5364_v27 = vld [vmem:[#allocation3 + $0x50] ss:$12 sps:$4 sm:$0xff]   ;;  %v5371_v28 = vld [vmem:[#allocation3 + $0x68] ss:$12 sps:$4 sm:$0xff]  }
  0x21   :  { %4846 = vmatprep.subr.bf16.mxu1 %v5341_v8  ;;  %v5344_v26 = vld [vmem:[%s7678_s1 + $0x60] sm:$0xff]   ;;  %v5346_v29 = vld [vmem:[%s7678_s1 + $0x68] sm:$0xff]   ;;  %v5348_v30 = vld [vmem:[%s7678_s1 + $0x70] sm:$0xff]  }
  0x22   :  { %1072 = vmatpush1.bf16.msra.mxu0 %v5330_v4  ;;  %v5372_v31 = vld [vmem:[#allocation3 + $0x80] ss:$12 sps:$4 sm:$0xff]   ;;  %v5379_v32 = vld [vmem:[#allocation3 + $0x98] ss:$12 sps:$4 sm:$0xff]   ;;  %v5357_v35 = vld [vmem:[#allocation3 + $0x1c] ss:$12 sps:$4 sm:$0xff]  }
  0x23   :  { %1073 = vmatprep.subr.bf16.mxu0 %v6131_v1  ;;  %v5350_v33 = vld [vmem:[%s7678_s1 + $0x78] sm:$0xff]   ;;  %v5352_v34 = vld [vmem:[#allocation3] ss:$12 sps:$4 sm:$0xff]   ;;  %v5368_v47 = vld [vmem:[#allocation3 + $0x64] ss:$12 sps:$4 sm:$0xff]  }
  0x24   :  { %4847 = vmatpush3.bf16.msra.mxu1 %v5341_v8  ;;  %v5380_v36 = vld [vmem:[#allocation3 + $0xb0] ss:$12 sps:$4 sm:$0xff]   ;;  %v5387_v37 = vld [vmem:[#allocation3 + $0xc8] ss:$12 sps:$4 sm:$0xff]   ;;  %v5359_v38 = vld [vmem:[#allocation3 + $0x18] ss:$12 sps:$4 sm:$0xff]  }
  0x25   :  { %4848 = vmatprep.subr.bf16.mxu1 %v5343_v10  ;;  %v5360_v39 = vld [vmem:[#allocation3 + $0x34] ss:$12 sps:$4 sm:$0xff]   ;;  %v5395_v41 = vld [vmem:[#allocation3 + $0xf8] ss:$12 sps:$4 sm:$0xff]   ;;  %v5362_v42 = vld [vmem:[#allocation3 + $0x30] ss:$12 sps:$4 sm:$0xff]  }
  0x26   :  { %1074 = vmatpush1.bf16.msra.mxu0 %v5331_v6  ;;  %v5388_v40 = vld [vmem:[#allocation3 + $0xe0] ss:$12 sps:$4 sm:$0xff]   ;;  %v5396_v44 = vld [vmem:[#allocation3 + $0x110] ss:$12 sps:$4 sm:$0xff]   ;;  %v5403_v45 = vld [vmem:[#allocation3 + $0x128] ss:$12 sps:$4 sm:$0xff]  }
  0x27   :  { %1075 = vmatprep.subr.bf16.mxu0 %v6131_v1  ;;  %v5365_v43 = vld [vmem:[#allocation3 + $0x4c] ss:$12 sps:$4 sm:$0xff]   ;;  %v5367_v46 = vld [vmem:[#allocation3 + $0x48] ss:$12 sps:$4 sm:$0xff]   ;;  %v5412_v52 = vld [vmem:[#allocation3 + $0x170] ss:$12 sps:$4 sm:$0xff]  }
  0x28   :  { %4849 = vmatpush3.bf16.msra.mxu1 %v5343_v10  ;;  %v5404_v48 = vld [vmem:[#allocation3 + $0x140] ss:$12 sps:$4 sm:$0xff]   ;;  %v5411_v49 = vld [vmem:[#allocation3 + $0x158] ss:$12 sps:$4 sm:$0xff]   ;;  %v5373_v51 = vld [vmem:[#allocation3 + $0x7c] ss:$12 sps:$4 sm:$0xff]  }
  0x29   :  { %4850 = vmatprep.subr.bf16.mxu1 %v5345_v12  ;;  %v5370_v50 = vld [vmem:[#allocation3 + $0x60] ss:$12 sps:$4 sm:$0xff]   ;;  %v5419_v53 = vld [vmem:[#allocation3 + $0x188] ss:$12 sps:$4 sm:$0xff]   ;;  %v5375_v54 = vld [vmem:[#allocation3 + $0x78] ss:$12 sps:$4 sm:$0xff]  }
  0x2a   :  { %1076 = vmatpush1.bf16.msra.mxu0 %v5332_v9  ;;  %v5376_v55 = vld [vmem:[#allocation3 + $0x94] ss:$12 sps:$4 sm:$0xff]   ;;  %v5424_v57 = vld [vmem:[#allocation3 + $0x1b8] ss:$12 sps:$4 sm:$0xff]   ;;  %v5378_v58 = vld [vmem:[#allocation3 + $0x90] ss:$12 sps:$4 sm:$0xff]  }
  0x2b   :  { %1077 = vmatprep.subr.bf16.mxu0 %v6131_v1  ;;  %v5420_v56 = vld [vmem:[#allocation3 + $0x1a0] ss:$12 sps:$4 sm:$0xff]   ;;  %v5425_v60 = vld [vmem:[#allocation3 + $0x1d0] ss:$12 sps:$4 sm:$0xff]   ;;  %v5429_v61 = vld [vmem:[#allocation3 + $0x1e8] ss:$12 sps:$4 sm:$0xff]  }
  0x2c   :  { %4851 = vmatpush3.bf16.msra.mxu1 %v5345_v12  ;;  %v5381_v59 = vld [vmem:[#allocation3 + $0xac] ss:$12 sps:$4 sm:$0xff]   ;;  %v5383_v62 = vld [vmem:[#allocation3 + $0xa8] ss:$12 sps:$4 sm:$0xff]   ;;  %v5384_v63 = vld [vmem:[#allocation3 + $0xc4] ss:$12 sps:$4 sm:$0xff]  }
  0x2d   :  { %4852 = vmatprep.subr.bf16.mxu1 %v5347_v15  ;;  %v5430_v0 = vld [vmem:[#allocation3 + $0x200] ss:$12 sps:$4 sm:$0xff]   ;;  %v5389_v3 = vld [vmem:[#allocation3 + $0xdc] ss:$12 sps:$4 sm:$0xff]   ;;  %v5391_v6 = vld [vmem:[#allocation3 + $0xd8] ss:$12 sps:$4 sm:$0xff]  }
  0x2e   :  { %1078 = vmatpush1.bf16.msra.mxu0 %v5333_v11  ;;  %v5386_v2 = vld [vmem:[#allocation3 + $0xc0] ss:$12 sps:$4 sm:$0xff]   ;;  %v5435_v4 = vld [vmem:[#allocation3 + $0x230] ss:$12 sps:$4 sm:$0xff]   ;;  %v5439_v5 = vld [vmem:[#allocation3 + $0x248] ss:$12 sps:$4 sm:$0xff]  }
  0x2f   :  { %1079 = vmatprep.subr.bf16.mxu0 %v6131_v1  ;;  %v5392_v7 = vld [vmem:[#allocation3 + $0xf4] ss:$12 sps:$4 sm:$0xff]   ;;  %v5444_v9 = vld [vmem:[#allocation3 + $0x278] ss:$12 sps:$4 sm:$0xff]   ;;  %v5394_v10 = vld [vmem:[#allocation3 + $0xf0] ss:$12 sps:$4 sm:$0xff]  }
  0x30   :  { %4853 = vmatpush3.bf16.msra.mxu1 %v5347_v15  ;;  %v5440_v8 = vld [vmem:[#allocation3 + $0x260] ss:$12 sps:$4 sm:$0xff]   ;;  %v5445_v12 = vld [vmem:[#allocation3 + $0x290] ss:$12 sps:$4 sm:$0xff]   ;;  %vm7108_vm2 = vmpackc.low %vm3377_vm1, %vm3377_vm1 }
  0x31   :  { %4854 = vmatprep.subr.bf16.mxu1 %v5349_v18  ;;  %v5397_v11 = vld [vmem:[#allocation3 + $0x10c] ss:$12 sps:$4 sm:$0xff]   ;;  %v5471_v15 = vld [vmem:[%s7680_s3] sm:$0xff]  }
  0x32   :  { %1080 = vmatpush1.bf16.msra.mxu0 %v5334_v13  ;;  %v5449_v13 = vld [vmem:[#allocation3 + $0x2a8] ss:$12 sps:$4 sm:$0xff]   ;;  %v5400_v16 = vld [vmem:[#allocation3 + $0x124] ss:$12 sps:$4 sm:$0xff]   ;;  %v5450_v17 = vld [vmem:[#allocation3 + $0x2c0] ss:$12 sps:$4 sm:$0xff]  }
  0x33   :  { %1081 = vmatprep.subr.bf16.mxu0 %v6131_v1 }
  0x34   :  { %4855 = vmatpush3.bf16.msra.mxu1 %v5349_v18  ;;  %v5454_v18 = vld [vmem:[#allocation3 + $0x2d8] ss:$12 sps:$4 sm:$0xff]  }
  0x35   :  { %4856 = vmatprep.subr.bf16.mxu1 %v5351_v20 }
  0x36   :  { %1082 = vmatpush1.bf16.msra.mxu0 %v5335_v14  ;;  %v5399_v14 = vld [vmem:[#allocation3 + $0x108] ss:$12 sps:$4 sm:$0xff]  }
  0x37   :  { %1083 = vmatprep.subr.bf16.mxu0 %v6131_v1 }
  0x38   :  { %4857 = vmatpush3.bf16.msra.mxu1 %v5351_v20  ;;  %v5402_v20 = vld [vmem:[#allocation3 + $0x120] ss:$12 sps:$4 sm:$0xff]  }
  0x39   :  { %4938 = vmatprep.subr.bf16.mxu1 %v5471_v15 }
  0x3a   :  { %1084 = vmatpush1.bf16.msra.mxu0 %v5336_v19  ;;  %v5475_v19 = vld [vmem:[%s7680_s3 + $0x8] sm:$0xff]  }
  0x3b   :  { %1085 = vmatprep.subr.bf16.mxu0 %v6131_v1  ;;  %4859 = vmatmul.mubr.bf16.vlgmr.msra.gmra.mrb[0].mxu1 %v5356_v23  ;;  %v5455_v23 = vld [vmem:[#allocation3 + $0x2f0] ss:$12 sps:$4 sm:$0xff]  }
  0x3c   :  { %4862 = vmatprep.mubr.bf16.mxu1 %v5363_v24  ;;  %4939 = vmatpush3.bf16.msra.mxu1 %v5471_v15  ;;  %v5459_v24 = vld [vmem:[#allocation3 + $0x308] ss:$12 sps:$4 sm:$0xff]   ;;  %v5479_v15 = vld [vmem:[#allocation3 + $0x2a4] ss:$12 sps:$4 sm:$0xff]  }
  0x3d   :  { %4940 = vmatprep.subr.bf16.mxu1 %v5475_v19 }
  0x3e   :  { %1086 = vmatpush1.bf16.msra.mxu0 %v5338_v21  ;;  %v5478_v21 = vld [vmem:[%s7680_s3 + $0x10] sm:$0xff]  }
  0x3f   :  { %1087 = vmatprep.subr.bf16.mxu0 %v6131_v1 }
  0x40   :  { %4941 = vmatpush3.bf16.msra.mxu1 %v5475_v19 }
  0x41   :  { %4942 = vmatprep.subr.bf16.mxu1 %v5478_v21 }
  0x42   :  { %1088 = vmatpush1.bf16.msra.mxu0 %v5340_v22  ;;  %v5405_v22 = vld [vmem:[#allocation3 + $0x13c] ss:$12 sps:$4 sm:$0xff]  }
  0x43   :  { %1089 = vmatprep.subr.bf16.mxu0 %v6131_v1  ;;  %4863 = vmatmul.mubr.bf16.gmra.mrb[4].mxu1 %v5364_v27  ;;  %v5408_v27 = vld [vmem:[#allocation3 + $0x154] ss:$12 sps:$4 sm:$0xff]  }
  0x44   :  { %4866 = vmatprep.mubr.bf16.mxu1 %v5371_v28  ;;  %4943 = vmatpush3.bf16.msra.mxu1 %v5478_v21  ;;  %v5460_v28 = vld [vmem:[#allocation3 + $0x320] ss:$12 sps:$4 sm:$0xff]  }
  0x46   :  { %1090 = vmatpush1.bf16.msra.mxu0 %v5342_v25  ;;  %v5482_v25 = vld [vmem:[%s7680_s3 + $0x18] sm:$0xff]  }
  0x47   :  { %1091 = vmatprep.subr.bf16.mxu0 %v6131_v1  ;;  %4944 = vmatprep.subr.bf16.mxu1 %v5482_v25 }
  0x48   :  { %4945 = vmatpush3.bf16.msra.mxu1 %v5482_v25 }
  0x4a   :  { %1092 = vmatpush1.bf16.msra.mxu0 %v5344_v26  ;;  %v5407_v26 = vld [vmem:[#allocation3 + $0x138] ss:$12 sps:$4 sm:$0xff]  }
  0x4b   :  { %1093 = vmatprep.subr.bf16.mxu0 %v6131_v1  ;;  %4867 = vmatmul.mubr.bf16.gmra.mrb[8].mxu1 %v5372_v31  ;;  %v5413_v31 = vld [vmem:[#allocation3 + $0x16c] ss:$12 sps:$4 sm:$0xff]  }
  0x4c   :  { %4870 = vmatprep.mubr.bf16.mxu1 %v5379_v32  ;;  %v5465_v32 = vld [vmem:[#allocation3 + $0x350] ss:$12 sps:$4 sm:$0xff]  }
  0x4e   :  { %1094 = vmatpush1.bf16.msra.mxu0 %v5346_v29  ;;  %v5464_v29 = vld [vmem:[#allocation3 + $0x338] ss:$12 sps:$4 sm:$0xff]  }
  0x4f   :  { %1095 = vmatprep.subr.bf16.mxu0 %v6131_v1 }
  0x52   :  { %1096 = vmatpush1.bf16.msra.mxu0 %v5348_v30  ;;  %v5410_v30 = vld [vmem:[#allocation3 + $0x150] ss:$12 sps:$4 sm:$0xff]  }
  0x53   :  { %1097 = vmatprep.subr.bf16.mxu0 %v6131_v1  ;;  %4871 = vmatmul.mubr.bf16.gmra.mrb[12].mxu1 %v5380_v36  ;;  %v5434_v1 = vld [vmem:[#allocation3 + $0x218] ss:$12 sps:$4 sm:$0xff]   ;;  %v5470_v36 = vld [vmem:[#allocation3 + $0x380] ss:$12 sps:$4 sm:$0xff]  }
  0x54   :  { %4874 = vmatprep.mubr.bf16.mxu1 %v5387_v37  ;;  %v5476_v37 = vld [vmem:[#allocation3 + $0x398] ss:$12 sps:$4 sm:$0xff]  }
  0x56   :  { %1098 = vmatpush1.bf16.msra.mxu0 %v5350_v33  ;;  %v5469_v33 = vld [vmem:[#allocation3 + $0x368] ss:$12 sps:$4 sm:$0xff]  }
  0x59   :  { %1100 = vmatmul.mubr.bf16.vlgmr.msra.gmra.mrb[0].mxu0 %v5352_v34  ;;  %v5415_v34 = vld [vmem:[#allocation3 + $0x168] ss:$12 sps:$4 sm:$0xff]  }
  0x5a   :  { %1107 = vmatprep.mubr.bf16.mxu0 %v5357_v35  ;;  %v5416_v35 = vld [vmem:[#allocation3 + $0x184] ss:$12 sps:$4 sm:$0xff]  }
  0x5b   :  { %4875 = vmatmul.mubr.bf16.gmra.mrb[16].mxu1 %v5388_v40  ;;  %v5477_v40 = vld [vmem:[#allocation3 + $0x3b0] ss:$12 sps:$4 sm:$0xff]  }
  0x5c   :  { %4878 = vmatprep.mubr.bf16.mxu1 %v5395_v41  ;;  %v5423_v41 = vld [vmem:[#allocation3 + $0x198] ss:$12 sps:$4 sm:$0xff]  }
  0x61   :  { %1108 = vmatmul.mubr.bf16.gmra.mrb[4].mxu0 %v5359_v38  ;;  %v5418_v38 = vld [vmem:[#allocation3 + $0x180] ss:$12 sps:$4 sm:$0xff]  }
  0x62   :  { %1115 = vmatprep.mubr.bf16.mxu0 %v5360_v39  ;;  %v5421_v39 = vld [vmem:[#allocation3 + $0x19c] ss:$12 sps:$4 sm:$0xff]  }
  0x63   :  { %4879 = vmatmul.mubr.bf16.gmra.mrb[20].mxu1 %v5396_v44  ;;  %v5431_v44 = vld [vmem:[#allocation3 + $0x1cc] ss:$12 sps:$4 sm:$0xff]  }
  0x64   :  { %4882 = vmatprep.mubr.bf16.mxu1 %v5403_v45  ;;  %v5433_v45 = vld [vmem:[#allocation3 + $0x1c8] ss:$12 sps:$4 sm:$0xff]  }
  0x69   :  { %1116 = vmatmul.mubr.bf16.gmra.mrb[8].mxu0 %v5362_v42  ;;  %v5426_v42 = vld [vmem:[#allocation3 + $0x1b4] ss:$12 sps:$4 sm:$0xff]  }
  0x6a   :  { %1123 = vmatprep.mubr.bf16.mxu0 %v5365_v43  ;;  %v5428_v43 = vld [vmem:[#allocation3 + $0x1b0] ss:$12 sps:$4 sm:$0xff]  }
  0x6b   :  { %4883 = vmatmul.mubr.bf16.gmra.mrb[24].mxu1 %v5404_v48  ;;  %v5441_v48 = vld [vmem:[#allocation3 + $0x1fc] ss:$12 sps:$4 sm:$0xff]  }
  0x6c   :  { %4886 = vmatprep.mubr.bf16.mxu1 %v5411_v49  ;;  %v5443_v49 = vld [vmem:[#allocation3 + $0x1f8] ss:$12 sps:$4 sm:$0xff]  }
  0x71   :  { %1124 = vmatmul.mubr.bf16.gmra.mrb[12].mxu0 %v5367_v46  ;;  %v5436_v46 = vld [vmem:[#allocation3 + $0x1e4] ss:$12 sps:$4 sm:$0xff]  }
  0x72   :  { %1131 = vmatprep.mubr.bf16.mxu0 %v5368_v47  ;;  %v5438_v47 = vld [vmem:[#allocation3 + $0x1e0] ss:$12 sps:$4 sm:$0xff]  }
  0x73   :  { %4887 = vmatmul.mubr.bf16.gmra.mrb[28].mxu1 %v5412_v52  ;;  %v5451_v52 = vld [vmem:[#allocation3 + $0x22c] ss:$12 sps:$4 sm:$0xff]  }
  0x74   :  { %4890 = vmatprep.mubr.bf16.mxu1 %v5419_v53  ;;  %v5453_v53 = vld [vmem:[#allocation3 + $0x228] ss:$12 sps:$4 sm:$0xff]  }
  0x79   :  { %1132 = vmatmul.mubr.bf16.gmra.mrb[16].mxu0 %v5370_v50  ;;  %v5446_v50 = vld [vmem:[#allocation3 + $0x214] ss:$12 sps:$4 sm:$0xff]  }
  0x7a   :  { %1139 = vmatprep.mubr.bf16.mxu0 %v5373_v51  ;;  %v5448_v51 = vld [vmem:[#allocation3 + $0x210] ss:$12 sps:$4 sm:$0xff]  }
  0x7b   :  { %4891 = vmatmul.mubr.bf16.gmra.mrb[32].mxu1 %v5420_v56  ;;  %v5461_v56 = vld [vmem:[#allocation3 + $0x25c] ss:$12 sps:$4 sm:$0xff]  }
  0x7c   :  { %4894 = vmatprep.mubr.bf16.mxu1 %v5424_v57 }
  0x81   :  { %1140 = vmatmul.mubr.bf16.gmra.mrb[20].mxu0 %v5375_v54  ;;  %v5456_v54 = vld [vmem:[#allocation3 + $0x244] ss:$12 sps:$4 sm:$0xff]  }
  0x82   :  { %1147 = vmatprep.mubr.bf16.mxu0 %v5376_v55  ;;  %v5458_v55 = vld [vmem:[#allocation3 + $0x240] ss:$12 sps:$4 sm:$0xff]  }
  0x83   :  { %4895 = vmatmul.mubr.bf16.gmra.mrb[36].mxu1 %v5425_v60 }
  0x84   :  { %4898 = vmatprep.mubr.bf16.mxu1 %v5429_v61  ;;  %v5463_v61 = vld [vmem:[#allocation3 + $0x258] ss:$12 sps:$4 sm:$0xff]  }
  0x89   :  { %1148 = vmatmul.mubr.bf16.gmra.mrb[24].mxu0 %v5378_v58 }
  0x8a   :  { %1155 = vmatprep.mubr.bf16.mxu0 %v5381_v59 }
  0x8b   :  { %4899 = vmatmul.mubr.bf16.gmra.mrb[40].mxu1 %v5430_v0 }
  0x8c   :  { %4902 = vmatprep.mubr.bf16.mxu1 %v5434_v1 }
  0x91   :  { %1156 = vmatmul.mubr.bf16.gmra.mrb[28].mxu0 %v5383_v62  ;;  %v5466_v62 = vld [vmem:[#allocation3 + $0x274] ss:$12 sps:$4 sm:$0xff]  }
  0x92   :  { %1163 = vmatprep.mubr.bf16.mxu0 %v5384_v63 }
  0x93   :  { %4903 = vmatmul.mubr.bf16.gmra.mrb[44].mxu1 %v5435_v4  ;;  %v5472_v4 = vld [vmem:[#allocation3 + $0x28c] ss:$12 sps:$4 sm:$0xff]  }
  0x94   :  { %4906 = vmatprep.mubr.bf16.mxu1 %v5439_v5 }
  0x99   :  { %1164 = vmatmul.mubr.bf16.gmra.mrb[32].mxu0 %v5386_v2 }
  0x9a   :  { %1171 = vmatprep.mubr.bf16.mxu0 %v5389_v3  ;;  %v5468_v3 = vld [vmem:[#allocation3 + $0x270] ss:$12 sps:$4 sm:$0xff]  }
  0x9b   :  { %4907 = vmatmul.mubr.bf16.gmra.mrb[48].mxu1 %v5440_v8 }
  0x9c   :  { %4910 = vmatprep.mubr.bf16.mxu1 %v5444_v9  ;;  %v6331_v9 = vld [vmem:[%s7679_s2] ss:$0 sm:$0xff] }
  0xa1   :  { %1172 = vmatmul.mubr.bf16.gmra.mrb[36].mxu0 %v5391_v6 }
  0xa2   :  { %1179 = vmatprep.mubr.bf16.mxu0 %v5392_v7 }
  0xa3   :  { %4911 = vmatmul.mubr.bf16.gmra.mrb[52].mxu1 %v5445_v12 }
  0xa4   :  { %4914 = vmatprep.mubr.bf16.mxu1 %v5449_v13  ;;  %v5474_v13 = vld [vmem:[#allocation3 + $0x288] ss:$12 sps:$4 sm:$0xff]  }
  0xa9   :  { %1180 = vmatmul.mubr.bf16.gmra.mrb[40].mxu0 %v5394_v10 }
  0xaa   :  { %1187 = vmatprep.mubr.bf16.mxu0 %v5397_v11 }
  0xab   :  { %4915 = vmatmul.mubr.bf16.gmra.mrb[56].mxu1 %v5450_v17 }
  0xac   :  { %4918 = vmatprep.mubr.bf16.mxu1 %v5454_v18 }
  0xb1   :  { %1188 = vmatmul.mubr.bf16.gmra.mrb[44].mxu0 %v5399_v14 }
  0xb2   :  { %1195 = vmatprep.mubr.bf16.mxu0 %v5400_v16 }
  0xb3   :  { %4919 = vmatmul.mubr.bf16.gmra.mrb[60].mxu1 %v5455_v23 }
  0xb4   :  { %4922 = vmatprep.mubr.bf16.mxu1 %v5459_v24 }
  0xb9   :  { %1196 = vmatmul.mubr.bf16.gmra.mrb[48].mxu0 %v5402_v20 }
  0xba   :  { %1203 = vmatprep.mubr.bf16.mxu0 %v5405_v22 }
  0xbb   :  { %4923 = vmatmul.mubr.bf16.gmra.mrb[64].mxu1 %v5460_v28 }
  0xbc   :  { %4926 = vmatprep.mubr.bf16.mxu1 %v5464_v29 }
  0xc1   :  { %1204 = vmatmul.mubr.bf16.gmra.mrb[52].mxu0 %v5407_v26 }
  0xc2   :  { %1211 = vmatprep.mubr.bf16.mxu0 %v5408_v27 }
  0xc3   :  { %4927 = vmatmul.mubr.bf16.gmra.mrb[68].mxu1 %v5465_v32  ;;  %v5483_v32 = vld [vmem:[#allocation3 + $0x2bc] ss:$12 sps:$4 sm:$0xff]  }
  0xc4   :  { %4930 = vmatprep.mubr.bf16.mxu1 %v5469_v33 }
  0xc9   :  { %1212 = vmatmul.mubr.bf16.gmra.mrb[56].mxu0 %v5410_v30  ;;  %v5481_v30 = vld [vmem:[#allocation3 + $0x2a0] ss:$12 sps:$4 sm:$0xff]  }
  0xca   :  { %1219 = vmatprep.mubr.bf16.mxu0 %v5413_v31 }
  0xcb   :  { %4931 = vmatmul.mubr.bf16.gmra.mrb[72].mxu1 %v5470_v36 }
  0xcc   :  { %4934 = vmatprep.mubr.bf16.mxu1 %v5476_v37 }
  0xd1   :  { %1220 = vmatmul.mubr.bf16.gmra.mrb[60].mxu0 %v5415_v34 }
  0xd2   :  { %1227 = vmatprep.mubr.bf16.mxu0 %v5416_v35 }
  0xd3   :  { %4935 = vmatmul.mubr.bf16.gmra.mrb[76].mxu1 %v5477_v40 }
  0xd9   :  { %1228 = vmatmul.mubr.bf16.gmra.mrb[64].mxu0 %v5418_v38 }
  0xda   :  { %1235 = vmatprep.mubr.bf16.mxu0 %v5421_v39 }
  0xe1   :  { %1236 = vmatmul.mubr.bf16.gmra.mrb[68].mxu0 %v5423_v41 }
  0xe2   :  { %1243 = vmatprep.mubr.bf16.mxu0 %v5426_v42 }
  0xe9   :  { %1244 = vmatmul.mubr.bf16.gmra.mrb[72].mxu0 %v5428_v43 }
  0xea   :  { %1251 = vmatprep.mubr.bf16.mxu0 %v5431_v44 }
  0xf1   :  { %1252 = vmatmul.mubr.bf16.gmra.mrb[76].mxu0 %v5433_v45 }
  0xf2   :  { %1259 = vmatprep.mubr.bf16.mxu0 %v5436_v46 }
  0xf9   :  { %1260 = vmatmul.mubr.bf16.gmra.mrb[80].mxu0 %v5438_v47  ;;  %v5485_v47 = vld [vmem:[#allocation3 + $0x2b8] ss:$12 sps:$4 sm:$0xff]  }
  0xfa   :  { %1267 = vmatprep.mubr.bf16.mxu0 %v5441_v48 }
 0x101   :  { %1268 = vmatmul.mubr.bf16.gmra.mrb[84].mxu0 %v5443_v49  ;;  %v5486_v49 = vld [vmem:[#allocation3 + $0x2d4] ss:$12 sps:$4 sm:$0xff]  }
 0x102   :  { %1275 = vmatprep.mubr.bf16.mxu0 %v5446_v50 }
 0x109   :  { %1276 = vmatmul.mubr.bf16.gmra.mrb[88].mxu0 %v5448_v51 }
 0x10a   :  { %1283 = vmatprep.mubr.bf16.mxu0 %v5451_v52 }
 0x10e   :  { %v4860_v57 = vpop.f32.mrb[0].mxu1 }
 0x10f   :  { %v1454_v58 = vpop.f32.mrb[1].mxu1 }
 0x110   :  { %v4861_v59 = vpop.f32.mrb[2].mxu1 }
 0x111   :  { %1284 = vmatmul.mubr.bf16.gmra.mrb[92].mxu0 %v5453_v53  ;;  %v1457_v60 = vpop.f32.mrb[3].mxu1 }
 0x112   :  { %1291 = vmatprep.mubr.bf16.mxu0 %v5456_v54 }
 0x116   :  { %v6314_v63 = vpop.f32.mrb[4].mxu1 }
 0x117   :  { %v1470_v0 = vpop.f32.mrb[5].mxu1 }
 0x118   :  { %v6316_v1 = vpop.f32.mrb[6].mxu1 }
 0x119   :  { %1292 = vmatmul.mubr.bf16.gmra.mrb[96].mxu0 %v5458_v55  ;;  %v6318_v2 = vpop.f32.mrb[7].mxu1 }
 0x11a   :  { %1299 = vmatprep.mubr.bf16.mxu0 %v5461_v56 }
 0x11e   :  { %v6320_v5 = vpop.f32.mrb[8].mxu1 }
 0x11f   :  { %v6322_v6 = vpop.f32.mrb[9].mxu1 }
 0x120   :  { %v6324_v7 = vpop.f32.mrb[10].mxu1 }
 0x121   :  { %1300 = vmatmul.mubr.bf16.gmra.mrb[100].mxu0 %v5463_v61  ;;  %v6326_v8 = vpop.f32.mrb[11].mxu1 }
 0x122   :  { %1307 = vmatprep.mubr.bf16.mxu0 %v5466_v62 }
 0x126   :  { %v6334_v16 = vpop.f32.mrb[12].mxu1 }
 0x127   :  { %v6337_v20 = vpop.f32.mrb[13].mxu1 }
 0x128   :  { %v6339_v21 = vpop.f32.mrb[14].mxu1 }
 0x129   :  { %1308 = vmatmul.mubr.bf16.gmra.mrb[104].mxu0 %v5468_v3  ;;  %v6341_v23 = vpop.f32.mrb[15].mxu1  ;;  %v5488_v3 = vld [vmem:[#allocation3 + $0x2d0] ss:$12 sps:$4 sm:$0xff]  }
 0x12a   :  { %1315 = vmatprep.mubr.bf16.mxu0 %v5472_v4 }
 0x12c   :  { %v1101_v10 = vpop.f32.mrb[0].mxu0 }
 0x12d   :  { %v1102_v11 = vadd.f32 %v6331_v9, %v1101_v10  ;;  %v1103_v12 = vpop.f32.mrb[1].mxu0  ;;  %v5489_v10 = vld [vmem:[#allocation3 + $0x2ec] ss:$12 sps:$4 sm:$0xff]  }
 0x12e   :  { %v1104_v14 = vpop.f32.mrb[2].mxu0  ;;  %v6346_v33 = vpop.f32.mrb[16].mxu1 }
 0x12f   :  { %v1105_v17 = vadd.f32 %v6331_v9, %v1104_v14  ;;  %v1455_v18 = vadd.f32 %v1454_v58, %v1102_v11  ;;  %v1106_v19 = vpop.f32.mrb[3].mxu0  ;;  %v6351_v37 = vpop.f32.mrb[17].mxu1 }
 0x130   :  { %v6353_v38 = vpop.f32.mrb[18].mxu1 }
 0x131   :  { %v1458_v22 = vadd.f32 %v1457_v60, %v1105_v17  ;;  %1316 = vmatmul.mubr.bf16.gmra.mrb[108].mxu0 %v5474_v13  ;;  %v1773_v24 = vmax.f32 %v1455_v18, 0.0  ;;  %v6355_v40 = vpop.f32.mrb[19].mxu1 }
 0x132   :  { %1323 = vmatprep.mubr.bf16.mxu0 %v5479_v15 }
 0x133   :  { %v1774_v25 = vmax.f32 %v1458_v22, 0.0 }
 0x134   :  { %v1109_v26 = vpop.f32.mrb[4].mxu0 }
 0x135   :  { %v6343_v27 = vpack.c.bf16 %v1774_v25, %v1773_v24  ;;  %v1110_v28 = vadd.f32 %v6331_v9, %v1109_v26  ;;  %v1111_v29 = vpop.f32.mrb[5].mxu0 }
 0x136   :  { %v1112_v31 = vpop.f32.mrb[6].mxu0  ;;  %v6360_v50 = vpop.f32.mrb[20].mxu1 }
 0x137   :  { %7736 = vst [vmem:[#allocation16_spill] sm:$0xff] %v6343_v27  ;;  %v1463_v34 = vadd.f32 %v4860_v57, %v1110_v28  ;;  %v1113_v35 = vadd.f32 %v6331_v9, %v1112_v31  ;;  %v1114_v36 = vpop.f32.mrb[7].mxu0  ;;  %4946 = vmatprep.mubr.msk.bf16.mxu1 %vm1932_vm0, %v6343_v27  ;;  %v6365_v54 = vpop.f32.mrb[21].mxu1  ;;  %v5491_v28 = vld [vmem:[#allocation3 + $0x2e8] ss:$12 sps:$4 sm:$0xff]  }
 0x138   :  { %v6367_v55 = vpop.f32.mrb[22].mxu1 }
 0x139   :  { %v1466_v39 = vadd.f32 %v4861_v59, %v1113_v35  ;;  %1324 = vmatmul.mubr.bf16.gmra.mrb[112].mxu0 %v5481_v30  ;;  %v1775_v41 = vmax.f32 %v1463_v34, 0.0  ;;  %v6370_v57 = vpop.f32.mrb[23].mxu1  ;;  %v5492_v30 = vld [vmem:[#allocation3 + $0x304] ss:$12 sps:$4 sm:$0xff]  }
 0x13a   :  { %1331 = vmatprep.mubr.bf16.mxu0 %v5483_v32 }
 0x13b   :  { %v1776_v42 = vmax.f32 %v1466_v39, 0.0 }
 0x13c   :  { %v1117_v43 = vpop.f32.mrb[8].mxu0 }
 0x13d   :  { %v6357_v44 = vpack.c.bf16 %v1776_v42, %v1775_v41  ;;  %v1118_v45 = vadd.f32 %v6331_v9, %v1117_v43  ;;  %v1119_v46 = vpop.f32.mrb[9].mxu0 }
 0x13e   :  { %v1120_v48 = vpop.f32.mrb[10].mxu0  ;;  %v6375_v11 = vpop.f32.mrb[24].mxu1 }
 0x13f   :  { %7737 = vst [vmem:[#allocation17_spill] sm:$0xff] %v6357_v44  ;;  %v1121_v51 = vadd.f32 %v6331_v9, %v1120_v48  ;;  %v1471_v52 = vadd.f32 %v1470_v0, %v1118_v45  ;;  %v1122_v53 = vpop.f32.mrb[11].mxu0  ;;  %4947 = vmatmul.mubr.msk.bf16.vlgmr.msra.gmra.mrb[80].mxu1 %vm1932_vm0, %v6357_v44  ;;  %v6381_v14 = vpop.f32.mrb[25].mxu1  ;;  %v5494_v48 = vld [vmem:[#allocation3 + $0x300] ss:$12 sps:$4 sm:$0xff]  }
 0x140   :  { %v6383_v15 = vpop.f32.mrb[26].mxu1 }
 0x141   :  { %v1474_v56 = vadd.f32 %v6318_v2, %v1121_v51  ;;  %1332 = vmatmul.mubr.bf16.gmra.mrb[116].mxu0 %v5485_v47  ;;  %v1777_v58 = vmax.f32 %v1471_v52, 0.0  ;;  %v6386_v18 = vpop.f32.mrb[27].mxu1  ;;  %v5495_v51 = vld [vmem:[#allocation3 + $0x31c] ss:$12 sps:$4 sm:$0xff]  }
 0x142   :  { %1339 = vmatprep.mubr.bf16.mxu0 %v5486_v49 }
 0x143   :  { %v1778_v59 = vmax.f32 %v1474_v56, 0.0 }
 0x144   :  { %v1125_v60 = vpop.f32.mrb[12].mxu0 }
 0x145   :  { %v6372_v61 = vpack.c.bf16 %v1778_v59, %v1777_v58  ;;  %v1126_v62 = vadd.f32 %v6331_v9, %v1125_v60  ;;  %v1127_v0 = vpop.f32.mrb[13].mxu0 }
 0x146   :  { %v1128_v4 = vpop.f32.mrb[14].mxu0  ;;  %v6391_v31 = vpop.f32.mrb[28].mxu1 }
 0x147   :  { %7738 = vst [vmem:[#allocation18_spill] sm:$0xff] %v6372_v61  ;;  %v1479_v12 = vadd.f32 %v6314_v63, %v1126_v62  ;;  %v1129_v2 = vadd.f32 %v6331_v9, %v1128_v4  ;;  %v1130_v13 = vpop.f32.mrb[15].mxu0  ;;  %4950 = vmatprep.mubr.msk.bf16.mxu1 %vm1932_vm0, %v6372_v61  ;;  %v6397_v35 = vpop.f32.mrb[29].mxu1 }
 0x148   :  { %v6399_v36 = vpop.f32.mrb[30].mxu1 }
 0x149   :  { %v1482_v17 = vadd.f32 %v6316_v1, %v1129_v2  ;;  %1340 = vmatmul.mubr.bf16.gmra.mrb[120].mxu0 %v5488_v3  ;;  %v1779_v19 = vmax.f32 %v1479_v12, 0.0  ;;  %v6402_v41 = vpop.f32.mrb[31].mxu1  ;;  %v5497_v2 = vld [vmem:[#allocation3 + $0x318] ss:$12 sps:$4 sm:$0xff]  }
 0x14a   :  { %1347 = vmatprep.mubr.bf16.mxu0 %v5489_v10 }
 0x14b   :  { %v1780_v22 = vmax.f32 %v1482_v17, 0.0  ;;  %v5498_v17 = vld [vmem:[#allocation3 + $0x334] ss:$12 sps:$4 sm:$0xff]  }
 0x14c   :  { %v1133_v24 = vpop.f32.mrb[16].mxu0 }
 0x14d   :  { %v6388_v63 = vpack.c.bf16 %v1780_v22, %v1779_v19  ;;  %v1134_v25 = vadd.f32 %v6331_v9, %v1133_v24  ;;  %v1135_v26 = vpop.f32.mrb[17].mxu0 }
 0x14e   :  { %v1136_v29 = vpop.f32.mrb[18].mxu0  ;;  %v6407_v52 = vpop.f32.mrb[32].mxu1 }
 0x14f   :  { %7739 = vst [vmem:[#allocation19_spill] sm:$0xff] %v6388_v63  ;;  %v1137_v32 = vadd.f32 %v6331_v9, %v1136_v29  ;;  %v1487_v1 = vadd.f32 %v6322_v6, %v1134_v25  ;;  %v1138_v34 = vpop.f32.mrb[19].mxu0  ;;  %4951 = vmatmul.mubr.msk.bf16.gmra.mrb[84].mxu1 %vm1932_vm0, %v6388_v63  ;;  %v6413_v58 = vpop.f32.mrb[33].mxu1 }
 0x150   :  { %v6415_v59 = vpop.f32.mrb[34].mxu1 }
 0x151   :  { %v1490_v39 = vadd.f32 %v6326_v8, %v1137_v32  ;;  %1348 = vmatmul.mubr.bf16.gmra.mrb[124].mxu0 %v5491_v28  ;;  %v1781_v42 = vmax.f32 %v1487_v1, 0.0  ;;  %v6418_v62 = vpop.f32.mrb[35].mxu1 }
 0x152   :  { %1355 = vmatprep.mubr.bf16.mxu0 %v5492_v30 }
 0x153   :  { %v1782_v43 = vmax.f32 %v1490_v39, 0.0 }
 0x154   :  { %v1141_v45 = vpop.f32.mrb[20].mxu0 }
 0x155   :  { %v6404_v46 = vpack.c.bf16 %v1782_v43, %v1781_v42  ;;  %v1142_v6 = vadd.f32 %v6331_v9, %v1141_v45  ;;  %v1143_v47 = vpop.f32.mrb[21].mxu0  ;;  %v5500_v42 = vld [vmem:[#allocation3 + $0x330] ss:$12 sps:$4 sm:$0xff]   ;;  %v5501_v45 = vld [vmem:[#allocation3 + $0x34c] ss:$12 sps:$4 sm:$0xff]  }
 0x156   :  { %v1144_v49 = vpop.f32.mrb[22].mxu0  ;;  %v6423_v19 = vpop.f32.mrb[36].mxu1 }
 0x157   :  { %7740 = vst [vmem:[#allocation20_spill] sm:$0xff] %v6404_v46  ;;  %v1495_v53 = vadd.f32 %v6320_v5, %v1142_v6  ;;  %v1145_v8 = vadd.f32 %v6331_v9, %v1144_v49  ;;  %v1146_v56 = vpop.f32.mrb[23].mxu0  ;;  %4954 = vmatprep.mubr.msk.bf16.mxu1 %vm1932_vm0, %v6404_v46  ;;  %v6429_v25 = vpop.f32.mrb[37].mxu1 }
 0x158   :  { %v6431_v26 = vpop.f32.mrb[38].mxu1 }
 0x159   :  { %v1498_v60 = vadd.f32 %v6324_v7, %v1145_v8  ;;  %1356 = vmatmul.mubr.bf16.gmra.mrb[128].mxu0 %v5494_v48  ;;  %v1783_v0 = vmax.f32 %v1495_v53, 0.0  ;;  %v6434_v29 = vpop.f32.mrb[39].mxu1 }
 0x15a   :  { %1363 = vmatprep.mubr.bf16.mxu0 %v5495_v51 }
 0x15b   :  { %v1784_v3 = vmax.f32 %v1498_v60, 0.0 }
 0x15c   :  { %v1149_v4 = vpop.f32.mrb[24].mxu0 }
 0x15d   :  { %v6420_v5 = vpack.c.bf16 %v1784_v3, %v1783_v0  ;;  %v1150_v10 = vadd.f32 %v6331_v9, %v1149_v4  ;;  %v1151_v12 = vpop.f32.mrb[25].mxu0 }
 0x15e   :  { %v1152_v13 = vpop.f32.mrb[26].mxu0  ;;  %v6439_v6 = vpop.f32.mrb[40].mxu1 }
 0x15f   :  { %7741 = vst [vmem:[#allocation21_spill] sm:$0xff] %v6420_v5  ;;  %v1153_v22 = vadd.f32 %v6331_v9, %v1152_v13  ;;  %v1503_v7 = vadd.f32 %v6337_v20, %v1150_v10  ;;  %v1154_v24 = vpop.f32.mrb[27].mxu0  ;;  %4955 = vmatmul.mubr.msk.bf16.gmra.mrb[88].mxu1 %vm1932_vm0, %v6420_v5  ;;  %v6445_v49 = vpop.f32.mrb[41].mxu1  ;;  %v5503_v10 = vld [vmem:[#allocation3 + $0x348] ss:$12 sps:$4 sm:$0xff]  }
 0x160   :  { %v6447_v51 = vpop.f32.mrb[42].mxu1 }
 0x161   :  { %v1506_v28 = vadd.f32 %v6341_v23, %v1153_v22  ;;  %1364 = vmatmul.mubr.bf16.gmra.mrb[132].mxu0 %v5497_v2  ;;  %v1785_v30 = vmax.f32 %v1503_v7, 0.0  ;;  %v6450_v8 = vpop.f32.mrb[43].mxu1  ;;  %v5504_v2 = vld [vmem:[#allocation3 + $0x364] ss:$12 sps:$4 sm:$0xff]  }
 0x162   :  { %1371 = vmatprep.mubr.bf16.mxu0 %v5498_v17 }
 0x163   :  { %v1786_v32 = vmax.f32 %v1506_v28, 0.0 }
 0x164   :  { %v1157_v1 = vpop.f32.mrb[28].mxu0 }
 0x165   :  { %v6436_v34 = vpack.c.bf16 %v1786_v32, %v1785_v30  ;;  %v1158_v20 = vadd.f32 %v6331_v9, %v1157_v1  ;;  %v1159_v39 = vpop.f32.mrb[29].mxu0 }
 0x166   :  { %v1160_v43 = vpop.f32.mrb[30].mxu0  ;;  %v6455_v13 = vpop.f32.mrb[44].mxu1 }
 0x167   :  { %7742 = vst [vmem:[#allocation22_spill] sm:$0xff] %v6436_v34  ;;  %v1511_v47 = vadd.f32 %v6334_v16, %v1158_v20  ;;  %v1161_v23 = vadd.f32 %v6331_v9, %v1160_v43  ;;  %v1162_v48 = vpop.f32.mrb[31].mxu0  ;;  %4958 = vmatprep.mubr.msk.bf16.mxu1 %vm1932_vm0, %v6436_v34  ;;  %v6461_v7 = vpop.f32.mrb[45].mxu1  ;;  %v5506_v43 = vld [vmem:[#allocation3 + $0x360] ss:$12 sps:$4 sm:$0xff]  }
 0x168   :  { %v6463_v24 = vpop.f32.mrb[46].mxu1 }
 0x169   :  { %v1514_v53 = vadd.f32 %v6339_v21, %v1161_v23  ;;  %1372 = vmatmul.mubr.bf16.gmra.mrb[136].mxu0 %v5500_v42  ;;  %v1787_v56 = vmax.f32 %v1511_v47, 0.0  ;;  %v6466_v30 = vpop.f32.mrb[47].mxu1  ;;  %v5507_v47 = vld [vmem:[#allocation3 + $0x37c] ss:$12 sps:$4 sm:$0xff]  }
 0x16a   :  { %1379 = vmatprep.mubr.bf16.mxu0 %v5501_v45 }
 0x16b   :  { %v1788_v60 = vmax.f32 %v1514_v53, 0.0 }
 0x16c   :  { %v1165_v0 = vpop.f32.mrb[32].mxu0 }
 0x16d   :  { %v6452_v16 = vpack.c.bf16 %v1788_v60, %v1787_v56  ;;  %v1166_v3 = vadd.f32 %v6331_v9, %v1165_v0  ;;  %v1167_v4 = vpop.f32.mrb[33].mxu0 }
 0x16e   :  { %v1168_v12 = vpop.f32.mrb[34].mxu0  ;;  %v6471_v23 = vpop.f32.mrb[48].mxu1 }
 0x16f   :  { %7743 = vst [vmem:[#allocation23_spill] sm:$0xff] %v6452_v16  ;;  %v1169_v17 = vadd.f32 %v6331_v9, %v1168_v12  ;;  %v1519_v21 = vadd.f32 %v6351_v37, %v1166_v3  ;;  %v1170_v22 = vpop.f32.mrb[35].mxu0  ;;  %4959 = vmatmul.mubr.msk.bf16.gmra.mrb[92].mxu1 %vm1932_vm0, %v6452_v16  ;;  %v6477_v56 = vpop.f32.mrb[49].mxu1 }
 0x170   :  { %v6479_v60 = vpop.f32.mrb[50].mxu1 }
 0x171   :  { %v1522_v28 = vadd.f32 %v6355_v40, %v1169_v17  ;;  %1380 = vmatmul.mubr.bf16.gmra.mrb[140].mxu0 %v5503_v10  ;;  %v1789_v32 = vmax.f32 %v1519_v21, 0.0  ;;  %v6482_v3 = vpop.f32.mrb[51].mxu1  ;;  %v5509_v21 = vld [vmem:[#allocation3 + $0x378] ss:$12 sps:$4 sm:$0xff]  }
 0x172   :  { %1387 = vmatprep.mubr.bf16.mxu0 %v5504_v2 }
 0x173   :  { %v1790_v1 = vmax.f32 %v1522_v28, 0.0  ;;  %v5510_v28 = vld [vmem:[#allocation3 + $0x394] ss:$12 sps:$4 sm:$0xff]  }
 0x174   :  { %v1173_v20 = vpop.f32.mrb[36].mxu0 }
 0x175   :  { %v6468_v39 = vpack.c.bf16 %v1790_v1, %v1789_v32  ;;  %v1174_v37 = vadd.f32 %v6331_v9, %v1173_v20  ;;  %v1175_v42 = vpop.f32.mrb[37].mxu0 }
 0x176   :  { %v1176_v45 = vpop.f32.mrb[38].mxu0  ;;  %v6487_v32 = vpop.f32.mrb[52].mxu1 }
 0x177   :  { %7744 = vst [vmem:[#allocation24_spill] sm:$0xff] %v6468_v39  ;;  %v1527_v48 = vadd.f32 %v6346_v33, %v1174_v37  ;;  %v1177_v40 = vadd.f32 %v6331_v9, %v1176_v45  ;;  %v1178_v53 = vpop.f32.mrb[39].mxu0  ;;  %4962 = vmatprep.mubr.msk.bf16.mxu1 %vm1932_vm0, %v6468_v39  ;;  %v6493_v37 = vpop.f32.mrb[53].mxu1 }
 0x178   :  { %v6495_v42 = vpop.f32.mrb[54].mxu1 }
 0x179   :  { %v1530_v0 = vadd.f32 %v6353_v38, %v1177_v40  ;;  %1388 = vmatmul.mubr.bf16.gmra.mrb[144].mxu0 %v5506_v43  ;;  %v1791_v4 = vmax.f32 %v1527_v48, 0.0  ;;  %v6498_v45 = vpop.f32.mrb[55].mxu1 }
 0x17a   :  { %1395 = vmatprep.mubr.bf16.mxu0 %v5507_v47 }
 0x17b   :  { %v1792_v10 = vmax.f32 %v1530_v0, 0.0 }
 0x17c   :  { %v1181_v12 = vpop.f32.mrb[40].mxu0 }
 0x17d   :  { %v6484_v33 = vpack.c.bf16 %v1792_v10, %v1791_v4  ;;  %v1182_v2 = vadd.f32 %v6331_v9, %v1181_v12  ;;  %v1183_v17 = vpop.f32.mrb[41].mxu0  ;;  %v5512_v4 = vld [vmem:[#allocation3 + $0x390] ss:$12 sps:$4 sm:$0xff]   ;;  %v5513_v12 = vld [vmem:[#allocation3 + $0x3ac] ss:$12 sps:$4 sm:$0xff]  }
 0x17e   :  { %v1184_v22 = vpop.f32.mrb[42].mxu0 }
 0x17f   :  { %7745 = vst [vmem:[#allocation25_spill] sm:$0xff] %v6484_v33  ;;  %v1185_v1 = vadd.f32 %v6331_v9, %v1184_v22  ;;  %v1535_v38 = vadd.f32 %v6365_v54, %v1182_v2  ;;  %v1186_v20 = vpop.f32.mrb[43].mxu0  ;;  %4963 = vmatmul.mubr.msk.bf16.gmra.mrb[96].mxu1 %vm1932_vm0, %v6484_v33  ;;  %v6503_v2 = vpop.f32.mrb[56].mxu1 }
 0x180   :  { %v6509_v22 = vpop.f32.mrb[57].mxu1 }
 0x181   :  { %v1538_v43 = vadd.f32 %v6370_v57, %v1185_v1  ;;  %1396 = vmatmul.mubr.bf16.gmra.mrb[148].mxu0 %v5509_v21  ;;  %v1793_v47 = vmax.f32 %v1535_v38, 0.0 }
 0x182   :  { %1403 = vmatprep.mubr.bf16.mxu0 %v5510_v28  ;;  %v6511_v28 = vpop.f32.mrb[58].mxu1 }
 0x183   :  { %v1794_v48 = vmax.f32 %v1538_v43, 0.0  ;;  %v6514_v38 = vpop.f32.mrb[59].mxu1 }
 0x184   :  { %v1189_v40 = vpop.f32.mrb[44].mxu0 }
 0x185   :  { %v6500_v53 = vpack.c.bf16 %v1794_v48, %v1793_v47  ;;  %v1190_v54 = vadd.f32 %v6331_v9, %v1189_v40  ;;  %v1191_v0 = vpop.f32.mrb[45].mxu0 }
 0x186   :  { %v1192_v10 = vpop.f32.mrb[46].mxu0 }
 0x187   :  { %7746 = vst [vmem:[#allocation26_spill] sm:$0xff] %v6500_v53  ;;  %v1543_v17 = vadd.f32 %v6360_v50, %v1190_v54  ;;  %v1193_v57 = vadd.f32 %v6331_v9, %v1192_v10  ;;  %v1194_v21 = vpop.f32.mrb[47].mxu0  ;;  %4966 = vmatprep.mubr.msk.bf16.mxu1 %vm1932_vm0, %v6500_v53  ;;  %v5515_v54 = vld [vmem:[#allocation3 + $0x3a8] ss:$12 sps:$4 sm:$0xff]   ;;  %v6519_v10 = vpop.f32.mrb[60].mxu1 }
 0x189   :  { %v1546_v1 = vadd.f32 %v6367_v55, %v1193_v57  ;;  %1404 = vmatmul.mubr.bf16.gmra.mrb[152].mxu0 %v5512_v4  ;;  %v1795_v20 = vmax.f32 %v1543_v17, 0.0 }
 0x18a   :  { %1411 = vmatprep.mubr.bf16.mxu0 %v5513_v12  ;;  %v6525_v12 = vpop.f32.mrb[61].mxu1 }
 0x18b   :  { %v1796_v43 = vmax.f32 %v1546_v1, 0.0  ;;  %v6527_v17 = vpop.f32.mrb[62].mxu1 }
 0x18c   :  { %v1197_v47 = vpop.f32.mrb[48].mxu0  ;;  %v6530_v1 = vpop.f32.mrb[63].mxu1 }
 0x18d   :  { %v6516_v50 = vpack.c.bf16 %v1796_v43, %v1795_v20  ;;  %v1198_v48 = vadd.f32 %v6331_v9, %v1197_v47  ;;  %v1199_v40 = vpop.f32.mrb[49].mxu0 }
 0x18e   :  { %v1200_v0 = vpop.f32.mrb[50].mxu0 }
 0x18f   :  { %7747 = vst [vmem:[#allocation27_spill] sm:$0xff] %v6516_v50  ;;  %v1201_v21 = vadd.f32 %v6331_v9, %v1200_v0  ;;  %v1551_v55 = vadd.f32 %v6381_v14, %v1198_v48  ;;  %v1202_v4 = vpop.f32.mrb[51].mxu0  ;;  %4967 = vmatmul.mubr.msk.bf16.gmra.mrb[100].mxu1 %vm1932_vm0, %v6516_v50 }
 0x190   :  { %v6535_v4 = vpop.f32.mrb[64].mxu1 }
 0x191   :  { %v1554_v57 = vadd.f32 %v6386_v18, %v1201_v21  ;;  %1412 = vmatmul.mubr.bf16.gmra.mrb[156].mxu0 %v5515_v54  ;;  %v1797_v20 = vmax.f32 %v1551_v55, 0.0  ;;  %v6541_v18 = vpop.f32.mrb[65].mxu1 }
 0x192   :  { %v6543_v54 = vpop.f32.mrb[66].mxu1 }
 0x193   :  { %v1798_v43 = vmax.f32 %v1554_v57, 0.0  ;;  %v6546_v55 = vpop.f32.mrb[67].mxu1 }
 0x194   :  { %v1205_v47 = vpop.f32.mrb[52].mxu0 }
 0x195   :  { %v6532_v40 = vpack.c.bf16 %v1798_v43, %v1797_v20  ;;  %v1206_v14 = vadd.f32 %v6331_v9, %v1205_v47  ;;  %v1207_v48 = vpop.f32.mrb[53].mxu0 }
 0x196   :  { %v1208_v0 = vpop.f32.mrb[54].mxu0  ;;  %v6551_v48 = vpop.f32.mrb[68].mxu1 }
 0x197   :  { %7748 = vst [vmem:[#allocation28_spill] sm:$0xff] %v6532_v40  ;;  %v1559_v16 = vadd.f32 %v6375_v11, %v1206_v14  ;;  %v1209_v34 = vadd.f32 %v6331_v9, %v1208_v0  ;;  %v1210_v5 = vpop.f32.mrb[55].mxu0  ;;  %4970 = vmatprep.mubr.msk.bf16.mxu1 %vm1932_vm0, %v6532_v40 }
 0x199   :  { %v1562_v21 = vadd.f32 %v6383_v15, %v1209_v34  ;;  %v1799_v57 = vmax.f32 %v1559_v16, 0.0  ;;  %v6557_v15 = vpop.f32.mrb[69].mxu1 }
 0x19a   :  { %v6559_v34 = vpop.f32.mrb[70].mxu1 }
 0x19b   :  { %v1800_v20 = vmax.f32 %v1562_v21, 0.0  ;;  %v6562_v21 = vpop.f32.mrb[71].mxu1 }
 0x19c   :  { %v1213_v43 = vpop.f32.mrb[56].mxu0 }
 0x19d   :  { %v6548_v47 = vpack.c.bf16 %v1800_v20, %v1799_v57  ;;  %v1214_v11 = vadd.f32 %v6331_v9, %v1213_v43  ;;  %v1215_v14 = vpop.f32.mrb[57].mxu0 }
 0x19e   :  { %v1216_v5 = vpop.f32.mrb[58].mxu0 }
 0x19f   :  { %7749 = vst [vmem:[#allocation29_spill] sm:$0xff] %v6548_v47  ;;  %v1217_v0 = vadd.f32 %v6331_v9, %v1216_v5  ;;  %v1567_v46 = vadd.f32 %v6397_v35, %v1214_v11  ;;  %v1218_v40 = vpop.f32.mrb[59].mxu0  ;;  %4971 = vmatmul.mubr.msk.bf16.gmra.mrb[104].mxu1 %vm1932_vm0, %v6548_v47  ;;  %v6567_v11 = vpop.f32.mrb[72].mxu1 }
 0x1a1   :  { %v1570_v16 = vadd.f32 %v6402_v41, %v1217_v0  ;;  %v1801_v57 = vmax.f32 %v1567_v46, 0.0  ;;  %v6573_v41 = vpop.f32.mrb[73].mxu1 }
 0x1a2   :  { %v6575_v46 = vpop.f32.mrb[74].mxu1 }
 0x1a3   :  { %v1802_v20 = vmax.f32 %v1570_v16, 0.0  ;;  %v6578_v16 = vpop.f32.mrb[75].mxu1 }
 0x1a4   :  { %v1221_v43 = vpop.f32.mrb[60].mxu0 }
 0x1a5   :  { %v6564_v14 = vpack.c.bf16 %v1802_v20, %v1801_v57  ;;  %v1222_v5 = vadd.f32 %v6331_v9, %v1221_v43  ;;  %v1223_v35 = vpop.f32.mrb[61].mxu0 }
 0x1a6   :  { %v1224_v40 = vpop.f32.mrb[62].mxu0 }
 0x1a7   :  { %7750 = vst [vmem:[#allocation30_spill] sm:$0xff] %v6564_v14  ;;  %v1575_v47 = vadd.f32 %v6391_v31, %v1222_v5  ;;  %v1225_v63 = vadd.f32 %v6331_v9, %v1224_v40  ;;  %v1226_v50 = vpop.f32.mrb[63].mxu0  ;;  %4974 = vmatprep.mubr.msk.bf16.mxu1 %vm1932_vm0, %v6564_v14  ;;  %v6583_v40 = vpop.f32.mrb[76].mxu1 }
 0x1a9   :  { %v1578_v0 = vadd.f32 %v6399_v36, %v1225_v63  ;;  %v1803_v57 = vmax.f32 %v1575_v47, 0.0  ;;  %v6589_v63 = vpop.f32.mrb[77].mxu1 }
 0x1aa   :  { %v6591_v36 = vpop.f32.mrb[78].mxu1 }
 0x1ab   :  { %v1804_v20 = vmax.f32 %v1578_v0, 0.0  ;;  %v6594_v0 = vpop.f32.mrb[79].mxu1 }
 0x1ac   :  { %v1229_v43 = vpop.f32.mrb[64].mxu0 }
 0x1ad   :  { %v6580_v35 = vpack.c.bf16 %v1804_v20, %v1803_v57  ;;  %v1230_v31 = vadd.f32 %v6331_v9, %v1229_v43  ;;  %v1231_v5 = vpop.f32.mrb[65].mxu0 }
 0x1ae   :  { %v1232_v50 = vpop.f32.mrb[66].mxu0 }
 0x1af   :  { %7751 = vst [vmem:[#allocation31_spill] sm:$0xff] %v6580_v35  ;;  %v1233_v14 = vadd.f32 %v6331_v9, %v1232_v50  ;;  %v1583_v61 = vadd.f32 %v6413_v58, %v1230_v31  ;;  %v1234_v53 = vpop.f32.mrb[67].mxu0  ;;  %4975 = vmatmul.mubr.msk.bf16.gmra.mrb[108].mxu1 %vm1932_vm0, %v6580_v35 }
 0x1b1   :  { %v1586_v47 = vadd.f32 %v6418_v62, %v1233_v14  ;;  %v1805_v57 = vmax.f32 %v1583_v61, 0.0 }
 0x1b3   :  { %v1806_v20 = vmax.f32 %v1586_v47, 0.0 }
 0x1b4   :  { %v1237_v43 = vpop.f32.mrb[68].mxu0 }
 0x1b5   :  { %v6596_v5 = vpack.c.bf16 %v1806_v20, %v1805_v57  ;;  %v1238_v50 = vadd.f32 %v6331_v9, %v1237_v43  ;;  %v1239_v58 = vpop.f32.mrb[69].mxu0 }
 0x1b6   :  { %v1240_v53 = vpop.f32.mrb[70].mxu0 }
 0x1b7   :  { %7752 = vst [vmem:[#allocation32_spill] sm:$0xff] %v6596_v5  ;;  %v1591_v31 = vadd.f32 %v6407_v52, %v1238_v50  ;;  %v1241_v35 = vadd.f32 %v6331_v9, %v1240_v53  ;;  %v1242_v44 = vpop.f32.mrb[71].mxu0  ;;  %4978 = vmatprep.mubr.msk.bf16.mxu1 %vm1932_vm0, %v6596_v5 }
 0x1b9   :  { %v1594_v62 = vadd.f32 %v6415_v59, %v1241_v35  ;;  %v1807_v14 = vmax.f32 %v1591_v31, 0.0 }
 0x1bb   :  { %v1808_v61 = vmax.f32 %v1594_v62, 0.0 }
 0x1bc   :  { %v1245_v47 = vpop.f32.mrb[72].mxu0 }
 0x1bd   :  { %v6604_v33 = vpack.c.bf16 %v1808_v61, %v1807_v14  ;;  %v1246_v57 = vadd.f32 %v6331_v9, %v1245_v47  ;;  %v1247_v20 = vpop.f32.mrb[73].mxu0 }
 0x1be   :  { %v1248_v43 = vpop.f32.mrb[74].mxu0 }
 0x1bf   :  { %7753 = vst [vmem:[#allocation33_spill] sm:$0xff] %v6604_v33  ;;  %v1249_v58 = vadd.f32 %v6331_v9, %v1248_v43  ;;  %v1599_v52 = vadd.f32 %v6429_v25, %v1246_v57  ;;  %v1250_v50 = vpop.f32.mrb[75].mxu0  ;;  %4979 = vmatmul.mubr.msk.bf16.gmra.mrb[112].mxu1 %vm1932_vm0, %v6604_v33 }
 0x1c1   :  { %v1602_v44 = vadd.f32 %v6434_v29, %v1249_v58  ;;  %v1809_v59 = vmax.f32 %v1599_v52, 0.0 }
 0x1c3   :  { %v1810_v35 = vmax.f32 %v1602_v44, 0.0 }
 0x1c4   :  { %v1253_v53 = vpop.f32.mrb[76].mxu0 }
 0x1c5   :  { %v6612_v31 = vpack.c.bf16 %v1810_v35, %v1809_v59  ;;  %v1254_v62 = vadd.f32 %v6331_v9, %v1253_v53  ;;  %v1255_v14 = vpop.f32.mrb[77].mxu0 }
 0x1c6   :  { %v1256_v61 = vpop.f32.mrb[78].mxu0 }
 0x1c7   :  { %7754 = vst [vmem:[#allocation34_spill] sm:$0xff] %v6612_v31  ;;  %v1607_v47 = vadd.f32 %v6423_v19, %v1254_v62  ;;  %v1257_v20 = vadd.f32 %v6331_v9, %v1256_v61  ;;  %v1258_v25 = vpop.f32.mrb[79].mxu0  ;;  %4982 = vmatprep.mubr.msk.bf16.mxu1 %vm1932_vm0, %v6612_v31 }
 0x1c9   :  { %v1610_v57 = vadd.f32 %v6431_v26, %v1257_v20  ;;  %v1811_v29 = vmax.f32 %v1607_v47, 0.0 }
 0x1cb   :  { %v1812_v43 = vmax.f32 %v1610_v57, 0.0 }
 0x1cc   :  { %v1261_v58 = vpop.f32.mrb[80].mxu0 }
 0x1cd   :  { %v6620_v52 = vpack.c.bf16 %v1812_v43, %v1811_v29  ;;  %v1262_v50 = vadd.f32 %v6331_v9, %v1261_v58  ;;  %v1263_v44 = vpop.f32.mrb[81].mxu0 }
 0x1ce   :  { %v1264_v59 = vpop.f32.mrb[82].mxu0 }
 0x1cf   :  { %7755 = vst [vmem:[#allocation35_spill] sm:$0xff] %v6620_v52  ;;  %v1265_v35 = vadd.f32 %v6331_v9, %v1264_v59  ;;  %v1615_v19 = vadd.f32 %v6445_v49, %v1262_v50  ;;  %v1266_v53 = vpop.f32.mrb[83].mxu0  ;;  %4983 = vmatmul.mubr.msk.bf16.gmra.mrb[116].mxu1 %vm1932_vm0, %v6620_v52 }
 0x1d1   :  { %v1618_v62 = vadd.f32 %v6450_v8, %v1265_v35  ;;  %v1813_v26 = vmax.f32 %v1615_v19, 0.0 }
 0x1d3   :  { %v1814_v14 = vmax.f32 %v1618_v62, 0.0 }
 0x1d4   :  { %v1269_v61 = vpop.f32.mrb[84].mxu0 }
 0x1d5   :  { %v6628_v47 = vpack.c.bf16 %v1814_v14, %v1813_v26  ;;  %v1270_v20 = vadd.f32 %v6331_v9, %v1269_v61  ;;  %v1271_v25 = vpop.f32.mrb[85].mxu0 }
 0x1d6   :  { %v1272_v57 = vpop.f32.mrb[86].mxu0 }
 0x1d7   :  { %7756 = vst [vmem:[#allocation36_spill] sm:$0xff] %v6628_v47  ;;  %v1623_v29 = vadd.f32 %v6439_v6, %v1270_v20  ;;  %v1273_v43 = vadd.f32 %v6331_v9, %v1272_v57  ;;  %v1274_v49 = vpop.f32.mrb[87].mxu0  ;;  %4986 = vmatprep.mubr.msk.bf16.mxu1 %vm1932_vm0, %v6628_v47 }
 0x1d9   :  { %v1626_v58 = vadd.f32 %v6447_v51, %v1273_v43  ;;  %v1815_v8 = vmax.f32 %v1623_v29, 0.0 }
 0x1db   :  { %v1816_v50 = vmax.f32 %v1626_v58, 0.0 }
 0x1dc   :  { %v1277_v44 = vpop.f32.mrb[88].mxu0 }
 0x1dd   :  { %v6636_v59 = vpack.c.bf16 %v1816_v50, %v1815_v8  ;;  %v1278_v35 = vadd.f32 %v6331_v9, %v1277_v44  ;;  %v1279_v19 = vpop.f32.mrb[89].mxu0 }
 0x1de   :  { %v1280_v53 = vpop.f32.mrb[90].mxu0 }
 0x1df   :  { %7757 = vst [vmem:[#allocation37_spill] sm:$0xff] %v6636_v59  ;;  %v1281_v62 = vadd.f32 %v6331_v9, %v1280_v53  ;;  %v1631_v6 = vadd.f32 %v6461_v7, %v1278_v35  ;;  %v1282_v26 = vpop.f32.mrb[91].mxu0  ;;  %4987 = vmatmul.mubr.msk.bf16.gmra.mrb[120].mxu1 %vm1932_vm0, %v6636_v59 }
 0x1e1   :  { %v1634_v14 = vadd.f32 %v6466_v30, %v1281_v62  ;;  %v1817_v51 = vmax.f32 %v1631_v6, 0.0 }
 0x1e3   :  { %v1818_v61 = vmax.f32 %v1634_v14, 0.0 }
 0x1e4   :  { %v1285_v20 = vpop.f32.mrb[92].mxu0 }
 0x1e5   :  { %v6644_v25 = vpack.c.bf16 %v1818_v61, %v1817_v51  ;;  %v1286_v57 = vadd.f32 %v6331_v9, %v1285_v20  ;;  %v1287_v29 = vpop.f32.mrb[93].mxu0 }
 0x1e6   :  { %v1288_v43 = vpop.f32.mrb[94].mxu0 }
 0x1e7   :  { %7758 = vst [vmem:[#allocation38_spill] sm:$0xff] %v6644_v25  ;;  %v1639_v49 = vadd.f32 %v6455_v13, %v1286_v57  ;;  %v1289_v58 = vadd.f32 %v6331_v9, %v1288_v43  ;;  %v1290_v7 = vpop.f32.mrb[95].mxu0  ;;  %4990 = vmatprep.mubr.msk.bf16.mxu1 %vm1932_vm0, %v6644_v25 }
 0x1e9   :  { %v1642_v8 = vadd.f32 %v6463_v24, %v1289_v58  ;;  %v1819_v30 = vmax.f32 %v1639_v49, 0.0 }
 0x1eb   :  { %v1820_v50 = vmax.f32 %v1642_v8, 0.0 }
 0x1ec   :  { %v1293_v44 = vpop.f32.mrb[96].mxu0 }
 0x1ed   :  { %v6652_v35 = vpack.c.bf16 %v1820_v50, %v1819_v30  ;;  %v1294_v19 = vadd.f32 %v6331_v9, %v1293_v44  ;;  %v1295_v53 = vpop.f32.mrb[97].mxu0 }
 0x1ee   :  { %v1296_v62 = vpop.f32.mrb[98].mxu0 }
 0x1ef   :  { %7759 = vst [vmem:[#allocation39_spill] sm:$0xff] %v6652_v35  ;;  %v1297_v6 = vadd.f32 %v6331_v9, %v1296_v62  ;;  %v1647_v13 = vadd.f32 %v6477_v56, %v1294_v19  ;;  %v1298_v26 = vpop.f32.mrb[99].mxu0  ;;  %4991 = vmatmul.mubr.msk.bf16.gmra.mrb[124].mxu1 %vm1932_vm0, %v6652_v35 }
 0x1f1   :  { %v1650_v14 = vadd.f32 %v6482_v3, %v1297_v6  ;;  %v1821_v24 = vmax.f32 %v1647_v13, 0.0 }
 0x1f3   :  { %v1822_v51 = vmax.f32 %v1650_v14, 0.0 }
 0x1f4   :  { %v1301_v61 = vpop.f32.mrb[100].mxu0 }
 0x1f5   :  { %v6660_v20 = vpack.c.bf16 %v1822_v51, %v1821_v24  ;;  %v1302_v57 = vadd.f32 %v6331_v9, %v1301_v61  ;;  %v1303_v29 = vpop.f32.mrb[101].mxu0 }
 0x1f6   :  { %v1304_v43 = vpop.f32.mrb[102].mxu0 }
 0x1f7   :  { %7760 = vst [vmem:[#allocation40_spill] sm:$0xff] %v6660_v20  ;;  %v1655_v49 = vadd.f32 %v6471_v23, %v1302_v57  ;;  %v1305_v58 = vadd.f32 %v6331_v9, %v1304_v43  ;;  %v1306_v56 = vpop.f32.mrb[103].mxu0  ;;  %4994 = vmatprep.mubr.msk.bf16.mxu1 %vm1932_vm0, %v6660_v20 }
 0x1f9   :  { %v1658_v7 = vadd.f32 %v6479_v60, %v1305_v58  ;;  %v1823_v3 = vmax.f32 %v1655_v49, 0.0 }
 0x1fb   :  { %v1824_v8 = vmax.f32 %v1658_v7, 0.0 }
 0x1fc   :  { %v1309_v30 = vpop.f32.mrb[104].mxu0 }
 0x1fd   :  { %v6668_v50 = vpack.c.bf16 %v1824_v8, %v1823_v3  ;;  %v1310_v44 = vadd.f32 %v6331_v9, %v1309_v30  ;;  %v1311_v19 = vpop.f32.mrb[105].mxu0 }
 0x1fe   :  { %v1312_v53 = vpop.f32.mrb[106].mxu0 }
 0x1ff   :  { %7761 = vst [vmem:[#allocation41_spill] sm:$0xff] %v6668_v50  ;;  %4995 = vmatmul.mubr.msk.bf16.gmra.mrb[128].mxu1 %vm1932_vm0, %v6668_v50  ;;  %v1663_v23 = vadd.f32 %v6493_v37, %v1310_v44  ;;  %v1313_v62 = vadd.f32 %v6331_v9, %v1312_v53  ;;  %v1314_v6 = vpop.f32.mrb[107].mxu0 }
 0x201   :  { %v1666_v13 = vadd.f32 %v6498_v45, %v1313_v62  ;;  %v1825_v60 = vmax.f32 %v1663_v23, 0.0 }
 0x203   :  { %v1826_v26 = vmax.f32 %v1666_v13, 0.0 }
 0x204   :  { %v1317_v14 = vpop.f32.mrb[108].mxu0 }
 0x205   :  { %v6676_v24 = vpack.c.bf16 %v1826_v26, %v1825_v60  ;;  %v1318_v51 = vadd.f32 %v6331_v9, %v1317_v14  ;;  %v1319_v61 = vpop.f32.mrb[109].mxu0 }
 0x206   :  { %v1320_v57 = vpop.f32.mrb[110].mxu0 }
 0x207   :  { %7762 = vst [vmem:[#allocation42_spill] sm:$0xff] %v6676_v24  ;;  %v1671_v29 = vadd.f32 %v6487_v32, %v1318_v51  ;;  %v1321_v43 = vadd.f32 %v6331_v9, %v1320_v57  ;;  %4998 = vmatprep.mubr.msk.bf16.mxu1 %vm1932_vm0, %v6676_v24  ;;  %v1322_v37 = vpop.f32.mrb[111].mxu0 }
 0x209   :  { %v1674_v49 = vadd.f32 %v6495_v42, %v1321_v43  ;;  %v1827_v45 = vmax.f32 %v1671_v29, 0.0  ;;  %v6694_v42 = vld [vmem:[%s7681_s4] ss:$0 sm:$0xff] }
 0x20b   :  { %v1828_v58 = vmax.f32 %v1674_v49, 0.0 }
 0x20c   :  { %v1325_v56 = vpop.f32.mrb[112].mxu0 }
 0x20d   :  { %v6684_v7 = vpack.c.bf16 %v1828_v58, %v1827_v45  ;;  %v1326_v3 = vadd.f32 %v6331_v9, %v1325_v56  ;;  %v1327_v8 = vpop.f32.mrb[113].mxu0 }
 0x20e   :  { %v1328_v30 = vpop.f32.mrb[114].mxu0 }
 0x20f   :  { %7763 = vst [vmem:[#allocation43_spill] sm:$0xff] %v6684_v7  ;;  %4999 = vmatmul.mubr.msk.bf16.gmra.mrb[132].mxu1 %vm1932_vm0, %v6684_v7  ;;  %v1679_v32 = vadd.f32 %v6509_v22, %v1326_v3  ;;  %v1329_v44 = vadd.f32 %v6331_v9, %v1328_v30  ;;  %v1330_v19 = vpop.f32.mrb[115].mxu0 }
 0x211   :  { %v1682_v53 = vadd.f32 %v6514_v38, %v1329_v44  ;;  %v1829_v13 = vmax.f32 %v1679_v32, 0.0 }
 0x212   :  { %v4948_v23 = vpop.f32.mrb[80].mxu1 }
 0x213   :  { %v6698_v62 = vadd.f32 %v4948_v23, %v6694_v42  ;;  %v2087_v6 = vpop.f32.mrb[81].mxu1  ;;  %v1830_v60 = vmax.f32 %v1682_v53, 0.0 }
 0x214   :  { %v6701_v26 = vadd.f32 %v6694_v42, %v2087_v6  ;;  %v4949_v22 = vpop.f32.mrb[82].mxu1  ;;  %v1333_v14 = vpop.f32.mrb[116].mxu0 }
 0x215   :  { %v4417_v51 = vmul.f32 -1.442695, %v6698_v62  ;;  %v6705_v61 = vadd.f32 %v4949_v22, %v6694_v42  ;;  %v2090_v57 = vpop.f32.mrb[83].mxu1  ;;  %v6707_v29 = vpack.c.bf16 %v1830_v60, %v1829_v13  ;;  %v1335_v38 = vpop.f32.mrb[117].mxu0  ;;  %v1334_v49 = vadd.f32 %v6331_v9, %v1333_v14 }
 0x216   :  { %v4415_v43 = vmul.f32 -1.442695, %v6701_v26  ;;  %v6711_v37 = vadd.f32 %v6694_v42, %v2090_v57  ;;  %v1336_v45 = vpop.f32.mrb[118].mxu0 }
 0x217   :  { %7764 = vst [vmem:[#allocation44_spill] sm:$0xff] %v6707_v29  ;;  %5516 = vpow2.f32 %v4417_v51  ;;  %v4418_v58 = vmul.f32 -1.442695, %v6705_v61  ;;  %v1337_v56 = vadd.f32 %v6331_v9, %v1336_v45  ;;  %v1338_v3 = vpop.f32.mrb[119].mxu0  ;;  %5002 = vmatprep.mubr.msk.bf16.mxu1 %vm1932_vm0, %v6707_v29  ;;  %v1687_v30 = vadd.f32 %v6503_v2, %v1334_v49 }
 0x218   :  { %5518 = vpow2.f32 %v4415_v43  ;;  %v4416_v8 = vmul.f32 -1.442695, %v6711_v37 }
 0x219   :  { %v1690_v32 = vadd.f32 %v6511_v28, %v1337_v56  ;;  %5520 = vpow2.f32 %v4418_v58  ;;  %v1831_v44 = vmax.f32 %v1687_v30, 0.0 }
 0x21a   :  { %5522 = vpow2.f32 %v4416_v8 }
 0x21b   :  { %v1832_v19 = vmax.f32 %v1690_v32, 0.0 }
 0x21c   :  { %v1341_v53 = vpop.f32.mrb[120].mxu0 }
 0x21d   :  { %v6721_v23 = vpack.c.bf16 %v1832_v19, %v1831_v44  ;;  %v1342_v6 = vadd.f32 %v6331_v9, %v1341_v53  ;;  %v1343_v13 = vpop.f32.mrb[121].mxu0 }
 0x21e   :  { %v1344_v60 = vpop.f32.mrb[122].mxu0 }
 0x21f   :  { %7765 = vst [vmem:[#allocation45_spill] sm:$0xff] %v6721_v23  ;;  %v1695_v22 = vadd.f32 %v6525_v12, %v1342_v6  ;;  %v1345_v14 = vadd.f32 %v6331_v9, %v1344_v60  ;;  %v1346_v51 = vpop.f32.mrb[123].mxu0  ;;  %5003 = vmatmul.mubr.msk.bf16.gmra.mrb[136].mxu1 %vm1932_vm0, %v6721_v23 }
 0x221   :  { %v5517_v2 = vpop.eup %5516  ;;  %v1698_v28 = vadd.f32 %v6530_v1, %v1345_v14  ;;  %v1833_v8 = vmax.f32 %v1695_v22, 0.0  ;;  %v6748_v22 = vld [vmem:[%s7679_s2] ss:$0 sm:$0xff]  ;;  %s6132_s2 = smov 96  }
 0x222   :  { %v5519_v57 = vpop.eup %5518  ;;  %v2728_v38 = vadd.f32 1.0, %v5517_v2  ;;  %v4952_v43 = vpop.f32.mrb[84].mxu1 }
 0x223   :  { %v2726_v49 = vadd.f32 1.0, %v5519_v57  ;;  %v6730_v45 = vadd.f32 %v4952_v43, %v6694_v42  ;;  %v2103_v58 = vpop.f32.mrb[85].mxu1  ;;  %v1834_v56 = vmax.f32 %v1698_v28, 0.0  ;;  %v5521_v3 = vpop.eup %5520 }
 0x224   :  { %5524 = vrcp.f32 %v2728_v38  ;;  %v6733_v9 = vadd.f32 %v6694_v42, %v2103_v58  ;;  %v4953_v12 = vpop.f32.mrb[86].mxu1  ;;  %v1349_v30 = vpop.f32.mrb[124].mxu0  ;;  %v2729_v32 = vadd.f32 1.0, %v5521_v3 }
 0x225   :  { %5526 = vrcp.f32 %v2726_v49  ;;  %v4421_v1 = vmul.f32 -1.442695, %v6730_v45  ;;  %v6737_v44 = vadd.f32 %v4953_v12, %v6694_v42  ;;  %v2106_v19 = vpop.f32.mrb[87].mxu1  ;;  %v1351_v53 = vpop.f32.mrb[125].mxu0  ;;  %v6739_v13 = vpack.c.bf16 %v1834_v56, %v1833_v8 }
 0x226   :  { %v5523_v6 = vpop.eup %5522  ;;  %v1352_v60 = vpop.f32.mrb[126].mxu0  ;;  %v4419_v14 = vmul.f32 -1.442695, %v6733_v9  ;;  %v6743_v51 = vadd.f32 %v6694_v42, %v2106_v19  ;;  %v1350_v2 = vadd.f32 %v6748_v22, %v1349_v30 }
 0x227   :  { %7766 = vst [vmem:[#allocation46_spill] sm:$0xff] %v6739_v13  ;;  %v1354_v28 = vpop.f32.mrb[127].mxu0  ;;  %v2727_v57 = vadd.f32 1.0, %v5523_v6  ;;  %5528 = vpow2.f32 %v4421_v1  ;;  %v1353_v38 = vadd.f32 %v6748_v22, %v1352_v60  ;;  %5006 = vmatprep.mubr.msk.bf16.mxu1 %vm1932_vm0, %v6739_v13  ;;  %v4422_v43 = vmul.f32 -1.442695, %v6737_v44 }
 0x228   :  { %5530 = vrcp.f32 %v2729_v32  ;;  %v1703_v49 = vadd.f32 %v6519_v10, %v1350_v2  ;;  %v4420_v56 = vmul.f32 -1.442695, %v6743_v51 }
 0x229   :  { %v1706_v58 = vadd.f32 %v6527_v17, %v1353_v38  ;;  %5532 = vpow2.f32 %v4419_v14 }
 0x22a   :  { %5534 = vrcp.f32 %v2727_v57  ;;  %v1835_v3 = vmax.f32 %v1703_v49, 0.0 }
 0x22b   :  { %v1836_v12 = vmax.f32 %v1706_v58, 0.0  ;;  %5536 = vpow2.f32 %v4422_v43 }
 0x22c   :  { %v1357_v8 = vpop.f32.mrb[128].mxu0  ;;  %5538 = vpow2.f32 %v4420_v56 }
 0x22d   :  { %v1358_v30 = vadd.f32 %v6748_v22, %v1357_v8  ;;  %v1359_v1 = vpop.f32.mrb[129].mxu0  ;;  %v6759_v53 = vpack.c.bf16 %v1836_v12, %v1835_v3 }
 0x22e   :  { %v5525_v19 = vpop.eup %5524  ;;  %v1360_v32 = vpop.f32.mrb[130].mxu0 }
 0x22f   :  { %7767 = vst [vmem:[#allocation47_spill] sm:$0xff] %v6759_v53  ;;  %v5527_v6 = vpop.eup %5526  ;;  %3050 = vrot.lane.b32.xlu0 %v5525_v19, %s6132_s2  ;;  %v1711_v10 = vadd.f32 %v6541_v18, %v1358_v30  ;;  %v1361_v17 = vadd.f32 %v6748_v22, %v1360_v32  ;;  %v1362_v60 = vpop.f32.mrb[131].mxu0  ;;  %5007 = vmatmul.mubr.msk.bf16.gmra.mrb[140].mxu1 %vm1932_vm0, %v6759_v53 }
 0x230   :  { %3046 = vrot.lane.b32.xlu1 %v5527_v6, %s6132_s2 }
 0x231   :  { %v1714_v14 = vadd.f32 %v6546_v55, %v1361_v17  ;;  %v5529_v2 = vpop.eup %5528  ;;  %v1837_v43 = vmax.f32 %v1711_v10, 0.0 }
 0x232   :  { %v4956_v28 = vpop.f32.mrb[88].mxu1  ;;  %v5531_v57 = vpop.eup %5530  ;;  %v2732_v38 = vadd.f32 1.0, %v5529_v2 }
 0x233   :  { %v1838_v49 = vmax.f32 %v1714_v14, 0.0  ;;  %v6769_v58 = vadd.f32 %v4956_v28, %v6694_v42  ;;  %v2119_v18 = vpop.f32.mrb[89].mxu1  ;;  %v5533_v8 = vpop.eup %5532 }
 0x234   :  { %v6772_v56 = vadd.f32 %v6694_v42, %v2119_v18  ;;  %v1365_v3 = vpop.f32.mrb[132].mxu0  ;;  %v4957_v12 = vpop.f32.mrb[90].mxu1  ;;  %3052 = vrot.lane.b32.xlu1 %v5531_v57, %s6132_s2  ;;  %5540 = vrcp.f32 %v2732_v38  ;;  %v2730_v10 = vadd.f32 1.0, %v5533_v8 }
 0x235   :  { %v6775_v55 = vpack.c.bf16 %v1838_v49, %v1837_v43  ;;  %v4425_v30 = vmul.f32 -1.442695, %v6769_v58  ;;  %v1366_v1 = vadd.f32 %v6748_v22, %v1365_v3  ;;  %v1367_v19 = vpop.f32.mrb[133].mxu0  ;;  %v2122_v32 = vpop.f32.mrb[91].mxu1  ;;  %v6780_v17 = vadd.f32 %v4957_v12, %v6694_v42 }
 0x236   :  { %v5535_v6 = vpop.eup %5534  ;;  %v1368_v60 = vpop.f32.mrb[134].mxu0  ;;  %v4423_v2 = vmul.f32 -1.442695, %v6772_v56  ;;  %v6788_v49 = vadd.f32 %v6694_v42, %v2122_v32 }
 0x237   :  { %7768 = vst [vmem:[#allocation48_spill] sm:$0xff] %v6775_v55  ;;  %v5537_v14 = vpop.eup %5536  ;;  %5542 = vpow2.f32 %v4425_v30  ;;  %v1719_v28 = vadd.f32 %v6535_v4, %v1366_v1  ;;  %v1369_v57 = vadd.f32 %v6748_v22, %v1368_v60  ;;  %5010 = vmatprep.mubr.msk.bf16.mxu1 %vm1932_vm0, %v6775_v55  ;;  %v1370_v38 = vpop.f32.mrb[135].mxu0  ;;  %v4426_v4 = vmul.f32 -1.442695, %v6780_v17 }
 0x238   :  { %v2733_v43 = vadd.f32 1.0, %v5537_v14  ;;  %3048 = vrot.lane.b32.xlu1 %v5535_v6, %s6132_s2  ;;  %v5539_v18 = vpop.eup %5538  ;;  %5544 = vrcp.f32 %v2730_v10  ;;  %v4424_v1 = vmul.f32 -1.442695, %v6788_v49 }
 0x239   :  { %v1722_v3 = vadd.f32 %v6543_v54, %v1369_v57  ;;  %v2731_v12 = vadd.f32 1.0, %v5539_v18  ;;  %v1839_v8 = vmax.f32 %v1719_v28, 0.0 }
 0x23a   :  { %5546 = vrcp.f32 %v2733_v43 }
 0x23b   :  { %5548 = vpow2.f32 %v4423_v2  ;;  %v1840_v30 = vmax.f32 %v1722_v3, 0.0 }
 0x23c   :  { %v1373_v19 = vpop.f32.mrb[136].mxu0  ;;  %5550 = vrcp.f32 %v2731_v12 }
 0x23d   :  { %v6794_v60 = vpack.c.bf16 %v1840_v30, %v1839_v8  ;;  %v1374_v32 = vadd.f32 %v6748_v22, %v1373_v19  ;;  %v1375_v6 = vpop.f32.mrb[137].mxu0  ;;  %5552 = vpow2.f32 %v4426_v4 }
 0x23e   :  { %v1376_v10 = vpop.f32.mrb[138].mxu0  ;;  %v5541_v14 = vpop.eup %5540  ;;  %5554 = vpow2.f32 %v4424_v1 }
 0x23f   :  { %7769 = vst [vmem:[#allocation49_spill] sm:$0xff] %v6794_v60  ;;  %5011 = vmatmul.mubr.msk.bf16.gmra.mrb[144].mxu1 %vm1932_vm0, %v6794_v60  ;;  %v1727_v54 = vadd.f32 %v6557_v15, %v1374_v32  ;;  %v1377_v2 = vadd.f32 %v6748_v22, %v1376_v10  ;;  %v1378_v28 = vpop.f32.mrb[139].mxu0  ;;  %3058 = vrot.lane.b32.xlu0 %v5541_v14, %s6132_s2 }
 0x241   :  { %v5543_v57 = vpop.eup %5542  ;;  %v1730_v38 = vadd.f32 %v6562_v21, %v1377_v2  ;;  %v1841_v12 = vmax.f32 %v1727_v54, 0.0 }
 0x242   :  { %v2736_v43 = vadd.f32 1.0, %v5543_v57  ;;  %v6803_v18 = vpop.f32.mrb[92].mxu1  ;;  %v5545_v3 = vpop.eup %5544 }
 0x243   :  { %v1842_v4 = vmax.f32 %v1730_v38, 0.0  ;;  %v2135_v8 = vpop.f32.mrb[93].mxu1  ;;  %3054 = vrot.lane.b32.xlu0 %v5545_v3, %s6132_s2 }
 0x244   :  { %v5547_v30 = vpop.eup %5546  ;;  %5556 = vrcp.f32 %v2736_v43  ;;  %v6806_v15 = vadd.f32 %v6694_v42, %v2135_v8  ;;  %v1381_v1 = vpop.f32.mrb[140].mxu0 }
 0x245   :  { %v4961_v19 = vpop.f32.mrb[94].mxu1  ;;  %v5549_v32 = vpop.eup %5548  ;;  %3060 = vrot.lane.b32.xlu1 %v5547_v30, %s6132_s2  ;;  %v6810_v21 = vpack.c.bf16 %v1842_v4, %v1841_v12  ;;  %v1382_v6 = vadd.f32 %v6748_v22, %v1381_v1 }
 0x246   :  { %v1383_v10 = vpop.f32.mrb[141].mxu0  ;;  %v2138_v14 = vpop.f32.mrb[95].mxu1  ;;  %v2734_v54 = vadd.f32 1.0, %v5549_v32  ;;  %v4427_v2 = vmul.f32 -1.442695, %v6806_v15 }
 0x247   :  { %7770 = vst [vmem:[#allocation50_spill] sm:$0xff] %v6810_v21  ;;  %v1384_v28 = vpop.f32.mrb[142].mxu0  ;;  %v5551_v57 = vpop.eup %5550  ;;  %v1735_v38 = vadd.f32 %v6551_v48, %v1382_v6  ;;  %v6816_v43 = vadd.f32 %v6694_v42, %v2138_v14  ;;  %5014 = vmatprep.mubr.msk.bf16.mxu1 %vm1932_vm0, %v6810_v21 }
 0x248   :  { %v1385_v3 = vadd.f32 %v6748_v22, %v1384_v28  ;;  %v1386_v12 = vpop.f32.mrb[143].mxu0  ;;  %v5553_v4 = vpop.eup %5552  ;;  %5558 = vrcp.f32 %v2734_v54 }
 0x249   :  { %v2737_v8 = vadd.f32 1.0, %v5553_v4  ;;  %5560 = vpow2.f32 %v4427_v2  ;;  %3056 = vrot.lane.b32.xlu1 %v5551_v57, %s6132_s2  ;;  %v5555_v30 = vpop.eup %5554  ;;  %v4428_v32 = vmul.f32 -1.442695, %v6816_v43  ;;  %v1843_v6 = vmax.f32 %v1735_v38, 0.0 }
 0x24a   :  { %v1738_v1 = vadd.f32 %v6559_v34, %v1385_v3  ;;  %v2735_v48 = vadd.f32 1.0, %v5555_v30 }
 0x24b   :  { %5562 = vrcp.f32 %v2737_v8 }
 0x24c   :  { %v1844_v10 = vmax.f32 %v1738_v1, 0.0  ;;  %v1389_v14 = vpop.f32.mrb[144].mxu0  ;;  %5564 = vrcp.f32 %v2735_v48 }
 0x24d   :  { %v1390_v28 = vadd.f32 %v6748_v22, %v1389_v14  ;;  %v1391_v35 = vpop.f32.mrb[145].mxu0  ;;  %5566 = vpow2.f32 %v4428_v32 }
 0x24e   :  { %v5557_v12 = vpop.eup %5556  ;;  %v6825_v54 = vpack.c.bf16 %v1844_v10, %v1843_v6  ;;  %v1392_v2 = vpop.f32.mrb[146].mxu0  ;;  %v6834_v35 = vadd.f32 %v4961_v19, %v6694_v42  ;;  %v6845_v19 = vadd.f32 %v6803_v18, %v6694_v42 }
 0x24f   :  { %3066 = vrot.lane.b32.xlu0 %v5557_v12, %s6132_s2  ;;  %v1743_v34 = vadd.f32 %v6573_v41, %v1390_v28  ;;  %v1393_v57 = vadd.f32 %v6748_v22, %v1392_v2  ;;  %v1394_v3 = vpop.f32.mrb[147].mxu0 }
 0x250   :  { %7771 = vst [vmem:[#allocation51_spill] sm:$0xff] %v6825_v54  ;;  %5015 = vmatmul.mubr.msk.bf16.gmra.mrb[148].mxu1 %vm1932_vm0, %v6825_v54 }
 0x251   :  { %v1746_v38 = vadd.f32 %v6578_v16, %v1393_v57  ;;  %v1845_v1 = vmax.f32 %v1743_v34, 0.0 }
 0x252   :  { %v5559_v4 = vpop.eup %5558  ;;  %v4964_v8 = vpop.f32.mrb[96].mxu1 }
 0x253   :  { %v5561_v30 = vpop.eup %5560  ;;  %v1846_v48 = vmax.f32 %v1746_v38, 0.0  ;;  %v6837_v32 = vadd.f32 %v4964_v8, %v6694_v42  ;;  %v2151_v41 = vpop.f32.mrb[97].mxu1  ;;  %3062 = vrot.lane.b32.xlu0 %v5559_v4, %s6132_s2  ;;  %v4430_v38 = vmul.f32 -1.442695, %v6834_v35 }
 0x254   :  { %v2738_v6 = vadd.f32 1.0, %v5561_v30  ;;  %v6841_v10 = vadd.f32 %v6694_v42, %v2151_v41  ;;  %v1397_v14 = vpop.f32.mrb[148].mxu0  ;;  %v4965_v16 = vpop.f32.mrb[98].mxu1 }
 0x255   :  { %v5563_v28 = vpop.eup %5562  ;;  %v6847_v12 = vpack.c.bf16 %v1846_v48, %v1845_v1  ;;  %v4433_v2 = vmul.f32 -1.442695, %v6837_v32  ;;  %v1398_v34 = vadd.f32 %v6748_v22, %v1397_v14  ;;  %v1399_v57 = vpop.f32.mrb[149].mxu0  ;;  %v6855_v8 = vadd.f32 %v4965_v16, %v6694_v42 }
 0x256   :  { %v2154_v3 = vpop.f32.mrb[99].mxu1  ;;  %5568 = vrcp.f32 %v2738_v6  ;;  %3068 = vrot.lane.b32.xlu1 %v5563_v28, %s6132_s2  ;;  %v4431_v4 = vmul.f32 -1.442695, %v6841_v10  ;;  %v1400_v18 = vpop.f32.mrb[150].mxu0  ;;  %v4429_v57 = vmul.f32 -1.442695, %v6845_v19 }
 0x257   :  { %7772 = vst [vmem:[#allocation52_spill] sm:$0xff] %v6847_v12  ;;  %5570 = vpow2.f32 %v4433_v2  ;;  %v1751_v30 = vadd.f32 %v6567_v11, %v1398_v34  ;;  %v6859_v1 = vadd.f32 %v6694_v42, %v2154_v3  ;;  %v1401_v48 = vadd.f32 %v6748_v22, %v1400_v18  ;;  %5018 = vmatprep.mubr.msk.bf16.mxu1 %vm1932_vm0, %v6847_v12  ;;  %v1402_v41 = vpop.f32.mrb[151].mxu0  ;;  %v5565_v6 = vpop.eup %5564 }
 0x258   :  { %v5567_v14 = vpop.eup %5566  ;;  %v4434_v28 = vmul.f32 -1.442695, %v6855_v8  ;;  %5572 = vpow2.f32 %v4431_v4 }
 0x259   :  { %v1754_v16 = vadd.f32 %v6575_v46, %v1401_v48  ;;  %v2739_v2 = vadd.f32 1.0, %v5567_v14  ;;  %5574 = vpow2.f32 %v4430_v38  ;;  %v1847_v11 = vmax.f32 %v1751_v30, 0.0 }
 0x25a   :  { %3064 = vrot.lane.b32.xlu1 %v5565_v6, %s6132_s2  ;;  %v4432_v34 = vmul.f32 -1.442695, %v6859_v1 }
 0x25b   :  { %v1848_v3 = vmax.f32 %v1754_v16, 0.0  ;;  %5576 = vrcp.f32 %v2739_v2 }
 0x25c   :  { %v1405_v18 = vpop.f32.mrb[152].mxu0  ;;  %5578 = vpow2.f32 %v4434_v28 }
 0x25d   :  { %v6869_v41 = vpack.c.bf16 %v1848_v3, %v1847_v11  ;;  %v1406_v53 = vadd.f32 %v6748_v22, %v1405_v18  ;;  %v1407_v25 = vpop.f32.mrb[153].mxu0  ;;  %5580 = vpow2.f32 %v4429_v57 }
 0x25e   :  { %v1408_v46 = vpop.f32.mrb[154].mxu0  ;;  %5582 = vpow2.f32 %v4432_v34 }
 0x25f   :  { %7773 = vst [vmem:[#allocation53_spill] sm:$0xff] %v6869_v41  ;;  %5019 = vmatmul.mubr.msk.bf16.gmra.mrb[152].mxu1 %vm1932_vm0, %v6869_v41  ;;  %v1759_v38 = vadd.f32 %v6589_v63, %v1406_v53  ;;  %v1409_v4 = vadd.f32 %v6748_v22, %v1408_v46  ;;  %v1410_v30 = vpop.f32.mrb[155].mxu0 }
 0x260   :  { %v5569_v48 = vpop.eup %5568 }
 0x261   :  { %v5571_v6 = vpop.eup %5570  ;;  %v1849_v14 = vmax.f32 %v1759_v38, 0.0  ;;  %3070 = vrot.lane.b32.xlu0 %v5569_v48, %s6132_s2  ;;  %v1762_v28 = vadd.f32 %v6594_v0, %v1409_v4 }
 0x262   :  { %v2744_v16 = vadd.f32 1.0, %v5571_v6  ;;  %v4968_v25 = vpop.f32.mrb[100].mxu1  ;;  %v5573_v34 = vpop.eup %5572 }
 0x263   :  { %v1850_v57 = vmax.f32 %v1762_v28, 0.0  ;;  %v6879_v2 = vadd.f32 %v4968_v25, %v6694_v42  ;;  %v2167_v11 = vpop.f32.mrb[101].mxu1  ;;  %v5575_v18 = vpop.eup %5574  ;;  %v2742_v46 = vadd.f32 1.0, %v5573_v34 }
 0x264   :  { %5584 = vrcp.f32 %v2744_v16  ;;  %v6882_v63 = vadd.f32 %v6694_v42, %v2167_v11  ;;  %v1413_v53 = vpop.f32.mrb[156].mxu0  ;;  %v4969_v3 = vpop.f32.mrb[102].mxu1  ;;  %v2741_v59 = vadd.f32 1.0, %v5575_v18 }
 0x265   :  { %v6884_v38 = vpack.c.bf16 %v1850_v57, %v1849_v14  ;;  %v4437_v0 = vmul.f32 -1.442695, %v6879_v2  ;;  %v1415_v4 = vpop.f32.mrb[157].mxu0  ;;  %v2170_v30 = vpop.f32.mrb[103].mxu1  ;;  %v1414_v28 = vadd.f32 %v6748_v22, %v1413_v53  ;;  %v6890_v16 = vadd.f32 %v4969_v3, %v6694_v42 }
 0x266   :  { %v5577_v48 = vpop.eup %5576  ;;  %v4435_v6 = vmul.f32 -1.442695, %v6882_v63  ;;  %v1416_v25 = vpop.f32.mrb[158].mxu0  ;;  %5586 = vrcp.f32 %v2742_v46  ;;  %v6894_v14 = vadd.f32 %v6694_v42, %v2170_v30 }
 0x267   :  { %7774 = vst [vmem:[#allocation54_spill] sm:$0xff] %v6884_v38  ;;  %v5579_v11 = vpop.eup %5578  ;;  %3072 = vrot.lane.b32.xlu1 %v5577_v48, %s6132_s2  ;;  %v1417_v57 = vadd.f32 %v6748_v22, %v1416_v25  ;;  %5022 = vmatprep.mubr.msk.bf16.mxu1 %vm1932_vm0, %v6884_v38  ;;  %v1418_v34 = vpop.f32.mrb[159].mxu0  ;;  %5588 = vpow2.f32 %v4437_v0  ;;  %v1767_v53 = vadd.f32 %v6583_v40, %v1414_v28  ;;  %v4438_v46 = vmul.f32 -1.442695, %v6890_v16 }
 0x268   :  { %v5581_v4 = vpop.eup %5580  ;;  %v2745_v13 = vadd.f32 1.0, %v5579_v11  ;;  %5590 = vpow2.f32 %v4435_v6  ;;  %v4436_v22 = vmul.f32 -1.442695, %v6894_v14 }
 0x269   :  { %v5583_v3 = vpop.eup %5582  ;;  %v1770_v48 = vadd.f32 %v6591_v36, %v1417_v57  ;;  %v1851_v23 = vmax.f32 %v1767_v53, 0.0  ;;  %v2740_v47 = vadd.f32 1.0, %v5581_v4 }
 0x26a   :  { %5592 = vrcp.f32 %v2745_v13  ;;  %v2743_v30 = vadd.f32 1.0, %v5583_v3 }
 0x26b   :  { %v1852_v25 = vmax.f32 %v1770_v48, 0.0 }
 0x26c   :  { %5594 = vrcp.f32 %v2743_v30 }
 0x26d   :  { %5596 = vpow2.f32 %v4438_v46  ;;  %v6903_v11 = vpack.c.bf16 %v1852_v25, %v1851_v23 }
 0x26e   :  { %v5585_v0 = vpop.eup %5584  ;;  %5598 = vrcp.f32 %v2741_v59 }
 0x26f   :  { %7775 = vst [vmem:[#allocation55_spill] sm:$0xff] %v6903_v11  ;;  %5600 = vpow2.f32 %v4436_v22  ;;  %5023 = vmatmul.mubr.msk.bf16.gmra.mrb[156].mxu1 %vm1932_vm0, %v6903_v11  ;;  %3082 = vrot.lane.b32.xlu0 %v5585_v0, %s6132_s2 }
 0x270   :  { %5602 = vrcp.f32 %v2740_v47  ;;  %v5587_v40 = vpop.eup %5586 }
 0x271   :  { %v5589_v36 = vpop.eup %5588 }
 0x272   :  { %v4972_v13 = vpop.f32.mrb[104].mxu1  ;;  %v5591_v18 = vpop.eup %5590  ;;  %v2748_v6 = vadd.f32 1.0, %v5589_v36 }
 0x273   :  { %v6909_v28 = vadd.f32 %v4972_v13, %v6694_v42  ;;  %v2183_v57 = vpop.f32.mrb[105].mxu1  ;;  %3078 = vrot.lane.b32.xlu0 %v5587_v40, %s6132_s2  ;;  %v2746_v4 = vadd.f32 1.0, %v5591_v18 }
 0x274   :  { %v5593_v23 = vpop.eup %5592  ;;  %v6913_v59 = vadd.f32 %v6694_v42, %v2183_v57  ;;  %v4973_v34 = vpop.f32.mrb[106].mxu1  ;;  %5604 = vrcp.f32 %v2748_v6 }
 0x275   :  { %3084 = vrot.lane.b32.xlu1 %v5593_v23, %s6132_s2  ;;  %v4441_v47 = vmul.f32 -1.442695, %v6909_v28  ;;  %v2186_v53 = vpop.f32.mrb[107].mxu1  ;;  %v6918_v46 = vadd.f32 %v4973_v34, %v6694_v42 }
 0x276   :  { %v5595_v3 = vpop.eup %5594  ;;  %v4439_v30 = vmul.f32 -1.442695, %v6913_v59  ;;  %v6923_v0 = vadd.f32 %v6694_v42, %v2186_v53 }
 0x277   :  { %v5597_v48 = vpop.eup %5596  ;;  %3080 = vrot.lane.b32.xlu0 %v5595_v3, %s6132_s2  ;;  %5606 = vpow2.f32 %v4441_v47  ;;  %v4442_v18 = vmul.f32 -1.442695, %v6918_v46 }
 0x278   :  { %v5599_v22 = vpop.eup %5598  ;;  %v2749_v25 = vadd.f32 1.0, %v5597_v48  ;;  %5608 = vrcp.f32 %v2746_v4  ;;  %v4440_v6 = vmul.f32 -1.442695, %v6923_v0 }
 0x279   :  { %v5601_v40 = vpop.eup %5600  ;;  %3076 = vrot.lane.b32.xlu1 %v5599_v22, %s6132_s2 }
 0x27a   :  { %v5603_v36 = vpop.eup %5602  ;;  %5610 = vrcp.f32 %v2749_v25  ;;  %v2747_v13 = vadd.f32 1.0, %v5601_v40 }
 0x27b   :  { %5612 = vpow2.f32 %v4439_v30  ;;  %3074 = vrot.lane.b32.xlu0 %v5603_v36, %s6132_s2 }
 0x27c   :  { %5614 = vrcp.f32 %v2747_v13 }
 0x27d   :  { %5616 = vpow2.f32 %v4442_v18 }
 0x27e   :  { %v5605_v57 = vpop.eup %5604  ;;  %5618 = vpow2.f32 %v4440_v6 }
 0x27f   :  { %3090 = vrot.lane.b32.xlu0 %v5605_v57, %s6132_s2 }
 0x281   :  { %v5607_v23 = vpop.eup %5606 }
 0x282   :  { %v4976_v34 = vpop.f32.mrb[108].mxu1  ;;  %v5609_v4 = vpop.eup %5608  ;;  %v2752_v47 = vadd.f32 1.0, %v5607_v23 }
 0x283   :  { %v6931_v53 = vadd.f32 %v4976_v34, %v6694_v42  ;;  %v2199_v3 = vpop.f32.mrb[109].mxu1  ;;  %3086 = vrot.lane.b32.xlu0 %v5609_v4, %s6132_s2 }
 0x284   :  { %v5611_v48 = vpop.eup %5610  ;;  %v6934_v30 = vadd.f32 %v6694_v42, %v2199_v3  ;;  %v4977_v22 = vpop.f32.mrb[110].mxu1  ;;  %5620 = vrcp.f32 %v2752_v47 }
 0x285   :  { %v5613_v25 = vpop.eup %5612  ;;  %3092 = vrot.lane.b32.xlu1 %v5611_v48, %s6132_s2  ;;  %v4445_v40 = vmul.f32 -1.442695, %v6931_v53  ;;  %v2202_v36 = vpop.f32.mrb[111].mxu1  ;;  %v6941_v6 = vadd.f32 %v4977_v22, %v6694_v42 }
 0x286   :  { %v2750_v13 = vadd.f32 1.0, %v5613_v25  ;;  %v4443_v18 = vmul.f32 -1.442695, %v6934_v30  ;;  %v5615_v57 = vpop.eup %5614  ;;  %v6944_v34 = vadd.f32 %v6694_v42, %v2202_v36 }
 0x287   :  { %5622 = vpow2.f32 %v4445_v40  ;;  %v5617_v23 = vpop.eup %5616  ;;  %v4446_v3 = vmul.f32 -1.442695, %v6941_v6 }
 0x288   :  { %5624 = vrcp.f32 %v2750_v13  ;;  %v2753_v4 = vadd.f32 1.0, %v5617_v23  ;;  %v5619_v47 = vpop.eup %5618  ;;  %v4444_v25 = vmul.f32 -1.442695, %v6944_v34 }
 0x289   :  { %3088 = vrot.lane.b32.xlu1 %v5615_v57, %s6132_s2  ;;  %5626 = vpow2.f32 %v4443_v18  ;;  %v2751_v48 = vadd.f32 1.0, %v5619_v47 }
 0x28a   :  { %5628 = vrcp.f32 %v2753_v4 }
 0x28b   :  { %5630 = vpow2.f32 %v4446_v3 }
 0x28c   :  { %5632 = vrcp.f32 %v2751_v48 }
 0x28d   :  { %5634 = vpow2.f32 %v4444_v25 }
 0x28e   :  { %v5621_v22 = vpop.eup %5620 }
 0x28f   :  { %3098 = vrot.lane.b32.xlu0 %v5621_v22, %s6132_s2 }
 0x291   :  { %v5623_v40 = vpop.eup %5622 }
 0x292   :  { %v2756_v36 = vadd.f32 1.0, %v5623_v40  ;;  %v4980_v13 = vpop.f32.mrb[112].mxu1  ;;  %v5625_v23 = vpop.eup %5624 }
 0x293   :  { %v6951_v57 = vadd.f32 %v4980_v13, %v6694_v42  ;;  %v2215_v18 = vpop.f32.mrb[113].mxu1  ;;  %v5627_v29 = vpop.eup %5626  ;;  %3094 = vrot.lane.b32.xlu0 %v5625_v23, %s6132_s2 }
 0x294   :  { %5636 = vrcp.f32 %v2756_v36  ;;  %v6954_v4 = vadd.f32 %v6694_v42, %v2215_v18  ;;  %v4981_v47 = vpop.f32.mrb[114].mxu1  ;;  %v5629_v3 = vpop.eup %5628  ;;  %v2754_v48 = vadd.f32 1.0, %v5627_v29 }
 0x295   :  { %v4449_v25 = vmul.f32 -1.442695, %v6951_v57  ;;  %v6959_v22 = vadd.f32 %v4981_v47, %v6694_v42  ;;  %v2218_v40 = vpop.f32.mrb[115].mxu1  ;;  %5638 = vtanh.f32 %v6698_v62  ;;  %3100 = vrot.lane.b32.xlu1 %v5629_v3, %s6132_s2  ;;  %v5631_v23 = vpop.eup %5630 }
 0x296   :  { %v4447_v36 = vmul.f32 -1.442695, %v6954_v4  ;;  %5640 = vrcp.f32 %v2754_v48  ;;  %v6965_v13 = vadd.f32 %v6694_v42, %v2218_v40  ;;  %v5633_v18 = vpop.eup %5632  ;;  %v2757_v52 = vadd.f32 1.0, %v5631_v23 }
 0x297   :  { %5642 = vpow2.f32 %v4449_v25  ;;  %v4450_v29 = vmul.f32 -1.442695, %v6959_v22  ;;  %v5635_v47 = vpop.eup %5634 }
 0x298   :  { %5644 = vpow2.f32 %v4447_v36  ;;  %v2755_v62 = vadd.f32 1.0, %v5635_v47  ;;  %v4448_v3 = vmul.f32 -1.442695, %v6965_v13 }
 0x299   :  { %5646 = vtanh.f32 %v6705_v61  ;;  %3096 = vrot.lane.b32.xlu1 %v5633_v18, %s6132_s2 }
 0x29a   :  { %5648 = vrcp.f32 %v2757_v52 }
 0x29b   :  { %5650 = vpow2.f32 %v4450_v29 }
 0x29c   :  { %5652 = vtanh.f32 %v6701_v26 }
 0x29d   :  { %5654 = vrcp.f32 %v2755_v62 }
 0x29e   :  { %v5637_v48 = vpop.eup %5636  ;;  %5656 = vpow2.f32 %v4448_v3 }
 0x29f   :  { %3106 = vrot.lane.b32.xlu0 %v5637_v48, %s6132_s2  ;;  %v5639_v25 = vpop.eup %5638  ;;  %5658 = vtanh.f32 %v6711_v37 }
 0x2a0   :  { %v5641_v40 = vpop.eup %5640 }
 0x2a1   :  { %v5643_v36 = vpop.eup %5642  ;;  %v3051_v7 = vpop.permute.xlu0 %3050 }
 0x2a2   :  { %v6974_v61 = vpop.f32.mrb[116].mxu1  ;;  %v3047_v23 = vpop.permute.xlu1 %3046  ;;  %v2760_v18 = vadd.f32 1.0, %v5643_v36  ;;  %v6983_v50 = vmul.f32 %v5639_v25, %v3051_v7 }
 0x2a3   :  { %v5645_v52 = vpop.eup %5644  ;;  %v2231_v47 = vpop.f32.mrb[117].mxu1  ;;  %3102 = vrot.lane.b32.xlu0 %v5641_v40, %s6132_s2 }
 0x2a4   :  { %v5647_v29 = vpop.eup %5646  ;;  %v2758_v26 = vadd.f32 1.0, %v5645_v52  ;;  %v6978_v62 = vadd.f32 %v6694_v42, %v2231_v47  ;;  %v6980_v3 = vpop.f32.mrb[118].mxu1  ;;  %5660 = vrcp.f32 %v2760_v18 }
 0x2a5   :  { %v5649_v48 = vpop.eup %5648  ;;  %v2234_v37 = vpop.f32.mrb[119].mxu1 }
 0x2a6   :  { %v5651_v31 = vpop.eup %5650  ;;  %3108 = vrot.lane.b32.xlu1 %v5649_v48, %s6132_s2  ;;  %v3053_v24 = vpop.permute.xlu1 %3052  ;;  %v4451_v40 = vmul.f32 -1.442695, %v6978_v62  ;;  %5662 = vrcp.f32 %v2758_v26  ;;  %v6989_v47 = vadd.f32 %v6694_v42, %v2234_v37 }
 0x2a7   :  { %v5653_v33 = vpop.eup %5652  ;;  %v2761_v36 = vadd.f32 1.0, %v5651_v31  ;;  %v6986_v52 = vmul.f32 %v5647_v29, %v3053_v24 }
 0x2a8   :  { %v5655_v5 = vpop.eup %5654  ;;  %v6995_v25 = vmul.f32 %v5653_v33, %v3047_v23  ;;  %v4452_v42 = vmul.f32 -1.442695, %v6989_v47 }
 0x2a9   :  { %v5657_v20 = vpop.eup %5656  ;;  %5664 = vrcp.f32 %v2761_v36 }
 0x2aa   :  { %v5659_v48 = vpop.eup %5658  ;;  %5666 = vtanh.f32 %v6730_v45  ;;  %v2759_v31 = vadd.f32 1.0, %v5657_v20  ;;  %3104 = vrot.lane.b32.xlu1 %v5655_v5, %s6132_s2  ;;  %v3049_v7 = vpop.permute.xlu1 %3048 }
 0x2ab   :  { %5668 = vpow2.f32 %v4451_v40  ;;  %v6997_v24 = vmul.f32 %v5659_v48, %v3049_v7 }
 0x2ac   :  { %5670 = vtanh.f32 %v6737_v44 }
 0x2ad   :  { %5672 = vrcp.f32 %v2759_v31 }
 0x2ae   :  { %v5661_v26 = vpop.eup %5660  ;;  %5674 = vtanh.f32 %v6733_v9 }
 0x2af   :  { %5676 = vpow2.f32 %v4452_v42  ;;  %3114 = vrot.lane.b32.xlu0 %v5661_v26, %s6132_s2 }
 0x2b0   :  { %5678 = vtanh.f32 %v6743_v51  ;;  %v5663_v33 = vpop.eup %5662 }
 0x2b1   :  { %v3059_v45 = vpop.permute.xlu0 %3058  ;;  %5680 = vtanh.f32 %v6769_v58 }
 0x2b2   :  { %v7006_v5 = vpop.f32.mrb[120].mxu1 }
 0x2b3   :  { %v5665_v20 = vpop.eup %5664  ;;  %v7008_v44 = vpop.f32.mrb[121].mxu1  ;;  %3110 = vrot.lane.b32.xlu0 %v5663_v33, %s6132_s2 }
 0x2b4   :  { %v5667_v23 = vpop.eup %5666  ;;  %3116 = vrot.lane.b32.xlu1 %v5665_v20, %s6132_s2  ;;  %v7012_v37 = vpop.f32.mrb[122].mxu1 }
 0x2b5   :  { %v5669_v9 = vpop.eup %5668  ;;  %v7014_v36 = vpop.f32.mrb[123].mxu1  ;;  %v7017_v7 = vmul.f32 %v5667_v23, %v3059_v45 }
 0x2b6   :  { %v5671_v40 = vpop.eup %5670  ;;  %v2762_v48 = vadd.f32 1.0, %v5669_v9  ;;  %v3055_v33 = vpop.permute.xlu0 %3054 }
 0x2b7   :  { %v5673_v51 = vpop.eup %5672  ;;  %v3061_v31 = vpop.permute.xlu1 %3060 }
 0x2b8   :  { %5682 = vrcp.f32 %v2762_v48  ;;  %v7019_v42 = vmul.f32 %v5671_v40, %v3061_v31  ;;  %3112 = vrot.lane.b32.xlu1 %v5673_v51, %s6132_s2  ;;  %v5675_v26 = vpop.eup %5674 }
 0x2b9   :  { %v5677_v20 = vpop.eup %5676  ;;  %v7024_v38 = vmul.f32 %v5675_v26, %v3055_v33 }
 0x2ba   :  { %v5679_v29 = vpop.eup %5678  ;;  %v2763_v11 = vadd.f32 1.0, %v5677_v20 }
 0x2bb   :  { %v3057_v9 = vpop.permute.xlu1 %3056  ;;  %v5681_v23 = vpop.eup %5680 }
 0x2bc   :  { %v7026_v58 = vmul.f32 %v5679_v29, %v3057_v9  ;;  %5684 = vrcp.f32 %v2763_v11 }
 0x2bd   :  { %5686 = vtanh.f32 %v6780_v17 }
 0x2be   :  { %5688 = vtanh.f32 %v6772_v56 }
 0x2bf   :  { %5690 = vtanh.f32 %v6788_v49 }
 0x2c0   :  { %5692 = vtanh.f32 %v6806_v15 }
 0x2c1   :  { %v3067_v40 = vpop.permute.xlu0 %3066  ;;  %5694 = vtanh.f32 %v6816_v43 }
 0x2c2   :  { %v5683_v48 = vpop.eup %5682  ;;  %v7033_v51 = vmul.f32 %v5681_v23, %v3067_v40  ;;  %v7035_v31 = vpop.f32.mrb[124].mxu1 }
 0x2c3   :  { %7776 = vst [vmem:[#allocation56_spill] sm:$0xff] %v7035_v31  ;;  %3118 = vrot.lane.b32.xlu0 %v5683_v48, %s6132_s2  ;;  %v7038_v29 = vpop.f32.mrb[125].mxu1 }
 0x2c4   :  { %v7040_v11 = vpop.f32.mrb[126].mxu1 }
 0x2c5   :  { %7777 = vst [vmem:[#allocation57_spill] sm:$0xff] %v7040_v11  ;;  %v7042_v17 = vpop.f32.mrb[127].mxu1  ;;  %v3063_v20 = vpop.permute.xlu0 %3062 }
 0x2c6   :  { %v5685_v26 = vpop.eup %5684 }
 0x2c7   :  { %v5687_v33 = vpop.eup %5686  ;;  %3120 = vrot.lane.b32.xlu1 %v5685_v26, %s6132_s2 }
 0x2c8   :  { %v3069_v56 = vpop.permute.xlu1 %3068  ;;  %v5689_v9 = vpop.eup %5688 }
 0x2c9   :  { %v7046_v49 = vmul.f32 %v5687_v33, %v3069_v56  ;;  %v5691_v40 = vpop.eup %5690  ;;  %v7050_v18 = vmul.f32 %v5689_v9, %v3063_v20  ;;  %v7060_v33 = vld [vmem:[%s7681_s4] ss:$0 sm:$0xff] }
 0x2ca   :  { %v5693_v15 = vpop.eup %5692 }
 0x2cb   :  { %v5695_v21 = vpop.eup %5694 }
 0x2cc   :  { %v3065_v48 = vpop.permute.xlu1 %3064 }
 0x2cd   :  { %v7052_v45 = vmul.f32 %v5691_v40, %v3065_v48 }
 0x2d2   :  { %v4996_v41 = vpop.f32.mrb[128].mxu1 }
 0x2d3   :  { %v7063_v56 = vadd.f32 %v7060_v33, %v4996_v41  ;;  %v3071_v23 = vpop.permute.xlu0 %3070  ;;  %v2279_v20 = vpop.f32.mrb[129].mxu1 }
 0x2d4   :  { %v7065_v9 = vmul.f32 %v5693_v15, %v3071_v23  ;;  %v7068_v40 = vadd.f32 %v7060_v33, %v2279_v20  ;;  %v4997_v43 = vpop.f32.mrb[130].mxu1 }
 0x2d5   :  { %7778 = vst [vmem:[#allocation58_spill] sm:$0xff] %v7063_v56  ;;  %v4465_v48 = vmul.f32 -1.442695, %v7063_v56  ;;  %v2282_v26 = vpop.f32.mrb[131].mxu1  ;;  %v7072_v12 = vadd.f32 %v7060_v33, %v4997_v43 }
 0x2d6   :  { %7779 = vst [vmem:[#allocation59_spill] sm:$0xff] %v7068_v40  ;;  %v4463_v54 = vmul.f32 -1.442695, %v7068_v40  ;;  %v7076_v41 = vadd.f32 %v7060_v33, %v2282_v26 }
 0x2d7   :  { %7780 = vst [vmem:[#allocation60_spill] sm:$0xff] %v7072_v12  ;;  %5696 = vpow2.f32 %v4465_v48  ;;  %v4466_v23 = vmul.f32 -1.442695, %v7072_v12 }
 0x2d8   :  { %7781 = vst [vmem:[#allocation61_spill] sm:$0xff] %v7076_v41  ;;  %5698 = vtanh.f32 %v6837_v32  ;;  %v4464_v43 = vmul.f32 -1.442695, %v7076_v41 }
 0x2d9   :  { %v3073_v60 = vpop.permute.xlu1 %3072  ;;  %5700 = vpow2.f32 %v4463_v54 }
 0x2da   :  { %v7080_v15 = vmul.f32 %v5695_v21, %v3073_v60  ;;  %5702 = vtanh.f32 %v6841_v10 }
 0x2db   :  { %5704 = vtanh.f32 %v6855_v8 }
 0x2dc   :  { %5706 = vpow2.f32 %v4466_v23 }
 0x2dd   :  { %5708 = vtanh.f32 %v6859_v1 }
 0x2de   :  { %5710 = vpow2.f32 %v4464_v43 }
 0x2df   :  { %5712 = vtanh.f32 %v6845_v19 }
 0x2e0   :  { %5714 = vtanh.f32 %v6834_v35 }
 0x2e1   :  { %v3083_v26 = vpop.permute.xlu0 %3082  ;;  %v5697_v32 = vpop.eup %5696 }
 0x2e2   :  { %v5000_v60 = vpop.f32.mrb[132].mxu1  ;;  %v2776_v21 = vadd.f32 1.0, %v5697_v32  ;;  %v5699_v48 = vpop.eup %5698 }
 0x2e3   :  { %v7091_v54 = vadd.f32 %v7060_v33, %v5000_v60  ;;  %v2295_v10 = vpop.f32.mrb[133].mxu1  ;;  %v5701_v23 = vpop.eup %5700  ;;  %v3304_v41 = vmul.f32 %v5699_v48, %v3083_v26 }
 0x2e4   :  { %v7094_v20 = vadd.f32 %v7060_v33, %v2295_v10  ;;  %v5001_v8 = vpop.f32.mrb[134].mxu1  ;;  %5716 = vrcp.f32 %v2776_v21  ;;  %v5703_v19 = vpop.eup %5702  ;;  %v2774_v35 = vadd.f32 1.0, %v5701_v23 }
 0x2e5   :  { %7782 = vst [vmem:[#allocation62_spill] sm:$0xff] %v7091_v54  ;;  %v4469_v1 = vmul.f32 -1.442695, %v7091_v54  ;;  %v3079_v43 = vpop.permute.xlu0 %3078  ;;  %v2298_v27 = vpop.f32.mrb[135].mxu1  ;;  %5718 = vtanh.f32 %v6879_v2  ;;  %v7100_v60 = vadd.f32 %v7060_v33, %v5001_v8 }
 0x2e6   :  { %7783 = vst [vmem:[#allocation63_spill] sm:$0xff] %v7094_v20  ;;  %v4467_v32 = vmul.f32 -1.442695, %v7094_v20  ;;  %v5705_v55 = vpop.eup %5704  ;;  %v7103_v21 = vadd.f32 %v7060_v33, %v2298_v27  ;;  %v3302_v2 = vmul.f32 %v5703_v19, %v3079_v43  ;;  %v7807_v27 = vld [vmem:[#allocation25_spill] sm:$0xff] }
 0x2e7   :  { %5720 = vpow2.f32 %v4469_v1  ;;  %v3085_v10 = vpop.permute.xlu1 %3084  ;;  %v5707_v39 = vpop.eup %5706  ;;  %v4470_v8 = vmul.f32 -1.442695, %v7100_v60 }
 0x2e8   :  { %v3305_v40 = vmul.f32 %v5705_v55, %v3085_v10  ;;  %v5709_v54 = vpop.eup %5708  ;;  %5722 = vrcp.f32 %v2774_v35  ;;  %v2777_v12 = vadd.f32 1.0, %v5707_v39  ;;  %v4468_v39 = vmul.f32 -1.442695, %v7103_v21 }
 0x2e9   :  { %v3081_v23 = vpop.permute.xlu0 %3080  ;;  %v5711_v56 = vpop.eup %5710  ;;  %5724 = vpow2.f32 %v4467_v32 }
 0x2ea   :  { %v5102_v20 = vpack.c.bf16 %v3305_v40, %v3304_v41  ;;  %v3303_v11 = vmul.f32 %v5709_v54, %v3081_v23  ;;  %5726 = vrcp.f32 %v2777_v12  ;;  %v2775_v1 = vadd.f32 1.0, %v5711_v56  ;;  %v5713_v55 = vpop.eup %5712 }
 0x2eb   :  { %v3077_v31 = vpop.permute.xlu1 %3076  ;;  %5728 = vtanh.f32 %v6882_v63  ;;  %v5715_v48 = vpop.eup %5714  ;;  %v7786_v63 = vpack.c.bf16 %v6997_v24, %v6995_v25 }
 0x2ec   :  { %v5096_v26 = vpack.c.bf16 %v3303_v11, %v3302_v2  ;;  %5730 = vtanh.f32 %v6890_v16  ;;  %v7115_v12 = vmul.f32 %v5715_v48, %v3077_v31 }
 0x2ed   :  { %v3075_v40 = vpop.permute.xlu0 %3074  ;;  %5732 = vpow2.f32 %v4470_v8 }
 0x2ee   :  { %v7117_v56 = vmul.f32 %v5713_v55, %v3075_v40  ;;  %5098 = vmatprep.subr.msk.bf16.mxu1 %vm7108_vm2, %v5096_v26  ;;  %v5717_v41 = vpop.eup %5716  ;;  %5734 = vrcp.f32 %v2775_v1  ;;  %v7787_v1 = vpack.c.bf16 %v6986_v52, %v6983_v50 }
 0x2ef   :  { %5101 = vmatpush3.bf16.xpose.msk.msra.mxu1 %vm7108_vm2, %v7786_v63  ;;  %v5719_v11 = vpop.eup %5718  ;;  %5736 = vpow2.f32 %v4468_v39  ;;  %3146 = vrot.lane.b32.xlu0 %v5717_v41, %s6132_s2 }
 0x2f0   :  { %v5141_v16 = vpack.c.bf16 %v7115_v12, %v7117_v56  ;;  %5104 = vmatprep.subr.msk.bf16.mxu1 %vm7108_vm2, %v5102_v20  ;;  %5738 = vtanh.f32 %v6894_v14 }
 0x2f1   :  { %v5721_v31 = vpop.eup %5720  ;;  %v3091_v24 = vpop.permute.xlu0 %3090 }
 0x2f2   :  { %v2780_v54 = vadd.f32 1.0, %v5721_v31  ;;  %v7132_v43 = vpop.f32.mrb[136].mxu1  ;;  %v5723_v25 = vpop.eup %5722  ;;  %v3308_v39 = vmul.f32 %v5719_v11, %v3091_v24  ;;  %v7788_v24 = vpack.c.bf16 %v7026_v58, %v7024_v38 }
 0x2f3   :  { %v7134_v19 = vpop.f32.mrb[137].mxu1  ;;  %v5725_v35 = vpop.eup %5724  ;;  %3142 = vrot.lane.b32.xlu0 %v5723_v25, %s6132_s2 }
 0x2f4   :  { %5740 = vrcp.f32 %v2780_v54  ;;  %v7137_v32 = vpop.f32.mrb[138].mxu1  ;;  %v5727_v10 = vpop.eup %5726  ;;  %v2778_v2 = vadd.f32 1.0, %v5725_v35 }
 0x2f5   :  { %v7139_v23 = vpop.f32.mrb[139].mxu1  ;;  %v5729_v20 = vpop.eup %5728  ;;  %3148 = vrot.lane.b32.xlu1 %v5727_v10, %s6132_s2 }
 0x2f6   :  { %v5731_v14 = vpop.eup %5730  ;;  %5742 = vrcp.f32 %v2778_v2  ;;  %v3087_v41 = vpop.permute.xlu0 %3086 }
 0x2f7   :  { %v3093_v8 = vpop.permute.xlu1 %3092  ;;  %5107 = vmatpush3.bf16.xpose.msk.msra.mxu1 %vm7108_vm2, %v7787_v1  ;;  %v5733_v55 = vpop.eup %5732  ;;  %v3306_v10 = vmul.f32 %v5729_v20, %v3087_v41 }
 0x2f8   :  { %v3309_v26 = vmul.f32 %v5731_v14, %v3093_v8  ;;  %v5735_v48 = vpop.eup %5734  ;;  %v2781_v40 = vadd.f32 1.0, %v5733_v55 }
 0x2f9   :  { %v5737_v63 = vpop.eup %5736  ;;  %3144 = vrot.lane.b32.xlu1 %v5735_v48, %s6132_s2 }
 0x2fa   :  { %v5114_v31 = vpack.c.bf16 %v3309_v26, %v3308_v39  ;;  %v5739_v54 = vpop.eup %5738  ;;  %5744 = vrcp.f32 %v2781_v40  ;;  %v2779_v25 = vadd.f32 1.0, %v5737_v63  ;;  %v7789_v26 = vpack.c.bf16 %v7019_v42, %v7017_v7 }
 0x2fb   :  { %v3089_v35 = vpop.permute.xlu1 %3088  ;;  %5746 = vtanh.f32 %v6909_v28 }
 0x2fc   :  { %v3307_v50 = vmul.f32 %v5739_v54, %v3089_v35  ;;  %5748 = vtanh.f32 %v6918_v46 }
 0x2fd   :  { %5750 = vrcp.f32 %v2779_v25 }
 0x2fe   :  { %v5741_v52 = vpop.eup %5740  ;;  %v5108_v11 = vpack.c.bf16 %v3307_v50, %v3306_v10  ;;  %5752 = vtanh.f32 %v6913_v59 }
 0x2ff   :  { %3154 = vrot.lane.b32.xlu0 %v5741_v52, %s6132_s2  ;;  %5754 = vtanh.f32 %v6923_v0 }
 0x300   :  { %5110 = vmatprep.subr.msk.bf16.mxu1 %vm7108_vm2, %v5108_v11  ;;  %v5743_v2 = vpop.eup %5742  ;;  %5756 = vtanh.f32 %v6931_v53 }
 0x301   :  { %5113 = vmatpush3.bf16.xpose.msk.msra.mxu1 %vm7108_vm2, %v7788_v24  ;;  %v3099_v46 = vpop.permute.xlu0 %3098  ;;  %5758 = vtanh.f32 %v6941_v6 }
 0x302   :  { %5116 = vmatprep.subr.msk.bf16.mxu1 %vm7108_vm2, %v5114_v31  ;;  %v7163_v28 = vpop.f32.mrb[140].mxu1  ;;  %v7180_v31 = vadd.f32 %v7060_v33, %v6974_v61  ;;  %5760 = vtanh.f32 %v6934_v30  ;;  %v7790_v61 = vpack.c.bf16 %v7052_v45, %v7050_v18  ;;  %v7201_v30 = vadd.f32 %v7060_v33, %v7134_v19 }
 0x303   :  { %3150 = vrot.lane.b32.xlu0 %v5743_v2, %s6132_s2  ;;  %v7165_v20 = vpop.f32.mrb[141].mxu1  ;;  %5762 = vtanh.f32 %v6944_v34 }
 0x304   :  { %v5745_v59 = vpop.eup %5744  ;;  %v7167_v14 = vpop.f32.mrb[142].mxu1  ;;  %v4453_v42 = vmul.f32 -1.442695, %v7180_v31 }
 0x305   :  { %3156 = vrot.lane.b32.xlu1 %v5745_v59, %s6132_s2  ;;  %v7170_v38 = vpop.f32.mrb[143].mxu1  ;;  %v5747_v58 = vpop.eup %5746  ;;  %v4471_v59 = vmul.f32 -1.442695, %v7201_v30 }
 0x306   :  { %v5749_v8 = vpop.eup %5748  ;;  %v3312_v55 = vmul.f32 %v5747_v58, %v3099_v46  ;;  %v3095_v48 = vpop.permute.xlu0 %3094  ;;  %5764 = vpow2.f32 %v4453_v42 }
 0x307   :  { %v3101_v0 = vpop.permute.xlu1 %3100  ;;  %v5751_v1 = vpop.eup %5750 }
 0x308   :  { %v3313_v39 = vmul.f32 %v5749_v8, %v3101_v0  ;;  %v5753_v40 = vpop.eup %5752 }
 0x309   :  { %5119 = vmatpush3.bf16.xpose.msk.msra.mxu1 %vm7108_vm2, %v7789_v26  ;;  %3152 = vrot.lane.b32.xlu1 %v5751_v1, %s6132_s2  ;;  %v5755_v63 = vpop.eup %5754  ;;  %v3310_v25 = vmul.f32 %v5753_v40, %v3095_v48  ;;  %v7218_v1 = vadd.f32 %v7060_v33, %v6980_v3  ;;  %v7791_v26 = vpack.c.bf16 %v7046_v49, %v7033_v51 }
 0x30a   :  { %v5126_v41 = vpack.c.bf16 %v3313_v39, %v3312_v55  ;;  %v5757_v2 = vpop.eup %5756  ;;  %v7232_v51 = vadd.f32 %v7060_v33, %v7139_v23 }
 0x30b   :  { %v3097_v54 = vpop.permute.xlu1 %3096  ;;  %v5759_v46 = vpop.eup %5758 }
 0x30c   :  { %v3311_v35 = vmul.f32 %v5755_v63, %v3097_v54  ;;  %v5761_v48 = vpop.eup %5760  ;;  %v4472_v23 = vmul.f32 -1.442695, %v7232_v51 }
 0x30d   :  { %v5763_v40 = vpop.eup %5762 }
 0x30e   :  { %v5120_v7 = vpack.c.bf16 %v3311_v35, %v3310_v25  ;;  %v4454_v35 = vmul.f32 -1.442695, %v7218_v1 }
 0x310   :  { %5122 = vmatprep.subr.msk.bf16.mxu1 %vm7108_vm2, %v5120_v7  ;;  %v5765_v25 = vpop.eup %5764 }
 0x311   :  { %5125 = vmatpush3.bf16.xpose.msk.msra.mxu1 %vm7108_vm2, %v7790_v61  ;;  %v3107_v34 = vpop.permute.xlu0 %3106  ;;  %v2764_v7 = vadd.f32 1.0, %v5765_v25  ;;  %v7279_v25 = vadd.f32 %v7060_v33, %v7014_v36 }
 0x312   :  { %v5012_v53 = vpop.f32.mrb[144].mxu1  ;;  %5128 = vmatprep.subr.msk.bf16.mxu1 %vm7108_vm2, %v5126_v41  ;;  %v3316_v8 = vmul.f32 %v5757_v2, %v3107_v34 }
 0x313   :  { %v7197_v6 = vadd.f32 %v7060_v33, %v5012_v53  ;;  %v2343_v10 = vpop.f32.mrb[145].mxu1 }
 0x314   :  { %v7204_v50 = vadd.f32 %v7060_v33, %v2343_v10  ;;  %v5013_v18 = vpop.f32.mrb[146].mxu1  ;;  %v7253_v10 = vadd.f32 %v7060_v33, %v7132_v43 }
 0x315   :  { %v4481_v45 = vmul.f32 -1.442695, %v7197_v6  ;;  %v2346_v52 = vpop.f32.mrb[147].mxu1  ;;  %v7209_v24 = vadd.f32 %v7060_v33, %v5013_v18  ;;  %v3103_v39 = vpop.permute.xlu0 %3102 }
 0x316   :  { %v4479_v11 = vmul.f32 -1.442695, %v7204_v50  ;;  %v7213_v58 = vadd.f32 %v7060_v33, %v2346_v52  ;;  %v3314_v63 = vmul.f32 %v5761_v48, %v3103_v39 }
 0x317   :  { %5766 = vpow2.f32 %v4481_v45  ;;  %v4482_v55 = vmul.f32 -1.442695, %v7209_v24 }
 0x318   :  { %v3109_v19 = vpop.permute.xlu1 %3108  ;;  %5768 = vtanh.f32 %v6951_v57  ;;  %v4480_v3 = vmul.f32 -1.442695, %v7213_v58 }
 0x319   :  { %v3317_v0 = vmul.f32 %v5759_v46, %v3109_v19  ;;  %5770 = vpow2.f32 %v4479_v11  ;;  %5131 = vmatpush3.bf16.xpose.msk.msra.mxu1 %vm7108_vm2, %v7791_v26  ;;  %v4473_v26 = vmul.f32 -1.442695, %v7253_v10 }
 0x31a   :  { %5772 = vtanh.f32 %v6959_v22 }
 0x31b   :  { %v5138_v57 = vpack.c.bf16 %v3317_v0, %v3316_v8  ;;  %5774 = vpow2.f32 %v4471_v59 }
 0x31c   :  { %v3105_v41 = vpop.permute.xlu1 %3104  ;;  %5776 = vtanh.f32 %v6954_v4  ;;  %v7238_v4 = vadd.f32 %v7060_v33, %v7008_v44 }
 0x31d   :  { %v3315_v54 = vmul.f32 %v5763_v40, %v3105_v41  ;;  %5778 = vpow2.f32 %v4482_v55 }
 0x31e   :  { %5780 = vtanh.f32 %v6965_v13  ;;  %v7792_v13 = vpack.c.bf16 %v7080_v15, %v7065_v9  ;;  %v4455_v18 = vmul.f32 -1.442695, %v7238_v4 }
 0x31f   :  { %v5132_v22 = vpack.c.bf16 %v3315_v54, %v3314_v63  ;;  %5782 = vpow2.f32 %v4480_v3 }
 0x320   :  { %5784 = vtanh.f32 %v6978_v62 }
 0x321   :  { %v5767_v49 = vpop.eup %5766  ;;  %5134 = vmatprep.subr.msk.bf16.mxu1 %vm7108_vm2, %v5132_v22  ;;  %5786 = vpow2.f32 %v4454_v35  ;;  %v3115_v61 = vpop.permute.xlu0 %3114 }
 0x322   :  { %v2792_v42 = vadd.f32 1.0, %v5767_v49  ;;  %5137 = vmatpush3.bf16.xpose.msk.msra.mxu1 %vm7108_vm2, %v7792_v13  ;;  %v5769_v53 = vpop.eup %5768  ;;  %5788 = vtanh.f32 %v6989_v47  ;;  %v7295_v13 = vadd.f32 %v7060_v33, %v7006_v5 }
 0x323   :  { %5140 = vmatprep.subr.msk.bf16.mxu1 %vm7108_vm2, %v5138_v57  ;;  %v5016_v62 = vpop.f32.mrb[148].mxu1  ;;  %v5771_v44 = vpop.eup %5770  ;;  %v7266_v19 = vmul.f32 %v5769_v53, %v3115_v61  ;;  %v4456_v53 = vmul.f32 -1.442695, %v7279_v25 }
 0x324   :  { %5790 = vrcp.f32 %v2792_v42  ;;  %v7256_v34 = vadd.f32 %v7060_v33, %v5016_v62  ;;  %v2359_v9 = vpop.f32.mrb[149].mxu1  ;;  %v5773_v15 = vpop.eup %5772  ;;  %v2790_v45 = vadd.f32 1.0, %v5771_v44  ;;  %v7305_v62 = vadd.f32 %v7060_v33, %v7137_v32 }
 0x325   :  { %5792 = vrcp.f32 %v2764_v7  ;;  %v7260_v47 = vadd.f32 %v7060_v33, %v2359_v9  ;;  %v5017_v52 = vpop.f32.mrb[150].mxu1  ;;  %v5775_v11 = vpop.eup %5774  ;;  %v7311_v9 = vld [vmem:[%s7682_s5] sm:$0x1]  ;;  %s6138_s5 = smov [#allocation7]  }
 0x326   :  { %5794 = vpow2.f32 %v4472_v23  ;;  %v4485_v2 = vmul.f32 -1.442695, %v7256_v34  ;;  %v3117_v43 = vpop.permute.xlu1 %3116  ;;  %v7264_v46 = vadd.f32 %v7060_v33, %v5017_v52  ;;  %v5777_v59 = vpop.eup %5776  ;;  %v2782_v41 = vadd.f32 1.0, %v5775_v11  ;;  %4702 = vmatprep.mubr.msk.f32.mxu1 %vm3377_vm1, %v7311_v9  ;;  %4736 = vmatprep.mubr.msk.f32.mxu0 %vm3377_vm1, %v7311_v9  ;;  %s4185_s25 = sshll.u32 %s6138_s5, 4  ;;  %s4186_s25 = int_to_ptr.vmem [resolvable:$true] %s4185_s25 }
 0x327   :  { %5796 = vrcp.f32 %v2790_v45  ;;  %v4483_v8 = vmul.f32 -1.442695, %v7260_v47  ;;  %v7269_v0 = vmul.f32 %v5773_v15, %v3117_v43  ;;  %v2362_v55 = vpop.f32.mrb[151].mxu1  ;;  %v5779_v39 = vpop.eup %5778  ;;  %v4474_v52 = vmul.f32 -1.442695, %v7305_v62  ;;  %s6032_s28 = scalar_lea.vmem %s4186_s25, 16  ;;  %p6037_p9 = scmp.lt.s32.totalorder %s4186_s25, %s4186_s25 }
 0x328   :  { %5798 = vpow2.f32 %v4485_v2  ;;  %v3111_v48 = vpop.permute.xlu0 %3110  ;;  %v7273_v57 = vadd.f32 %v7060_v33, %v2362_v55  ;;  %v5781_v40 = vpop.eup %5780  ;;  %v2793_v3 = vadd.f32 1.0, %v5779_v39  ;;  %v4486_v35 = vmul.f32 -1.442695, %v7264_v46  ;;  %p6033_p8 = scmp.ne.s32.totalorder %s4186_s25, %s6032_s28  ;;  %s6036_s29 = scalar_lea.vmem %s4186_s25, 32 }
 0x329   :  { %5800 = vpow2.f32 %v4455_v18  ;;  %v5153_v63 = vpack.c.bf16 %v7269_v0, %v7266_v19  ;;  %v5783_v54 = vpop.eup %5782  ;;  %v7289_v23 = vmul.f32 %v5777_v59, %v3111_v48  ;;  %v4457_v18 = vmul.f32 -1.442695, %v7295_v13  ;;  %v3367_v19 = vld [vmem:[#allocation2] sm:$0x1]  ;;  %p6038_p10 = scmp.lt.s32.totalorder %s6036_s29, %s6032_s28 }
 0x32a   :  { %5802 = vpow2.f32 %v4483_v8  ;;  %v3113_v22 = vpop.permute.xlu1 %3112  ;;  %5143 = vmatpush3.bf16.xpose.msk.msra.mxu1 %vm7108_vm2, %v5141_v16  ;;  %v7287_v49 = vpop.eup %5784  ;;  %v2791_v7 = vadd.f32 1.0, %v5783_v54  ;;  %v4484_v61 = vmul.f32 -1.442695, %v7273_v57  ;;  %v7734_v2 = vmov 0.0|0.0  }
 0x32b   :  { %5804 = vrcp.f32 %v2793_v3  ;;  %v7291_v42 = vmul.f32 %v5781_v40, %v3113_v22  ;;  %v5787_v36 = vpop.eup %5786  ;;  %5192 = vmatprep.subr.bf16.mxu1 %v7734_v2  ;;  %v7331_v3 = vadd.f32 %v7060_v33, %v7165_v20  ;;  %v7794_v2 = vld [vmem:[#allocation57_spill] sm:$0xff]  ;;  %p6039_p11 = por %p6038_p10, %p6037_p9 }
 0x32c   :  { %5806 = vpow2.f32 %v4473_v26  ;;  %v7298_v12 = vpop.eup %5788  ;;  %v2765_v5 = vadd.f32 1.0, %v5787_v36 }
 0x32d   :  { %5808 = vrcp.f32 %v2782_v41  ;;  %v5147_v56 = vpack.c.bf16 %v7291_v42, %v7289_v23  ;;  %p6040_p12 = pnand %p6039_p11, %p6033_p8 }
 0x32e   :  { %v5791_v16 = vpop.eup %5790  ;;  %5810 = vpow2.f32 %v4486_v35 }
 0x32f   :  { %v5793_v44 = vpop.eup %5792  ;;  %5812 = vrcp.f32 %v2791_v7  ;;  %3178 = vrot.lane.b32.xlu0 %v5791_v16, %s6132_s2 }
 0x330   :  { %v5795_v15 = vpop.eup %5794  ;;  %5814 = vpow2.f32 %v4484_v61 }
 0x331   :  { %v5797_v32 = vpop.eup %5796  ;;  %4703 = vmatmul.mubr.msk.f32.vlgmr.msra.gmra.mrb[160].mxu1 %vm3377_vm1, %v7311_v9  ;;  %5816 = vpow2.f32 %v4456_v53  ;;  %v2783_v59 = vadd.f32 1.0, %v5795_v15 }
 0x332   :  { %v5799_v45 = vpop.eup %5798  ;;  %v5020_v11 = vpop.f32.mrb[152].mxu1  ;;  %5818 = vrcp.f32 %v2765_v5 }
 0x333   :  { %v5801_v43 = vpop.eup %5800  ;;  %v2796_v8 = vadd.f32 1.0, %v5799_v45  ;;  %v7323_v55 = vadd.f32 %v7060_v33, %v5020_v11  ;;  %v2375_v39 = vpop.f32.mrb[153].mxu1  ;;  %3174 = vrot.lane.b32.xlu0 %v5797_v32, %s6132_s2  ;;  %5820 = vpow2.f32 %v4457_v18  ;;  %v4475_v32 = vmul.f32 -1.442695, %v7331_v3 }
 0x334   :  { %v5803_v26 = vpop.eup %5802  ;;  %v7327_v48 = vadd.f32 %v7060_v33, %v2375_v39  ;;  %v5021_v40 = vpop.f32.mrb[154].mxu1  ;;  %v2766_v53 = vadd.f32 1.0, %v5801_v43  ;;  %v7346_v11 = vadd.f32 %v7060_v33, %v7012_v37  ;;  %v7359_v37 = vadd.f32 %v7060_v33, %v7038_v29 }
 0x335   :  { %v5805_v41 = vpop.eup %5804  ;;  %5822 = vrcp.f32 %v2796_v8  ;;  %v2794_v54 = vadd.f32 1.0, %v5803_v26  ;;  %v4489_v35 = vmul.f32 -1.442695, %v7323_v55  ;;  %v2378_v22 = vpop.f32.mrb[155].mxu1  ;;  %v7337_v61 = vadd.f32 %v7060_v33, %v5021_v40 }
 0x336   :  { %v5807_v7 = vpop.eup %5806  ;;  %5824 = vpow2.f32 %v4474_v52  ;;  %3180 = vrot.lane.b32.xlu1 %v5805_v41, %s6132_s2  ;;  %v4487_v36 = vmul.f32 -1.442695, %v7327_v48  ;;  %v3119_v5 = vpop.permute.xlu0 %3118  ;;  %v7341_v15 = vadd.f32 %v7060_v33, %v2378_v22  ;;  %v7367_v22 = vadd.f32 %v7060_v33, %v7170_v38 }
 0x337   :  { %v5809_v16 = vpop.eup %5808  ;;  %5826 = vrcp.f32 %v2783_v59  ;;  %3122 = vrot.lane.b32.xlu0 %v5793_v44, %s6132_s2  ;;  %v4490_v44 = vmul.f32 -1.442695, %v7337_v61  ;;  %v7351_v8 = vmul.f32 %v7287_v49, %v3119_v5  ;;  %v7799_v49 = vld [vmem:[#allocation62_spill] sm:$0xff] }
 0x338   :  { %v5811_v20 = vpop.eup %5810  ;;  %5828 = vpow2.f32 %v4489_v35  ;;  %v4488_v40 = vmul.f32 -1.442695, %v7341_v15  ;;  %v4476_v5 = vmul.f32 -1.442695, %v7367_v22 }
 0x339   :  { %v5813_v18 = vpop.eup %5812  ;;  %5830 = vrcp.f32 %v2794_v54  ;;  %v2797_v45 = vadd.f32 1.0, %v5811_v20  ;;  %v3121_v59 = vpop.permute.xlu1 %3120  ;;  %v2784_v54 = vadd.f32 1.0, %v5807_v7  ;;  %v4459_v7 = vmul.f32 -1.442695, %v7359_v37 }
 0x33a   :  { %v5815_v52 = vpop.eup %5814  ;;  %5832 = vpow2.f32 %v4487_v36  ;;  %3176 = vrot.lane.b32.xlu1 %v5813_v18, %s6132_s2  ;;  %v7354_v39 = vmul.f32 %v7298_v12, %v3121_v59  ;;  %v4458_v12 = vmul.f32 -1.442695, %v7346_v11  ;;  %v7373_v20 = vadd.f32 %v7060_v33, %v7042_v17 }
 0x33b   :  { %5834 = vrcp.f32 %v2797_v45  ;;  %v2795_v43 = vadd.f32 1.0, %v5815_v52  ;;  %3158 = vrot.lane.b32.xlu0 %v5809_v16, %s6132_s2  ;;  %v5817_v26 = vpop.eup %5816 }
 0x33c   :  { %5836 = vrcp.f32 %v2766_v53  ;;  %v5819_v41 = vpop.eup %5818  ;;  %v2767_v36 = vadd.f32 1.0, %v5817_v26  ;;  %v4460_v17 = vmul.f32 -1.442695, %v7373_v20 }
 0x33d   :  { %5838 = vpow2.f32 %v4475_v32  ;;  %v5821_v35 = vpop.eup %5820 }
 0x33e   :  { %5840 = vpow2.f32 %v4490_v44  ;;  %3124 = vrot.lane.b32.xlu1 %v5819_v41, %s6132_s2 }
 0x33f   :  { %v5823_v29 = vpop.eup %5822  ;;  %5842 = vrcp.f32 %v2795_v43  ;;  %v7381_v43 = vadd.f32 %v7060_v33, %v7163_v28 }
 0x340   :  { %v5825_v16 = vpop.eup %5824  ;;  %5844 = vpow2.f32 %v4488_v40  ;;  %3186 = vrot.lane.b32.xlu0 %v5823_v29, %s6132_s2 }
 0x341   :  { %v5827_v53 = vpop.eup %5826  ;;  %5846 = vrcp.f32 %v2784_v54  ;;  %v2785_v45 = vadd.f32 1.0, %v5825_v16 }
 0x342   :  { %v5829_v38 = vpop.eup %5828  ;;  %5848 = vpow2.f32 %v4458_v12  ;;  %3160 = vrot.lane.b32.xlu1 %v5827_v53, %s6132_s2  ;;  %v5024_v18 = vpop.f32.mrb[156].mxu1  ;;  %v4477_v53 = vmul.f32 -1.442695, %v7381_v43 }
 0x343   :  { %v5831_v32 = vpop.eup %5830  ;;  %5850 = vrcp.f32 %v2767_v36  ;;  %v2800_v52 = vadd.f32 1.0, %v5829_v38  ;;  %v2391_v44 = vpop.f32.mrb[157].mxu1  ;;  %v7389_v36 = vadd.f32 %v7060_v33, %v5024_v18  ;;  %v7399_v18 = vadd.f32 %v7060_v33, %v7167_v14 }
 0x344   :  { %v5833_v59 = vpop.eup %5832  ;;  %5852 = vpow2.f32 %v4459_v7  ;;  %v7384_v26 = vadd.f32 %v7060_v33, %v2391_v44  ;;  %3182 = vrot.lane.b32.xlu0 %v5831_v32, %s6132_s2  ;;  %v5025_v40 = vpop.f32.mrb[158].mxu1 }
 0x345   :  { %v5835_v41 = vpop.eup %5834  ;;  %5854 = vrcp.f32 %v2800_v52  ;;  %v2798_v54 = vadd.f32 1.0, %v5833_v59  ;;  %v2394_v12 = vpop.f32.mrb[159].mxu1 }
 0x346   :  { %v5837_v29 = vpop.eup %5836  ;;  %5856 = vpow2.f32 %v4476_v5  ;;  %3188 = vrot.lane.b32.xlu1 %v5835_v41, %s6132_s2  ;;  %v4491_v28 = vmul.f32 -1.442695, %v7384_v26  ;;  %v7394_v38 = vadd.f32 %v7060_v33, %v2394_v12  ;;  %v2768_v5 = vadd.f32 1.0, %v5821_v35  ;;  %v7793_v12 = vld [vmem:[#allocation56_spill] sm:$0xff] }
 0x347   :  { %v5839_v16 = vpop.eup %5838  ;;  %5858 = vrcp.f32 %v2785_v45  ;;  %v4493_v45 = vmul.f32 -1.442695, %v7389_v36 }
 0x348   :  { %v5841_v7 = vpop.eup %5840  ;;  %5860 = vpow2.f32 %v4460_v17  ;;  %3126 = vrot.lane.b32.xlu0 %v5837_v29, %s6132_s2  ;;  %v7405_v29 = vadd.f32 %v7060_v33, %v7793_v12  ;;  %v4492_v35 = vmul.f32 -1.442695, %v7394_v38 }
 0x349   :  { %v5843_v32 = vpop.eup %5842  ;;  %5862 = vrcp.f32 %v2798_v54  ;;  %v2801_v52 = vadd.f32 1.0, %v5841_v7  ;;  %v2786_v54 = vadd.f32 1.0, %v5839_v16 }
 0x34a   :  { %v5845_v44 = vpop.eup %5844  ;;  %5864 = vpow2.f32 %v4491_v28  ;;  %3184 = vrot.lane.b32.xlu1 %v5843_v32, %s6132_s2  ;;  %v4478_v28 = vmul.f32 -1.442695, %v7399_v18  ;;  %v7411_v32 = vadd.f32 %v7060_v33, %v5025_v40  ;;  %v4461_v12 = vmul.f32 -1.442695, %v7405_v29 }
 0x34b   :  { %v5847_v59 = vpop.eup %5846  ;;  %5866 = vrcp.f32 %v2801_v52  ;;  %v2799_v17 = vadd.f32 1.0, %v5845_v44 }
 0x34c   :  { %v5849_v41 = vpop.eup %5848  ;;  %5868 = vpow2.f32 %v4477_v53  ;;  %3162 = vrot.lane.b32.xlu0 %v5847_v59, %s6132_s2  ;;  %v4494_v40 = vmul.f32 -1.442695, %v7411_v32 }
 0x34d   :  { %v5851_v14 = vpop.eup %5850  ;;  %5870 = vrcp.f32 %v2768_v5  ;;  %v2769_v44 = vadd.f32 1.0, %v5849_v41 }
 0x34e   :  { %v5853_v7 = vpop.eup %5852  ;;  %5872 = vpow2.f32 %v4493_v45  ;;  %3128 = vrot.lane.b32.xlu1 %v5851_v14, %s6132_s2  ;;  %v7418_v45 = vadd.f32 %v7060_v33, %v7794_v2 }
 0x34f   :  { %v5855_v52 = vpop.eup %5854  ;;  %5874 = vrcp.f32 %v2799_v17  ;;  %v2770_v16 = vadd.f32 1.0, %v5853_v7 }
 0x350   :  { %v5857_v53 = vpop.eup %5856  ;;  %5876 = vpow2.f32 %v4492_v35  ;;  %3194 = vrot.lane.b32.xlu0 %v5855_v52, %s6132_s2  ;;  %v4462_v52 = vmul.f32 -1.442695, %v7418_v45 }
 0x351   :  { %v5859_v5 = vpop.eup %5858  ;;  %5878 = vrcp.f32 %v2786_v54  ;;  %v2787_v41 = vadd.f32 1.0, %v5857_v53 }
 0x352   :  { %v5861_v59 = vpop.eup %5860  ;;  %5880 = vpow2.f32 %v4478_v28  ;;  %3164 = vrot.lane.b32.xlu1 %v5859_v5, %s6132_s2 }
 0x353   :  { %v5863_v17 = vpop.eup %5862  ;;  %5882 = vrcp.f32 %v2769_v44  ;;  %v2771_v2 = vadd.f32 1.0, %v5861_v59 }
 0x354   :  { %v5865_v14 = vpop.eup %5864  ;;  %5884 = vpow2.f32 %v4461_v12  ;;  %3190 = vrot.lane.b32.xlu0 %v5863_v17, %s6132_s2 }
 0x355   :  { %v5867_v35 = vpop.eup %5866  ;;  %5886 = vrcp.f32 %v2770_v16  ;;  %v2802_v54 = vadd.f32 1.0, %v5865_v14 }
 0x356   :  { %v5869_v7 = vpop.eup %5868  ;;  %5888 = vpow2.f32 %v4494_v40  ;;  %3196 = vrot.lane.b32.xlu1 %v5867_v35, %s6132_s2  ;;  %v7795_v40 = vld [vmem:[#allocation58_spill] sm:$0xff]  ;;  %v7796_v35 = vld [vmem:[#allocation60_spill] sm:$0xff] }
 0x357   :  { %v5871_v33 = vpop.eup %5870  ;;  %5890 = vrcp.f32 %v2787_v41  ;;  %v2788_v53 = vadd.f32 1.0, %v5869_v7 }
 0x358   :  { %v5873_v28 = vpop.eup %5872  ;;  %3130 = vrot.lane.b32.xlu0 %v5871_v33, %s6132_s2  ;;  %5892 = vrcp.f32 %v2802_v54  ;;  %v7797_v33 = vld [vmem:[#allocation59_spill] sm:$0xff] }
 0x359   :  { %v5875_v44 = vpop.eup %5874  ;;  %5894 = vpow2.f32 %v4462_v52  ;;  %v2804_v41 = vadd.f32 1.0, %v5873_v28 }
 0x35a   :  { %v5877_v12 = vpop.eup %5876  ;;  %3192 = vrot.lane.b32.xlu1 %v5875_v44, %s6132_s2  ;;  %5896 = vrcp.f32 %v2771_v2 }
 0x35b   :  { %v5879_v5 = vpop.eup %5878  ;;  %v2803_v16 = vadd.f32 1.0, %v5877_v12  ;;  %5898 = vtanh.f32 %v7795_v40  ;;  %v7798_v12 = vld [vmem:[#allocation61_spill] sm:$0xff] }
 0x35c   :  { %v5881_v17 = vpop.eup %5880  ;;  %3166 = vrot.lane.b32.xlu0 %v5879_v5, %s6132_s2  ;;  %5900 = vrcp.f32 %v2788_v53 }
 0x35d   :  { %v5883_v59 = vpop.eup %5882  ;;  %5902 = vtanh.f32 %v7796_v35  ;;  %v2789_v7 = vadd.f32 1.0, %v5881_v17 }
 0x35e   :  { %v5885_v14 = vpop.eup %5884  ;;  %3132 = vrot.lane.b32.xlu1 %v5883_v59, %s6132_s2  ;;  %5904 = vrcp.f32 %v2803_v16 }
 0x35f   :  { %v5887_v54 = vpop.eup %5886  ;;  %5906 = vtanh.f32 %v7797_v33  ;;  %v2772_v44 = vadd.f32 1.0, %v5885_v14 }
 0x360   :  { %v5889_v52 = vpop.eup %5888  ;;  %3134 = vrot.lane.b32.xlu0 %v5887_v54, %s6132_s2  ;;  %5908 = vrcp.f32 %v2804_v41 }
 0x361   :  { %v5891_v2 = vpop.eup %5890  ;;  %5910 = vtanh.f32 %v7798_v12  ;;  %v2805_v53 = vadd.f32 1.0, %v5889_v52  ;;  %v3147_v40 = vpop.permute.xlu0 %3146 }
 0x362   :  { %3168 = vrot.lane.b32.xlu1 %v5891_v2, %s6132_s2  ;;  %v5893_v28 = vpop.eup %5892  ;;  %5912 = vrcp.f32 %v2789_v7 }
 0x363   :  { %v5895_v5 = vpop.eup %5894  ;;  %5914 = vrcp.f32 %v2772_v44 }
 0x364   :  { %3198 = vrot.lane.b32.xlu0 %v5893_v28, %s6132_s2  ;;  %v5897_v16 = vpop.eup %5896  ;;  %v2773_v35 = vadd.f32 1.0, %v5895_v5  ;;  %5916 = vrcp.f32 %v2805_v53 }
 0x365   :  { %v5899_v17 = vpop.eup %5898  ;;  %v3143_v2 = vpop.permute.xlu0 %3142 }
 0x366   :  { %3136 = vrot.lane.b32.xlu1 %v5897_v16, %s6132_s2  ;;  %v5901_v59 = vpop.eup %5900  ;;  %v3336_v33 = vmul.f32 %v5899_v17, %v3147_v40  ;;  %5918 = vrcp.f32 %v2773_v35  ;;  %v6135_v35 = vmov 0.0  }
 0x367   :  { %v5903_v41 = vpop.eup %5902  ;;  %v3149_v14 = vpop.permute.xlu1 %3148  ;;  %5920 = vtanh.f32 %v7799_v49  ;;  %65 = vst.msk [vmem:[#allocation9] sm:$0x1] %vm63_vm3, %v6135_v35  ;;  %5058 = vmatprep.mubr.msk.f32.mxu1 %vm6136_vm5, %v6135_v35  ;;  %v7800_v49 = vld [vmem:[#allocation63_spill] sm:$0xff] }
 0x368   :  { %3170 = vrot.lane.b32.xlu0 %v5901_v59, %s6132_s2  ;;  %v5905_v54 = vpop.eup %5904  ;;  %v3337_v7 = vmul.f32 %v5903_v41, %v3149_v14  ;;  %5922 = vtanh.f32 %v7100_v60  ;;  %v6134_v41 = vmov -1e+30   ;;  %67 = vst.msk [vmem:[#allocation10] sm:$0x1] %vm66_vm4, %v6135_v35 }
 0x369   :  { %v5907_v52 = vpop.eup %5906  ;;  %64 = vst.msk [vmem:[#allocation7] sm:$0x1] %vm63_vm3, %v6134_v41  ;;  %5924 = vtanh.f32 %v7800_v49 }
 0x36a   :  { %3200 = vrot.lane.b32.xlu1 %v5905_v54, %s6132_s2  ;;  %v5909_v12 = vpop.eup %5908  ;;  %v5150_v44 = vpack.c.bf16 %v3337_v7, %v3336_v33  ;;  %v3334_v5 = vmul.f32 %v5907_v52, %v3143_v2  ;;  %5926 = vtanh.f32 %v7103_v21 }
 0x36b   :  { %v5911_v28 = vpop.eup %5910  ;;  %v3145_v16 = vpop.permute.xlu1 %3144  ;;  %5928 = vtanh.f32 %v7197_v6 }
 0x36c   :  { %3202 = vrot.lane.b32.xlu0 %v5909_v12, %s6132_s2  ;;  %v5913_v53 = vpop.eup %5912  ;;  %v3335_v59 = vmul.f32 %v5911_v28, %v3145_v16  ;;  %5930 = vtanh.f32 %v7209_v24 }
 0x36d   :  { %v5915_v40 = vpop.eup %5914  ;;  %5932 = vtanh.f32 %v7204_v50 }
 0x36e   :  { %3172 = vrot.lane.b32.xlu1 %v5913_v53, %s6132_s2  ;;  %v5144_v17 = vpack.c.bf16 %v3335_v59, %v3334_v5  ;;  %v5917_v60 = vpop.eup %5916  ;;  %v7801_v5 = vpack.c.bf16 %v7354_v39, %v7351_v8  ;;  %5934 = vtanh.f32 %v7213_v58 }
 0x36f   :  { %5936 = vtanh.f32 %v7180_v31 }
 0x370   :  { %3138 = vrot.lane.b32.xlu0 %v5915_v40, %s6132_s2  ;;  %5146 = vmatprep.subr.msk.bf16.mxu0 %vm7108_vm2, %v5144_v17  ;;  %v5919_v54 = vpop.eup %5918  ;;  %5938 = vtanh.f32 %v7218_v1 }
 0x371   :  { %5149 = vmatpush3.bf16.xpose.msk.msra.mxu0 %vm7108_vm2, %v5147_v56  ;;  %v3155_v14 = vpop.permute.xlu0 %3154  ;;  %v5921_v33 = vpop.eup %5920  ;;  %5940 = vtanh.f32 %v7201_v30 }
 0x372   :  { %3204 = vrot.lane.b32.xlu1 %v5917_v60, %s6132_s2  ;;  %5152 = vmatprep.subr.msk.bf16.mxu0 %vm7108_vm2, %v5150_v44  ;;  %v5923_v7 = vpop.eup %5922  ;;  %v3340_v2 = vmul.f32 %v5921_v33, %v3155_v14  ;;  %5942 = vtanh.f32 %v7232_v51 }
 0x373   :  { %v5925_v23 = vpop.eup %5924  ;;  %5944 = vtanh.f32 %v7256_v34  ;;  %v7802_v34 = vmov 0.0|0.0  }
 0x374   :  { %v5927_v56 = vpop.eup %5926  ;;  %3370 = vperm.xlu0 %5326, %v3367_v19   ;;  %5946 = vtanh.f32 %v7264_v46 }
 0x375   :  { %v3151_v12 = vpop.permute.xlu0 %3150  ;;  %v5929_v8 = vpop.eup %5928  ;;  %5948 = vtanh.f32 %v7260_v47 }
 0x376   :  { %3140 = vrot.lane.b32.xlu1 %v5919_v54, %s6132_s2  ;;  %v3338_v28 = vmul.f32 %v5925_v23, %v3151_v12  ;;  %v5931_v39 = vpop.eup %5930  ;;  %5950 = vtanh.f32 %v7273_v57 }
 0x377   :  { %v3157_v52 = vpop.permute.xlu1 %3156  ;;  %v5933_v24 = vpop.eup %5932  ;;  %5952 = vtanh.f32 %v7238_v4 }
 0x378   :  { %v3341_v21 = vmul.f32 %v5923_v7, %v3157_v52  ;;  %v5935_v41 = vpop.eup %5934  ;;  %5954 = vtanh.f32 %v7279_v25 }
 0x379   :  { %5155 = vmatpush3.bf16.xpose.msk.msra.mxu0 %vm7108_vm2, %v5153_v63  ;;  %v5937_v1 = vpop.eup %5936  ;;  %5956 = vtanh.f32 %v7253_v10 }
 0x37a   :  { %v5162_v42 = vpack.c.bf16 %v3341_v21, %v3340_v2  ;;  %v5939_v54 = vpop.eup %5938  ;;  %5958 = vtanh.f32 %v7305_v62 }
 0x37b   :  { %v3153_v44 = vpop.permute.xlu1 %3152  ;;  %v5941_v52 = vpop.eup %5940  ;;  %5960 = vtanh.f32 %v7323_v55 }
 0x37c   :  { %v3339_v16 = vmul.f32 %v5927_v56, %v3153_v44  ;;  %v5943_v21 = vpop.eup %5942  ;;  %5962 = vtanh.f32 %v7337_v61 }
 0x37d   :  { %5964 = vtanh.f32 %v7327_v48 }
 0x37e   :  { %v5156_v53 = vpack.c.bf16 %v3339_v16, %v3338_v28  ;;  %5966 = vtanh.f32 %v7341_v15 }
 0x37f   :  { %5968 = vtanh.f32 %v7295_v13 }
 0x380   :  { %5158 = vmatprep.subr.msk.bf16.mxu0 %vm7108_vm2, %v5156_v53  ;;  %5970 = vtanh.f32 %v7346_v11 }
 0x381   :  { %5161 = vmatpush3.bf16.xpose.msk.msra.mxu0 %vm7108_vm2, %v7801_v5  ;;  %5972 = vtanh.f32 %v7331_v3 }
 0x382   :  { %5164 = vmatprep.subr.msk.bf16.mxu0 %vm7108_vm2, %v5162_v42  ;;  %v5945_v42 = vpop.eup %5944  ;;  %5974 = vtanh.f32 %v7367_v22 }
 0x383   :  { %v5947_v57 = vpop.eup %5946  ;;  %5976 = vtanh.f32 %v7359_v37 }
 0x384   :  { %v5949_v25 = vpop.eup %5948  ;;  %5978 = vtanh.f32 %v7373_v20 }
 0x385   :  { %v5951_v5 = vpop.eup %5950  ;;  %5980 = vtanh.f32 %v7384_v26 }
 0x386   :  { %5982 = vtanh.f32 %v7394_v38 }
 0x3a1   :  { %v3179_v0 = vpop.permute.xlu0 %3178 }
 0x3a2   :  { %v3352_v40 = vmul.f32 %v5929_v8, %v3179_v0  ;;  %v5953_v8 = vpop.eup %5952  ;;  %5984 = vtanh.f32 %v7381_v43 }
 0x3a5   :  { %v3175_v63 = vpop.permute.xlu0 %3174 }
 0x3a6   :  { %v3350_v31 = vmul.f32 %v5933_v24, %v3175_v63 }
 0x3a8   :  { %v3181_v59 = vpop.permute.xlu1 %3180 }
 0x3a9   :  { %v3353_v17 = vmul.f32 %v5931_v39, %v3181_v59  ;;  %v3123_v6 = vpop.permute.xlu0 %3122  ;;  %v5955_v59 = vpop.eup %5954  ;;  %5986 = vtanh.f32 %v7399_v18 }
 0x3aa   :  { %v3324_v33 = vmul.f32 %v5937_v1, %v3123_v6  ;;  %v5957_v55 = vpop.eup %5956  ;;  %5988 = vtanh.f32 %v7389_v36 }
 0x3ab   :  { %v5197_v50 = vpack.c.bf16 %v3353_v17, %v3352_v40  ;;  %v5959_v61 = vpop.eup %5958  ;;  %5990 = vtanh.f32 %v7411_v32 }
 0x3ac   :  { %v3177_v60 = vpop.permute.xlu1 %3176 }
 0x3ad   :  { %v3351_v58 = vmul.f32 %v5935_v41, %v3177_v60  ;;  %v3159_v49 = vpop.permute.xlu0 %3158 }
 0x3ae   :  { %v3342_v12 = vmul.f32 %v5941_v52, %v3159_v49 }
 0x3af   :  { %v5193_v14 = vpack.c.bf16 %v3351_v58, %v3350_v31  ;;  %v5961_v31 = vpop.eup %5960  ;;  %5992 = vtanh.f32 %v7405_v29 }
 0x3b0   :  { %v3125_v30 = vpop.permute.xlu1 %3124  ;;  %v5963_v15 = vpop.eup %5962  ;;  %5994 = vtanh.f32 %v7418_v45 }
 0x3b1   :  { %v3325_v7 = vmul.f32 %v5939_v54, %v3125_v30  ;;  %5195 = vmatpush3.bf16.xpose.msk.msra.mxu1 %vm7108_vm2, %v5193_v14  ;;  %v5965_v11 = vpop.eup %5964 }
 0x3b2   :  { %v3187_v51 = vpop.permute.xlu0 %3186  ;;  %5196 = vmatprep.subr.bf16.mxu1 %v7802_v34  ;;  %v5967_v30 = vpop.eup %5966 }
 0x3b3   :  { %v5165_v2 = vpack.c.bf16 %v3325_v7, %v3324_v33  ;;  %v3356_v28 = vmul.f32 %v5945_v42, %v3187_v51  ;;  %v5969_v52 = vpop.eup %5968 }
 0x3b4   :  { %v3161_v46 = vpop.permute.xlu1 %3160 }
 0x3b5   :  { %v3343_v23 = vmul.f32 %v5943_v21, %v3161_v46  ;;  %5167 = vmatpush3.bf16.xpose.msk.msra.mxu0 %vm7108_vm2, %v5165_v2  ;;  %v5971_v21 = vpop.eup %5970 }
 0x3b6   :  { %v3183_v47 = vpop.permute.xlu0 %3182  ;;  %v5973_v37 = vpop.eup %5972 }
 0x3b7   :  { %v5168_v56 = vpack.c.bf16 %v3343_v23, %v3342_v12  ;;  %v3354_v10 = vmul.f32 %v5949_v25, %v3183_v47  ;;  %v5975_v20 = vpop.eup %5974 }
 0x3b8   :  { %v3189_v44 = vpop.permute.xlu1 %3188 }
 0x3b9   :  { %v3357_v16 = vmul.f32 %v5947_v57, %v3189_v44  ;;  %5170 = vmatprep.subr.msk.bf16.mxu0 %vm7108_vm2, %v5168_v56  ;;  %5199 = vmatpush3.bf16.xpose.msk.msra.mxu1 %vm7108_vm2, %v5197_v50  ;;  %v5977_v44 = vpop.eup %5976 }
 0x3ba   :  { %v3127_v4 = vpop.permute.xlu0 %3126  ;;  %5200 = vmatprep.subr.bf16.mxu1 %v7802_v34  ;;  %v5979_v38 = vpop.eup %5978 }
 0x3bb   :  { %v5205_v53 = vpack.c.bf16 %v3357_v16, %v3356_v28  ;;  %v3326_v62 = vmul.f32 %v5953_v8, %v3127_v4  ;;  %v5981_v18 = vpop.eup %5980 }
 0x3bc   :  { %v3185_v19 = vpop.permute.xlu1 %3184 }
 0x3bd   :  { %v3355_v0 = vmul.f32 %v5951_v5, %v3185_v19  ;;  %v5983_v5 = vpop.eup %5982 }
 0x3be   :  { %v3163_v63 = vpop.permute.xlu0 %3162 }
 0x3bf   :  { %v5201_v39 = vpack.c.bf16 %v3355_v0, %v3354_v10  ;;  %v3344_v41 = vmul.f32 %v5957_v55, %v3163_v63  ;;  %v5985_v0 = vpop.eup %5984 }
 0x3c0   :  { %v3129_v40 = vpop.permute.xlu1 %3128  ;;  %v5987_v8 = vpop.eup %5986 }
 0x3c1   :  { %v3327_v17 = vmul.f32 %v5955_v59, %v3129_v40  ;;  %5203 = vmatpush3.bf16.xpose.msk.msra.mxu1 %vm7108_vm2, %v5201_v39  ;;  %v5989_v29 = vpop.eup %5988 }
 0x3c2   :  { %v3195_v6 = vpop.permute.xlu0 %3194  ;;  %5204 = vmatprep.subr.bf16.mxu1 %v7802_v34 }
 0x3c3   :  { %v5171_v24 = vpack.c.bf16 %v3327_v17, %v3326_v62  ;;  %v3360_v1 = vmul.f32 %v5961_v31, %v3195_v6  ;;  %v5991_v17 = vpop.eup %5990 }
 0x3c4   :  { %v3165_v50 = vpop.permute.xlu1 %3164 }
 0x3c5   :  { %v3345_v60 = vmul.f32 %v5959_v61, %v3165_v50  ;;  %5173 = vmatpush3.bf16.xpose.msk.msra.mxu0 %vm7108_vm2, %v5171_v24  ;;  %v5993_v61 = vpop.eup %5992 }
 0x3c6   :  { %v3191_v48 = vpop.permute.xlu0 %3190 }
 0x3c7   :  { %v5174_v58 = vpack.c.bf16 %v3345_v60, %v3344_v41  ;;  %v3358_v3 = vmul.f32 %v5965_v11, %v3191_v48  ;;  %v5995_v41 = vpop.eup %5994  ;;  %v7809_v11 = vld [vmem:[#allocation50_spill] sm:$0xff] }
 0x3c8   :  { %v3197_v49 = vpop.permute.xlu1 %3196 }
 0x3c9   :  { %v3361_v14 = vmul.f32 %v5963_v15, %v3197_v49  ;;  %5176 = vmatprep.subr.msk.bf16.mxu0 %vm7108_vm2, %v5174_v58  ;;  %5207 = vmatpush3.bf16.xpose.msk.msra.mxu1 %vm7108_vm2, %v5205_v53  ;;  %v7803_v15 = vld [vmem:[#allocation24_spill] sm:$0xff] }
 0x3ca   :  { %v3131_v13 = vpop.permute.xlu0 %3130  ;;  %5208 = vmatprep.subr.bf16.mxu1 %v7802_v34  ;;  %v7804_v49 = vld [vmem:[#allocation48_spill] sm:$0xff] }
 0x3cb   :  { %v5213_v54 = vpack.c.bf16 %v3361_v14, %v3360_v1  ;;  %v3328_v22 = vmul.f32 %v5969_v52, %v3131_v13  ;;  %v7805_v1 = vld [vmem:[#allocation16_spill] sm:$0xff]  ;;  %v7806_v14 = vld [vmem:[#allocation49_spill] sm:$0xff] }
 0x3cc   :  { %v3193_v33 = vpop.permute.xlu1 %3192  ;;  %v7808_v13 = vld [vmem:[#allocation17_spill] sm:$0xff]  ;;  %v7817_v52 = vld [vmem:[#allocation20_spill] sm:$0xff] }
 0x3cd   :  { %v3359_v7 = vmul.f32 %v5967_v30, %v3193_v33  ;;  %v7812_v30 = vld [vmem:[#allocation51_spill] sm:$0xff] }
 0x3ce   :  { %v3167_v51 = vpop.permute.xlu0 %3166  ;;  %v7814_v33 = vld [vmem:[#allocation19_spill] sm:$0xff] }
 0x3cf   :  { %v5209_v2 = vpack.c.bf16 %v3359_v7, %v3358_v3  ;;  %v3346_v56 = vmul.f32 %v5973_v37, %v3167_v51  ;;  %v7815_v3 = vld [vmem:[#allocation52_spill] sm:$0xff]  ;;  %v7823_v37 = vld [vmem:[#allocation22_spill] sm:$0xff] }
 0x3d0   :  { %v3133_v46 = vpop.permute.xlu1 %3132  ;;  %v7816_v7 = vld [vmem:[#allocation28_spill] sm:$0xff] }
 0x3d1   :  { %v3329_v12 = vmul.f32 %v5971_v21, %v3133_v46  ;;  %5211 = vmatpush3.bf16.xpose.msk.msra.mxu1 %vm7108_vm2, %v5209_v2  ;;  %v7818_v2 = vld [vmem:[#allocation53_spill] sm:$0xff] }
 0x3d2   :  { %v3135_v23 = vpop.permute.xlu0 %3134  ;;  %5212 = vmatprep.subr.bf16.mxu1 %v7802_v34  ;;  %v7819_v46 = vld [vmem:[#allocation29_spill] sm:$0xff] }
 0x3d3   :  { %v5177_v47 = vpack.c.bf16 %v3329_v12, %v3328_v22  ;;  %v3330_v4 = vmul.f32 %v5977_v44, %v3135_v23  ;;  %v7820_v22 = vld [vmem:[#allocation21_spill] sm:$0xff]  ;;  %v7821_v12 = vld [vmem:[#allocation54_spill] sm:$0xff] }
 0x3d4   :  { %v3169_v42 = vpop.permute.xlu1 %3168  ;;  %v7822_v23 = vld [vmem:[#allocation30_spill] sm:$0xff] }
 0x3d5   :  { %v3347_v57 = vmul.f32 %v5975_v20, %v3169_v42  ;;  %5179 = vmatpush3.bf16.xpose.msk.msra.mxu0 %vm7108_vm2, %v5177_v47  ;;  %v7824_v47 = vld [vmem:[#allocation55_spill] sm:$0xff] }
 0x3d6   :  { %v3199_v26 = vpop.permute.xlu0 %3198  ;;  %v7825_v20 = vld [vmem:[#allocation31_spill] sm:$0xff] }
 0x3d7   :  { %v5180_v28 = vpack.c.bf16 %v3347_v57, %v3346_v56  ;;  %v3362_v36 = vmul.f32 %v5981_v18, %v3199_v26  ;;  %v7826_v42 = vld [vmem:[#allocation23_spill] sm:$0xff]  ;;  %v7827_v56 = vld [vmem:[#allocation40_spill] sm:$0xff]  ;;  %v3373_v57 = vlaneseq }
 0x3d8   :  { %v3137_v16 = vpop.permute.xlu1 %3136 }
 0x3d9   :  { %v3331_v25 = vmul.f32 %v5979_v38, %v3137_v16  ;;  %5182 = vmatprep.subr.msk.bf16.mxu0 %vm7108_vm2, %v5180_v28  ;;  %5215 = vmatpush3.bf16.xpose.msk.msra.mxu1 %vm7108_vm2, %v5213_v54  ;;  %v7810_v54 = vld [vmem:[#allocation26_spill] sm:$0xff]  ;;  %v3374_v26 = vshrl.u32 %v3373_v57, 7  ;;  %v6137_v16 = vmov 1966171168   ;;  %vm3880_vm7 = vcmp.lt.s32.totalorder %v3373_v57, 640  ;;  %v7829_v57 = vld [vmem:[#allocation41_spill] sm:$0xff] }
 0x3da   :  { %v3171_v43 = vpop.permute.xlu0 %3170  ;;  %5216 = vmatprep.subr.bf16.mxu1 %v7802_v34 }
 0x3db   :  { %v5183_v53 = vpack.c.bf16 %v3331_v25, %v3330_v4  ;;  %v3348_v59 = vmul.f32 %v5985_v0, %v3171_v43  ;;  %v7592_v44 = vsub.s32 0, %v3374_v26  ;;  %v3841_v4 = vunpack.c.l.s4 %v6137_v16  ;;  %v7830_v16 = vld [vmem:[#allocation33_spill] sm:$0xff] }
 0x3dc   :  { %v3201_v19 = vpop.permute.xlu1 %3200 }
 0x3dd   :  { %v3363_v10 = vmul.f32 %v5983_v5, %v3201_v19  ;;  %5185 = vmatpush3.bf16.xpose.msk.msra.mxu0 %vm7108_vm2, %v5183_v53  ;;  %v3842_v53 = vunpack.c.0.s8 %v3841_v4 }
 0x3de   :  { %v3203_v39 = vpop.permute.xlu0 %3202 }
 0x3df   :  { %v5217_v63 = vpack.c.bf16 %v3363_v10, %v3362_v36  ;;  %v3364_v55 = vmul.f32 %v5989_v29, %v3203_v39 }
 0x3e0   :  { %v3173_v32 = vpop.permute.xlu1 %3172 }
 0x3e1   :  { %v3349_v40 = vmul.f32 %v5987_v8, %v3173_v32  ;;  %5219 = vmatpush3.bf16.xpose.msk.msra.mxu1 %vm7108_vm2, %v5217_v63  ;;  %v3845_v32 = vsub.s32 %v3842_v53, %v3374_v26  ;;  %v7834_v53 = vld [vmem:[#allocation35_spill] sm:$0xff] }
 0x3e2   :  { %5220 = vmatprep.subr.bf16.mxu1 %v7802_v34  ;;  %v3139_v45 = vpop.permute.xlu0 %3138 }
 0x3e3   :  { %v5186_v62 = vpack.c.bf16 %v3349_v40, %v3348_v59  ;;  %v3332_v48 = vmul.f32 %v5993_v61, %v3139_v45 }
 0x3e4   :  { %v3205_v6 = vpop.permute.xlu1 %3204 }
 0x3e5   :  { %v3365_v24 = vmul.f32 %v5991_v17, %v3205_v6  ;;  %5188 = vmatprep.subr.msk.bf16.mxu0 %vm7108_vm2, %v5186_v62 }
 0x3e7   :  { %v5221_v50 = vpack.c.bf16 %v3365_v24, %v3364_v55 }
 0x3e8   :  { %v3141_v60 = vpop.permute.xlu1 %3140 }
 0x3e9   :  { %v3333_v31 = vmul.f32 %v5995_v41, %v3141_v60  ;;  %5223 = vmatpush3.bf16.xpose.msk.msra.mxu1 %vm7108_vm2, %v5221_v50 }
 0x3ea   :  { %5288 = vmatprep.subr.bf16.mxu1 %v7802_v34 }
 0x3eb   :  { %v5189_v58 = vpack.c.bf16 %v3333_v31, %v3332_v48 }
 0x3ed   :  { %5191 = vmatpush3.bf16.xpose.msk.msra.mxu0 %vm7108_vm2, %v5189_v58  ;;  %v3883_v58 = vld [vmem:[#allocation7] sm:$0x1] }
 0x3ee   :  { %5225 = vmatprep.subr.bf16.mxu0 %v7803_v15 }
 0x3f0   :  { %5059 = vmatmul.mubr.msk.f32.vlgmr.msra.gmra.mrb[162].mxu1 %vm3377_vm1, %v7311_v9 }
 0x3f1   :  { %5290 = vmatpush3.bf16.msra.mxu1 %v7804_v49  ;;  %5093 = vmatprep.mubr.msk.f32.mxu1 %vm6136_vm5, %v6135_v35  ;;  %v7811_v35 = vld [vmem:[#allocation18_spill] sm:$0xff] }
 0x3f2   :  { %5291 = vmatprep.subr.bf16.mxu1 %v7802_v34 }
 0x3f3   :  { %v3371_v28 = vpop.permute.xlu0 %3370 }
 0x3f4   :  { %4737 = vmatmul.mubr.msk.f32.vlgmr.msra.gmra.mrb[160].mxu0 %vm3377_vm1, %v7311_v9  ;;  %v7813_v9 = vld [vmem:[#allocation27_spill] sm:$0xff]  ;;  %v3376_v38 = vrot.slane %v3371_v28, %v7592_v44 }
 0x3f5   :  { %5227 = vmatpush3.bf16.msra.mxu0 %v7805_v1  ;;  %5293 = vmatpush3.bf16.msra.mxu1 %v7806_v14 }
 0x3f6   :  { %5229 = vmatprep.subr.bf16.mxu0 %v7807_v27  ;;  %5294 = vmatprep.subr.bf16.mxu1 %v7802_v34 }
 0x3f9   :  { %5231 = vmatpush3.bf16.msra.mxu0 %v7808_v13  ;;  %5296 = vmatpush3.bf16.msra.mxu1 %v7809_v11 }
 0x3fa   :  { %5233 = vmatprep.subr.bf16.mxu0 %v7810_v54  ;;  %5297 = vmatprep.subr.bf16.mxu1 %v7802_v34 }
 0x3fd   :  { %5235 = vmatpush3.bf16.msra.mxu0 %v7811_v35  ;;  %5299 = vmatpush3.bf16.msra.mxu1 %v7812_v30 }
 0x3fe   :  { %5237 = vmatprep.subr.bf16.mxu0 %v7813_v9  ;;  %5300 = vmatprep.subr.bf16.mxu1 %v7802_v34 }
 0x401   :  { %5239 = vmatpush3.bf16.msra.mxu0 %v7814_v33  ;;  %5302 = vmatpush3.bf16.msra.mxu1 %v7815_v3 }
 0x402   :  { %5241 = vmatprep.subr.bf16.mxu0 %v7816_v7  ;;  %5303 = vmatprep.subr.bf16.mxu1 %v7802_v34 }
 0x404   :  { %v3687_v51 = vpop.f32.mrb[160].mxu1 }
 0x405   :  { %5243 = vmatpush3.bf16.msra.mxu0 %v7817_v52  ;;  %5305 = vmatpush3.bf16.msra.mxu1 %v7818_v2  ;;  %v3689_v21 = vpop.f32.mrb[161].mxu1 }
 0x406   :  { %5245 = vmatprep.subr.bf16.mxu0 %v7819_v46  ;;  %5306 = vmatprep.subr.bf16.mxu1 %v7802_v34  ;;  %v3690_v5 = vadd.f32 %v3689_v21, %v3376_v38 }
 0x408   :  { %v3886_v62 = vsel %vm3884_vm6, %v3690_v5, -inf }
 0x409   :  { %5247 = vmatpush3.bf16.msra.mxu0 %v7820_v22  ;;  %5308 = vmatpush3.bf16.msra.mxu1 %v7821_v12 }
 0x40a   :  { %5249 = vmatprep.subr.bf16.mxu0 %v7822_v23  ;;  %5309 = vmatprep.subr.bf16.mxu1 %v7802_v34  ;;  %v3688_v34 = vadd.f32 %v3687_v51, %v3376_v38 }
 0x40c   :  { %v3885_v36 = vsel %vm3884_vm6, %v3688_v34, -inf  ;;  %v3838_v39 = vcombine.low %v3688_v34, %v3690_v5 }
 0x40d   :  { %5251 = vmatpush3.bf16.msra.mxu0 %v7823_v37  ;;  %5311 = vmatpush3.bf16.msra.mxu1 %v7824_v47 }
 0x40e   :  { %5253 = vmatprep.subr.bf16.mxu0 %v7825_v20  ;;  %v3846_v24 = vrot.slane %v3838_v39, %v3845_v32 }
 0x411   :  { %5255 = vmatpush3.bf16.msra.mxu0 %v7826_v42  ;;  %v7828_v42 = vld [vmem:[#allocation32_spill] sm:$0xff] }
 0x412   :  { %5257 = vmatprep.subr.bf16.mxu0 %v7827_v56 }
 0x4c3   :  { %v3829_v25 = vpop.f32.mrb[162].mxu1 }
 0x4c4   :  { %v3830_v43 = vadd.f32 %v3829_v25, %v3376_v38  ;;  %v5060_v18 = vpop.f32.mrb[163].mxu1 }
 0x4c5   :  { %v7833_v18 = vld [vmem:[#allocation43_spill] sm:$0xff] }
 0x4c6   :  { %v3889_v19 = vsel %vm3884_vm6, %v3830_v43, -inf  ;;  %v3860_v45 = vrot.slane %v3830_v43, %v3845_v32 }
 0x4c7   :  { %v3758_v10 = vpop.f32.mrb[160].mxu0  ;;  %v3890_v8 = vmax.f32 %v3885_v36, %v3889_v19  ;;  %v7836_v19 = vld [vmem:[#allocation36_spill] sm:$0xff]  ;;  %v7837_v36 = vld [vmem:[#allocation45_spill] sm:$0xff] }
 0x4c8   :  { %v3759_v0 = vadd.f32 %v3758_v10, %v3376_v38  ;;  %v3760_v63 = vpop.f32.mrb[161].mxu0  ;;  %v3875_v60 = vrot.slane %v3860_v45, %v3845_v32  ;;  %v7838_v10 = vld [vmem:[#allocation37_spill] sm:$0xff] }
 0x4c9   :  { %v3761_v59 = vadd.f32 %v3760_v63, %v3376_v38  ;;  %v3891_v6 = vmax.f32 %v3890_v8, %v3886_v62  ;;  %v7840_v63 = vld [vmem:[#allocation38_spill] sm:$0xff]  ;;  %v7841_v8 = vld [vmem:[#allocation47_spill] sm:$0xff] }
 0x4ca   :  { %v3887_v40 = vsel %vm3884_vm6, %v3759_v0, -inf }
 0x4cb   :  { %v3839_v29 = vcombine.low %v3759_v0, %v3761_v59  ;;  %v3888_v17 = vsel %vm3884_vm6, %v3761_v59, -inf }
 0x4cc   :  { %v3892_v55 = vmax.f32 %v3887_v40, %v3888_v17 }
 0x4cd   :  { %v3853_v61 = vrot.slane %v3839_v29, %v3845_v32 }
 0x4ce   :  { %v3893_v50 = vmax.f32 %v3891_v6, %v3892_v55 }
 0x4cf   :  { %v3861_v41 = vcombine.low %v3846_v24, %v3853_v61 }
 0x4d0   :  { %3894 = vmax.xlane.f32.xlu1 %v3893_v50 }
 0x4d1   :  { %v3868_v48 = vrot.slane %v3861_v41, %v3845_v32  ;;  %v7842_v32 = vld [vmem:[#allocation39_spill] sm:$0xff] }
 0x4d3   :  { %v3876_v31 = vcombine.low %v3868_v48, %v3875_v60 }
 0x4d5   :  { %3882 = vst.msk [vmem:[#allocation6] sm:$0x1f] %vm3880_vm7, %v3876_v31 }
 0x55d   :  { %v3895_v15 = vpop.xlane.xlu1 %3894 }
 0x55e   :  { %v3896_v49 = vmax.f32 %v3883_v58, %v3895_v15 }
 0x560   :  { %v3897_v1 = vsub.f32 %v3883_v58, %v3896_v49  ;;  %4164 = vst.msk [vmem:[#allocation7] sm:$0x1] %vm63_vm3, %v3896_v49  ;;  %3902 = vperm.xlu0 %5326, %v3896_v49  }
 0x562   :  { %v3898_v14 = vmul.f32 1.442695, %v3897_v1 }
 0x564   :  { %5996 = vpow2.f32 %v3898_v14 }
 0x56e   :  { %v7601_v27 = vpop.eup %5996 }
 0x56f   :  { %3943 = vperm.xlu1 %5327, %v7601_v27  }
 0x5df   :  { %v3903_v13 = vpop.permute.xlu0 %3902 }
 0x5e0   :  { %v3908_v11 = vrot.slane %v3903_v13, %v7592_v44 }
 0x5e2   :  { %v3909_v54 = vsub.f32 %v3688_v34, %v3908_v11  ;;  %v3910_v35 = vsub.f32 %v3690_v5, %v3908_v11  ;;  %v3911_v30 = vsub.f32 %v3759_v0, %v3908_v11  ;;  %v3912_v9 = vsub.f32 %v3761_v59, %v3908_v11  ;;  %v7831_v34 = vld [vmem:[#allocation42_spill] sm:$0xff]  ;;  %v7835_v5 = vld [vmem:[#allocation44_spill] sm:$0xff] }
 0x5e3   :  { %v3913_v33 = vsub.f32 %v3830_v43, %v3908_v11  ;;  %v7832_v43 = vld [vmem:[#allocation34_spill] sm:$0xff] }
 0x5e4   :  { %v3914_v3 = vmul.f32 1.442695, %v3909_v54  ;;  %v3916_v7 = vmul.f32 1.442695, %v3910_v35  ;;  %v3918_v51 = vmul.f32 1.442695, %v3911_v30 }
 0x5e5   :  { %v3920_v52 = vmul.f32 1.442695, %v3912_v9  ;;  %v3922_v2 = vmul.f32 1.442695, %v3913_v33  ;;  %v7839_v0 = vld [vmem:[#allocation46_spill] sm:$0xff] }
 0x5e6   :  { %5998 = vpow2.f32 %v3914_v3 }
 0x5e7   :  { %6000 = vpow2.f32 %v3916_v7 }
 0x5e8   :  { %6002 = vpow2.f32 %v3918_v51 }
 0x5e9   :  { %6004 = vpow2.f32 %v3920_v52 }
 0x5ea   :  { %6006 = vpow2.f32 %v3922_v2 }
 0x5f0   :  { %v5999_v21 = vpop.eup %5998 }
 0x5f1   :  { %v6001_v46 = vpop.eup %6000  ;;  %v3926_v22 = vsel %vm3884_vm6, %v5999_v21, 0.0 }
 0x5f2   :  { %v6003_v12 = vpop.eup %6002  ;;  %4015 = vmatprep.mubr.f32.mxu0 %v6001_v46  ;;  %v3927_v23 = vsel %vm3884_vm6, %v6001_v46, 0.0 }
 0x5f3   :  { %v6005_v37 = vpop.eup %6004  ;;  %4016 = vmatmul.mubr.f32.vlgmr.msra.gmra.mrb[162].mxu0 %v5999_v21  ;;  %v3928_v47 = vadd.f32 %v3927_v23, %v3926_v22  ;;  %v3929_v56 = vsel %vm3884_vm6, %v6003_v12, 0.0 }
 0x5f4   :  { %v6007_v20 = vpop.eup %6006  ;;  %5259 = vmatpush3.bf16.msra.mxu0 %v7828_v42  ;;  %4085 = vmatprep.mubr.f32.mxu0 %v6005_v37  ;;  %v3931_v28 = vsel %vm3884_vm6, %v6005_v37, 0.0 }
 0x5f5   :  { %5094 = vmatmul.mubr.f32.vlgmr.msra.gmra.mrb[164].mxu1 %v6007_v20  ;;  %5261 = vmatprep.subr.bf16.mxu0 %v7829_v57  ;;  %v3930_v26 = vadd.f32 %v3929_v56, %v3928_v47  ;;  %v3933_v4 = vsel %vm3884_vm6, %v6007_v20, 0.0 }
 0x5f7   :  { %v3932_v38 = vadd.f32 %v3931_v28, %v3930_v26 }
 0x5f8   :  { %5263 = vmatpush3.bf16.msra.mxu0 %v7830_v16 }
 0x5f9   :  { %5265 = vmatprep.subr.bf16.mxu0 %v7831_v34  ;;  %v3934_v25 = vadd.f32 %v3933_v4, %v3932_v38 }
 0x5fb   :  { %3935 = vadd.xlane.f32.xlu0 %v3934_v25 }
 0x5fc   :  { %5267 = vmatpush3.bf16.msra.mxu0 %v7832_v43 }
 0x5fd   :  { %5269 = vmatprep.subr.bf16.mxu0 %v7833_v18 }
 0x600   :  { %5271 = vmatpush3.bf16.msra.mxu0 %v7834_v53 }
 0x601   :  { %5273 = vmatprep.subr.bf16.mxu0 %v7835_v5 }
 0x604   :  { %5275 = vmatpush3.bf16.msra.mxu0 %v7836_v19 }
 0x605   :  { %5277 = vmatprep.subr.bf16.mxu0 %v7837_v36 }
 0x608   :  { %5279 = vmatpush3.bf16.msra.mxu0 %v7838_v10 }
 0x609   :  { %5281 = vmatprep.subr.bf16.mxu0 %v7839_v0 }
 0x60c   :  { %5283 = vmatpush3.bf16.msra.mxu0 %v7840_v63 }
 0x60d   :  { %5285 = vmatprep.subr.bf16.mxu0 %v7841_v8 }
 0x610   :  { %5287 = vmatpush3.bf16.msra.mxu0 %v7842_v32 }
 0x613   :  { %4086 = vmatmul.mubr.f32.vlgmr.msra.gmra.mrb[164].mxu0 %v6003_v12 }
 0x614   :  { %6043 = shalt.err (!%p6040_p12)
}
 0x615   :  { %s6044_s1 = scalar_lea.hbm %s7685_s8, 16 }
 0x616   :  { %p6045_p13 = scmp.ne.s32.totalorder %s7685_s8, %s6044_s1  ;;  %p6048_p0 = scmp.lt.u32.totalorder %s6044_s1, %s7685_s8 }
 0x618   :  { %p6050_p1 = pnand %p6048_p0, %p6045_p13 }
 0x61a   :  { %6053 = shalt.err (!%p6050_p1)
}
 0x61b   :  { %4188 = dma.vmem_to_hbm [thread:$0]  %s4186_s25, 16, %s7685_s8, [#allocation8]  }
 0x61c   :  { %s6054_s17 = scalar_lea.vmem %s4176_s27, 80  ;;  %s6058_s3 = scalar_lea.vmem %s4176_s27, 96 }
 0x61d   :  { %p6055_p2 = scmp.ne.s32.totalorder %s4176_s27, %s6054_s17  ;;  %p6059_p3 = scmp.lt.s32.totalorder %s4176_s27, %s4176_s27 }
 0x61e   :  { %p6060_p4 = scmp.lt.s32.totalorder %s6058_s3, %s6054_s17 }
 0x620   :  { %p6061_p5 = por %p6060_p4, %p6059_p3 }
 0x622   :  { %p6062_p6 = pnand %p6061_p5, %p6055_p2 }
 0x624   :  { %6065 = shalt.err (!%p6062_p6)
}
 0x625   :  { %s6066_s20 = scalar_lea.hbm %s7684_s7, 80 }
 0x626   :  { %p6067_p7 = scmp.ne.s32.totalorder %s7684_s7, %s6066_s20  ;;  %p6070_p8 = scmp.lt.u32.totalorder %s6066_s20, %s7684_s7 }
 0x628   :  { %p6072_p9 = pnand %p6070_p8, %p6067_p7 }
 0x62a   :  { %6075 = shalt.err (!%p6072_p9)
}
 0x62b   :  { %4178 = dma.vmem_to_hbm [thread:$0]  %s4176_s27, 80, %s7684_s7, [#allocation5]   ;;  %v3924_v39 = vld [vmem:[#allocation9] sm:$0x1] }
 0x62c   :  { %s6140_s4 = smov [#allocation9]   ;;  %v3925_v59 = vmul.f32 %v7601_v27, %v3924_v39 }
 0x62d   :  { %s4195_s24 = sshll.u32 %s6140_s4, 4  ;;  %s4196_s24 = int_to_ptr.vmem [resolvable:$true] %s4195_s24 }
 0x62e   :  { %s6076_s5 = scalar_lea.vmem %s4196_s24, 16  ;;  %s6080_s25 = scalar_lea.vmem %s4196_s24, 32 }
 0x62f   :  { %p6077_p10 = scmp.ne.s32.totalorder %s4196_s24, %s6076_s5  ;;  %p6081_p11 = scmp.lt.s32.totalorder %s4196_s24, %s4196_s24 }
 0x630   :  { %p6082_p12 = scmp.lt.s32.totalorder %s6080_s25, %s6076_s5 }
 0x632   :  { %p6083_p13 = por %p6082_p12, %p6081_p11 }
 0x634   :  { %p6084_p0 = pnand %p6083_p13, %p6077_p10 }
 0x688   :  { %v3936_v40 = vpop.xlane.xlu0 %3935 }
 0x689   :  { %v3937_v29 = vadd.f32 %v3936_v40, %v3925_v59 }
 0x68b   :  { %3939 = vst.msk [vmem:[#allocation9] sm:$0x1] %vm63_vm3, %v3937_v29 }
 0x68c   :  { %6087 = shalt.err (!%p6084_p0)
}
 0x68d   :  { %s6088_s27 = scalar_lea.hbm %s7686_s9, 16 }
 0x68e   :  { %p6089_p1 = scmp.ne.s32.totalorder %s7686_s9, %s6088_s27  ;;  %p6092_p2 = scmp.lt.u32.totalorder %s6088_s27, %s7686_s9 }
 0x690   :  { %p6094_p3 = pnand %p6092_p2, %p6089_p1 }
 0x692   :  { %6097 = shalt.err (!%p6094_p3)
}
 0x693   :  { %4198 = dma.vmem_to_hbm [thread:$0]  %s4196_s24, 16, %s7686_s9, [#allocation8]   ;;  %v3944_v45 = vpop.permute.xlu1 %3943  ;;  %v3940_v48 = vld [vmem:[#allocation10] sm:$0x1] }
 0x694   :  { %v3949_v41 = vrot.slane %v3944_v45, %v7592_v44  ;;  %s6141_s12 = smov [#allocation10]  }
 0x695   :  { %s4205_s13 = sshll.u32 %s6141_s12, 4  ;;  %s4206_s13 = int_to_ptr.vmem [resolvable:$true] %s4205_s13 }
 0x696   :  { %v3950_v58 = vmul.f32 %v3949_v41, %v3940_v48  ;;  %s6098_s9 = scalar_lea.vmem %s4206_s13, 16  ;;  %s6102_s14 = scalar_lea.vmem %s4206_s13, 32 }
 0x697   :  { %p6099_p4 = scmp.ne.s32.totalorder %s4206_s13, %s6098_s9  ;;  %p6103_p5 = scmp.lt.s32.totalorder %s4206_s13, %s4206_s13 }
 0x698   :  { %p6104_p6 = scmp.lt.s32.totalorder %s6102_s14, %s6098_s9 }
 0x69a   :  { %p6105_p7 = por %p6104_p6, %p6103_p5 }
 0x69c   :  { %p6106_p8 = pnand %p6105_p7, %p6099_p4 }
 0x6c6   :  { %v4787_v62 = vpop.f32.mrb[162].mxu0 }
 0x6c7   :  { %v4788_v17 = vpop.f32.mrb[163].mxu0 }
 0x6c8   :  { %v4157_v6 = vpop.f32.mrb[164].mxu1  ;;  %v4789_v55 = vadd.f32 %v4788_v17, %v4787_v62 }
 0x6c9   :  { %v5095_v24 = vpop.f32.mrb[165].mxu1 }
 0x6e6   :  { %v4822_v61 = vpop.f32.mrb[164].mxu0 }
 0x6e7   :  { %v4823_v50 = vpop.f32.mrb[165].mxu0 }
 0x6e8   :  { %v4824_v60 = vadd.f32 %v4823_v50, %v4822_v61 }
 0x6ea   :  { %v4088_v31 = vadd.f32 %v4824_v60, %v4789_v55 }
 0x6ec   :  { %v4158_v15 = vadd.f32 %v4157_v6, %v4088_v31 }
 0x6ee   :  { %v4161_v49 = vadd.f32 %v4158_v15, %v3950_v58 }
 0x6f0   :  { %4163 = vst.msk [vmem:[#allocation10] sm:$0x1] %vm66_vm4, %v4161_v49 }
 0x6f1   :  { %6109 = shalt.err (!%p6106_p8)
}
 0x6f2   :  { %s6110_s17 = scalar_lea.hbm %s7687_s10, 16 }
 0x6f3   :  { %p6111_p9 = scmp.ne.s32.totalorder %s7687_s10, %s6110_s17  ;;  %p6114_p10 = scmp.lt.u32.totalorder %s6110_s17, %s7687_s10 }
 0x6f5   :  { %p6116_p11 = pnand %p6114_p10, %p6111_p9 }
 0x6f7   :  { %6119 = shalt.err (!%p6116_p11)
}
 0x6f8   :  { %4208 = dma.vmem_to_hbm [thread:$0]  %s4206_s13, 16, %s7687_s10, [#allocation11]  }
 0x6f9   :  { %6122 = dma.done.wait [#allocation5], 80  }
 0x6fa   :  { %6123 = vsyncadd [#allocation5], 4294967216 }
 0x6fb   :  { %6124 = dma.done.wait [#allocation8], 32  }
 0x6fc   :  { %6125 = vsyncadd [#allocation8], 4294967264 }
 0x6fd   :  { %6126 = dma.done.wait [#allocation11], 16  }
 0x6fe   :  { %6127 = vsyncadd [#allocation11], 4294967280 }
 0x6ff   :  { %4221 = vsyncpa [#allocation4], 1 }
 0x700   :  { %4222 = vsyncpa [#allocation5], 1 }
 0x701   :  { %4223 = vsyncpa [#allocation8], 1 }
 0x702   :  { %4224 = vsyncpa [#allocation11], 1 }

</bundles_post_ra>
